<compile_context>
chip_gen: v5e
topology: v5e:2x2
jax: 0.10.0
libtpu: 0.0.40
codegen_flags: <defaults>
</compile_context>

<pallas_src>
import functools

import jax
import jax.numpy as jnp
from jax.experimental import pallas as pl
from jax.experimental.pallas import tpu as pltpu

NUM_GRIDS = 8
GRID_MIN = -2.0
GRID_MAX = 2.0
LANE = 128                       # lane width of the flattened x slab
TM_MAX = 1024                    # max rows per grid step
TM_MIN = 16                      # row granularity for block shapes (bf16-safe)
TARGET_STEPS = 8                 # aim for >= 8 grid steps (v7x megacore + pipeline depth)
VMEM_BUDGET = 10 * 1024 * 1024   # double-buffered in+out tiles stay under v5e's 16 MiB default

# Errors a failed Pallas/Mosaic lowering or compile can surface as (kept narrow
# on purpose so genuine programming bugs are not silently swallowed).
_PROBE_ERRORS = (
    pltpu.LoweringException,
    NotImplementedError,
    ValueError,
    RuntimeError,                                    # XlaRuntimeError subclasses this
    getattr(jax.errors, "JaxRuntimeError", RuntimeError),
)


def _choose_tm(m, bytes_per_row):
    """Rows per grid step: as big as the VMEM budget allows, but small enough that
    the 1-D 'parallel' grid has >= ~TARGET_STEPS steps (so both v7x TensorCores
    get work and the pipeline has depth)."""
    cap = (VMEM_BUDGET // (2 * bytes_per_row)) // TM_MIN * TM_MIN  # double-buffered
    tm_max = max(TM_MIN, min(TM_MAX, cap))
    if m <= TM_MIN:
        return max(m, 1)                     # single full-extent block
    tm = min(tm_max, m)
    target = -(-m // TARGET_STEPS)           # ceil(m / TARGET_STEPS)
    target = -(-target // TM_MIN) * TM_MIN   # round up to a multiple of 16
    return max(TM_MIN, min(tm, target))


# ----------------------------- kernels ------------------------------------- #

def _rbf_kernel_dense(inv_ref, x_ref, g_ref, o_ref, *, num_grids):
    """Lane-dense layout: o[r, ng*c + k] = exp(-((x[r, c] - grid[k]) / d)^2)."""
    inv = inv_ref[0]                                       # 1/denominator (SMEM scalar)
    xs = x_ref[...].astype(jnp.float32) * inv              # scale once per input element
    xr = jnp.repeat(xs, num_grids, axis=1)                 # (TM, 1024) lane interleave (XLU)
    diff = xr - g_ref[...]                                 # (1, 1024) bcast over sublanes
    # TODO(synk): on v7x consider bf16 exp / exp2(-(d*sqrt(log2 e))^2) once HBM is not binding.
    o_ref[...] = jnp.exp(-(diff * diff)).astype(o_ref.dtype)


def _rbf_kernel_bcast(inv_ref, x_ref, g_ref, o_ref):
    """Correctness escape hatch only: 8-wide last dim -> masked partial stores (~4-5x slower)."""
    inv = inv_ref[0]
    xs = x_ref[...].astype(jnp.float32) * inv              # (TM, 128)
    g = g_ref[...]                                         # (1, num_grids), already grid/d
    diff = xs[:, :, None] - g[None, :, :]                  # (TM, 128, num_grids)
    o_ref[...] = jnp.exp(-(diff * diff)).astype(o_ref.dtype)


# --------------------------- pallas_call builders --------------------------- #

def _dense_call(inv, xf, g_row, *, out_dtype, num_grids):
    m = xf.shape[0]
    out_lanes = LANE * num_grids
    bytes_per_row = LANE * (xf.dtype.itemsize + num_grids * jnp.dtype(out_dtype).itemsize)
    tm = _choose_tm(m, bytes_per_row)
    return pl.pallas_call(
        functools.partial(_rbf_kernel_dense, num_grids=num_grids),
        out_shape=jax.ShapeDtypeStruct((m, out_lanes), out_dtype),
        grid=(pl.cdiv(m, tm),),
        in_specs=[
            pl.BlockSpec(memory_space=pltpu.MemorySpace.SMEM),   # 1/denominator
            pl.BlockSpec((tm, LANE), lambda i: (i, 0)),          # x slab tile
            pl.BlockSpec((1, out_lanes), lambda i: (0, 0)),      # constant grid row
        ],
        out_specs=pl.BlockSpec((tm, out_lanes), lambda i: (i, 0)),
        compiler_params=pltpu.CompilerParams(
            dimension_semantics=("parallel",)),
    )(inv, xf, g_row)


def _bcast_call(inv, xf, g_small, *, out_dtype, num_grids):
    m = xf.shape[0]
    bytes_per_row = LANE * (xf.dtype.itemsize + num_grids * jnp.dtype(out_dtype).itemsize)
    tm = _choose_tm(m, bytes_per_row)
    return pl.pallas_call(
        _rbf_kernel_bcast,
        out_shape=jax.ShapeDtypeStruct((m, LANE, num_grids), out_dtype),
        grid=(pl.cdiv(m, tm),),
        in_specs=[
            pl.BlockSpec(memory_space=pltpu.MemorySpace.SMEM),
            pl.BlockSpec((tm, LANE), lambda i: (i, 0)),
            pl.BlockSpec((1, num_grids), lambda i: (0, 0)),
        ],
        out_specs=pl.BlockSpec((tm, LANE, num_grids), lambda i: (i, 0, 0)),
        compiler_params=pltpu.CompilerParams(
            dimension_semantics=("parallel",)),
    )(inv, xf, g_small)


@functools.lru_cache(maxsize=None)
def _dense_layout_compiles(out_dtype_name, num_grids, device_kind):
    """One-time, compile-only probe (no device execution, no blocking): verify the
    lane-interleaving dense kernel lowers through Mosaic on this backend.  Cached
    per (out_dtype, num_grids, device kind)."""
    del device_kind  # only used to key the cache per backend / chip generation
    out_dtype = jnp.dtype(out_dtype_name)
    m = 2 * TM_MIN
    args = (
        jax.ShapeDtypeStruct((1,), jnp.float32),
        jax.ShapeDtypeStruct((m, LANE), jnp.float32),
        jax.ShapeDtypeStruct((1, LANE * num_grids), jnp.float32),
    )
    fn = functools.partial(_dense_call, out_dtype=out_dtype, num_grids=num_grids)
    try:
        jax.jit(fn).lower(*args).compile()
        return True
    except _PROBE_ERRORS:
        # TODO(synk): lane-interleaving jnp.repeat did not lower on this backend;
        # falling back to the (TM, 128, 8) broadcast escape hatch (narrow stores).
        return False


# ------------------------------- wrapper ------------------------------------ #

def radial_basis_function(x, grid, denominator, out_dtype=None):
    """Pallas implementation of RadialBasisFunction.forward.

    out_dtype defaults to the promoted input dtype (PyTorch-faithful).  Pass
    jnp.bfloat16 to halve the dominant HBM writeback stream (recommended on
    v5e/v6e when the consumer tolerates ~8 mantissa bits on values in (0, 1]).
    """
    orig_shape = x.shape
    total = x.size
    num_grids = int(grid.shape[-1])
    if out_dtype is None:
        out_dtype = jnp.result_type(x.dtype, grid.dtype)
    out_dtype = jnp.dtype(out_dtype)

    # Flatten to a lane-dense (M, 128) slab; pad only to 128-element granularity.
    xf = x.reshape(-1)
    rem = total % LANE
    if rem:
        # TODO(synk): the pad + output slice below each cost one extra HBM pass;
        # only shapes whose element count is not a multiple of 128 pay it.
        xf = jnp.pad(xf, (0, LANE - rem))
    m = xf.size // LANE
    xf = xf.reshape(m, LANE)

    # Traced-safe denominator handling; fold 1/denominator into the grid row.
    denom = jnp.asarray(denominator, jnp.float32)
    inv = (1.0 / denom).reshape(1)                   # SMEM scalar, applied to x once
    g_scaled = grid.astype(jnp.float32) / denom      # grid / denominator

    try:
        device_kind = jax.devices()[0].device_kind
    except Exception:  # pragma: no cover - backend introspection only
        device_kind = "unknown"

    if _dense_layout_compiles(out_dtype.name, num_grids, device_kind):
        # g_row[0, ng*c + k] = grid[k]/d  -> matches the lane-interleaved x.
        g_row = jnp.tile(g_scaled, LANE).reshape(1, LANE * num_grids)
        out = _dense_call(inv, xf, g_row, out_dtype=out_dtype, num_grids=num_grids)
        out = out.reshape(m * LANE, num_grids)
    else:
        g_small = g_scaled.reshape(1, num_grids)
        out = _bcast_call(inv, xf, g_small, out_dtype=out_dtype, num_grids=num_grids)
        out = out.reshape(m * LANE, num_grids)

    if rem:
        out = out[:total]
    return out.reshape(*orig_shape, num_grids)


if __name__ == "__main__":
    # Deterministic "parameters" (module __init__): grid = linspace(-2, 2, 8).
    grid = jnp.linspace(GRID_MIN, GRID_MAX, NUM_GRIDS, dtype=jnp.float32)
    denominator = (GRID_MAX - GRID_MIN) / (NUM_GRIDS - 1)

    # Small NCHW-like input (batch=2, channels=4, spatial=16x16).
    key = jax.random.PRNGKey(0)
    x = jax.random.normal(key, (2, 4, 16, 16), dtype=jnp.float32)

    # Default (PyTorch-faithful f32) output.
    out = jax.block_until_ready(radial_basis_function(x, grid, denominator))
    ref = jnp.exp(-(((x[..., None] - grid) / denominator) ** 2))
    assert out.shape == x.shape + (NUM_GRIDS,), out.shape
    assert out.dtype == ref.dtype, out.dtype
    assert jnp.allclose(out, ref, atol=1e-5, rtol=1e-5), float(jnp.max(jnp.abs(out - ref)))

    # bf16 output option: halves the dominant HBM writeback stream on v5e/v6e.
    out_bf16 = jax.block_until_ready(
        radial_basis_function(x, grid, denominator, out_dtype=jnp.bfloat16))
    assert out_bf16.dtype == jnp.bfloat16
    assert jnp.allclose(out_bf16.astype(jnp.float32), ref, atol=1e-2, rtol=1e-2)

    # Unaligned-tail shape (size not a multiple of 128) exercises the pad path.
    x_tail = jax.random.normal(jax.random.PRNGKey(0), (3, 5, 7), dtype=jnp.float32)
    out_tail = jax.block_until_ready(radial_basis_function(x_tail, grid, denominator))
    ref_tail = jnp.exp(-(((x_tail[..., None] - grid) / denominator) ** 2))
    assert out_tail.shape == x_tail.shape + (NUM_GRIDS,), out_tail.shape
    assert jnp.allclose(out_tail, ref_tail, atol=1e-5, rtol=1e-5)

    print("KERNEL_OK")
</pallas_src>

<mosaic_0001>
module attributes {stable_mosaic.version = 11 : i64} {
  func.func @_rbf_kernel_bcast(%arg0: i32, %arg1: memref<1xf32, #tpu.memory_space<smem>>, %arg2: memref<16x128xf32, #tpu.memory_space<vmem>>, %arg3: memref<1x8xf32, #tpu.memory_space<vmem>>, %arg4: memref<16x128x8xf32, #tpu.memory_space<vmem>>) attributes {dimension_semantics = [#tpu.dimension_semantics<parallel>], iteration_bounds = array<i64: 1>, scalar_prefetch = 0 : i64, scratch_operands = 0 : i64, tpu.core_type = #tpu.core_type<tc>, window_params = [{transform_indices = @transform_0, window_bounds = array<i64: 1>}, {transform_indices = @transform_1, window_bounds = array<i64: 16, 128>}, {pipeline_mode = #tpu.pipeline_mode<synchronous>, transform_indices = @transform_2, window_bounds = array<i64: 1, 8>}, {transform_indices = @transform_3, window_bounds = array<i64: 16, 128, 8>}]} {
    %c0 = arith.constant 0 : index
    %0 = memref.load %arg1[%c0] : memref<1xf32, #tpu.memory_space<smem>>
    %c0_0 = arith.constant 0 : index
    %c0_1 = arith.constant 0 : index
    %1 = vector.load %arg2[%c0_0, %c0_1] : memref<16x128xf32, #tpu.memory_space<vmem>>, vector<16x128xf32>
    %2 = vector.broadcast %0 : f32 to vector<16x128xf32>
    %3 = arith.mulf %1, %2 : vector<16x128xf32>
    %c0_2 = arith.constant 0 : index
    %c0_3 = arith.constant 0 : index
    %4 = vector.load %arg3[%c0_2, %c0_3] : memref<1x8xf32, #tpu.memory_space<vmem>>, vector<1x8xf32>
    %5 = vector.shape_cast %3 : vector<16x128xf32> to vector<16x128x1xf32>
    %6 = vector.shape_cast %4 : vector<1x8xf32> to vector<1x1x8xf32>
    %7 = vector.broadcast %5 : vector<16x128x1xf32> to vector<16x128x8xf32>
    %8 = vector.broadcast %6 : vector<1x1x8xf32> to vector<16x128x8xf32>
    %9 = arith.subf %7, %8 : vector<16x128x8xf32>
    %10 = arith.mulf %9, %9 : vector<16x128x8xf32>
    %cst = arith.constant 0.000000e+00 : f32
    %11 = vector.broadcast %cst : f32 to vector<16x128x8xf32>
    %12 = arith.subf %11, %10 : vector<16x128x8xf32>
    %13 = math.exp %12 : vector<16x128x8xf32>
    %c0_4 = arith.constant 0 : index
    %c0_5 = arith.constant 0 : index
    %c0_6 = arith.constant 0 : index
    %14 = vector.load %arg4[%c0_4, %c0_5, %c0_6] : memref<16x128x8xf32, #tpu.memory_space<vmem>>, vector<16x128x8xf32>
    tpu.vector_store %arg4[%c0_4, %c0_5, %c0_6], %13 {strides = array<i32>} : memref<16x128x8xf32, #tpu.memory_space<vmem>>, vector<16x128x8xf32>,
    return
  }
  func.func @transform_0(%arg0: i32) -> i32 {
    %c0_i32 = arith.constant 0 : i32
    %c0_i32_0 = arith.constant 0 : i32
    return %c0_i32 : i32
  }
  func.func @transform_1(%arg0: i32) -> (i32, i32) {
    %c0_i32 = arith.constant 0 : i32
    %c0_i32_0 = arith.constant 0 : i32
    return %arg0, %c0_i32 : i32, i32
  }
  func.func @transform_2(%arg0: i32) -> (i32, i32) {
    %c0_i32 = arith.constant 0 : i32
    %c0_i32_0 = arith.constant 0 : i32
    %c0_i32_1 = arith.constant 0 : i32
    return %c0_i32, %c0_i32_0 : i32, i32
  }
  func.func @transform_3(%arg0: i32) -> (i32, i32, i32) {
    %c0_i32 = arith.constant 0 : i32
    %c0_i32_0 = arith.constant 0 : i32
    %c0_i32_1 = arith.constant 0 : i32
    return %arg0, %c0_i32, %c0_i32_0 : i32, i32, i32
  }
}

</mosaic_0001>

<bundles_post_ra>
// kernel: tpu_custom_call.1
= control target key start
LH: loop header
LB: loop body
LE: loop exit
PB: predicated region body
PF: predicated region fallthrough
CT: control target
= control target key end

     0   :  { %9 = vsyncpa [#allocation4], 0  ;;  %s3902_s15 = smov [#allocation3]   ;;  %s3903_s17 = smov 128   ;;  %s5820_s0 = inlined_call_operand.<no memory space> [shape: f32[1], index: 0, kind: input, shape index: {}]   ;;  %s5821_s1 = inlined_call_operand.hbm [shape: f32[16,128], index: 1, kind: input, shape index: {}]   ;;  %s5822_s2 = inlined_call_operand.vmem [shape: f32[1,8], index: 2, kind: input, shape index: {}]   ;;  %s5823_s3 = inlined_call_operand.vmem [shape: f32[16,128,8], index: 3, kind: output, shape index: {}]  }
   0x1   :  { %s16_s14 = sshll.u32 %s5821_s1, 4  ;;  %s18_s16 = sshll.u32 %s3902_s15, 4  ;;  %s17_s14 = int_to_ptr.hbm [resolvable:$true] %s16_s14  ;;  %s19_s16 = int_to_ptr.vmem [resolvable:$true] %s18_s16 }
   0x2   :  { %s3904_s18 = smov 8  }
   0x3   :  { %24 = dma.hbm_to_vmem [thread:$0]  %s17_s14, 256, %s19_s16, [#allocation4], %s3903_s17, %s3903_s17, %s3904_s18  }
   0x4   :  { %3900 = dma.done.wait [#allocation4], 256  }
   0x5   :  { %3901 = vsyncadd [#allocation4], 4294967040  ;;  %v39_v0 = vlaneseq  ;;  %v34_v4 = vstv %s5820_s0  ;;  %v32_v5 = vld [vmem:[#allocation3] sm:$0xff]  ;;  %vm2873_vm0 = vcmask 64512  }
   0x6   :  { %v3946_v6 = vmul.f32 %v34_v4, %v32_v5  ;;  %v4013_v20 = vld [vmem:[%s5822_s2] ss:$0 sm:$0xff] }
   0x7   :  { %v3928_v1 = vshrl.u32 %v39_v0, 7 }
   0x8   :  { %v3949_v7 = vperm.slane %v3946_v6, 0  ;;  %v3992_v16 = vperm.slane %v3946_v6, 1 }
   0x9   :  { %v3931_v2 = vadd.s32 16, %v3928_v1  ;;  %v3934_v3 = vadd.s32 32, %v3928_v1  ;;  %v3954_v8 = vadd.s32 24, %v3928_v1  ;;  %v3957_v9 = vadd.s32 40, %v3928_v1 }
   0xa   :  { %v3964_v10 = vadd.s32 48, %v3928_v1  ;;  %v3967_v11 = vadd.s32 56, %v3928_v1  ;;  %v3974_v12 = vadd.s32 72, %v3928_v1  ;;  %v3977_v13 = vadd.s32 80, %v3928_v1 }
   0xb   :  { %3138 = vset.pattern.permute.xlu1 %v3931_v2  ;;  %3140 = vset.pattern.permute.xlu2 %v3934_v3  ;;  %v3984_v14 = vadd.s32 88, %v3928_v1  ;;  %v3987_v15 = vadd.s32 96, %v3928_v1  ;;  %v3998_v17 = vadd.s32 112, %v3928_v1  ;;  %v4001_v18 = vadd.s32 120, %v3928_v1 }
   0xc   :  { %3152 = vset.pattern.permute.xlu0 %v3931_v2  ;;  %v4008_v19 = vadd.s32 8, %v3928_v1  ;;  %v4045_v46 = vadd.s32 64, %v3928_v1 }
  0x13   :  { %55 = vperm.xlu1 %3138, %v3949_v7   ;;  %67 = vperm.xlu2 %3140, %v3949_v7  }
  0x14   :  { %152 = vperm.xlu0 %3152, %v3992_v16  }
  0x1b   :  { %3139 = vset.pattern.permute.xlu1 %v3954_v8  ;;  %3141 = vset.pattern.permute.xlu2 %v3957_v9 }
  0x23   :  { %61 = vperm.xlu1 %3139, %v3949_v7   ;;  %73 = vperm.xlu2 %3141, %v3949_v7  }
  0x2b   :  { %3142 = vset.pattern.permute.xlu1 %v3964_v10  ;;  %3143 = vset.pattern.permute.xlu2 %v3967_v11 }
  0x33   :  { %79 = vperm.xlu1 %3142, %v3949_v7   ;;  %85 = vperm.xlu2 %3143, %v3949_v7  }
  0x3b   :  { %3144 = vset.pattern.permute.xlu1 %v3974_v12  ;;  %3145 = vset.pattern.permute.xlu2 %v3977_v13 }
  0x43   :  { %97 = vperm.xlu1 %3144, %v3949_v7   ;;  %103 = vperm.xlu2 %3145, %v3949_v7  }
  0x4b   :  { %3146 = vset.pattern.permute.xlu1 %v3984_v14  ;;  %3147 = vset.pattern.permute.xlu2 %v3987_v15 }
  0x53   :  { %109 = vperm.xlu1 %3146, %v3949_v7   ;;  %115 = vperm.xlu2 %3147, %v3949_v7  }
  0x5b   :  { %3148 = vset.pattern.permute.xlu1 %v3998_v17  ;;  %3149 = vset.pattern.permute.xlu2 %v4001_v18 }
  0x63   :  { %127 = vperm.xlu1 %3148, %v3949_v7   ;;  %133 = vperm.xlu2 %3149, %v3949_v7  }
  0x6b   :  { %3150 = vset.pattern.permute.xlu1 %v3928_v1  ;;  %3151 = vset.pattern.permute.xlu2 %v4008_v19 }
  0x6d   :  { %v68_v21 = vpop.permute.xlu2 %67 }
  0x6e   :  { %v1597_v22 = vsub.f32 %v68_v21, %v4013_v20 }
  0x70   :  { %v1853_v23 = vmul.f32 %v1597_v22, %v1597_v22 }
  0x72   :  { %v2109_v24 = vsub.f32 0.0, %v1853_v23 }
  0x73   :  { %140 = vperm.xlu1 %3150, %v3992_v16   ;;  %146 = vperm.xlu2 %3151, %v3992_v16  }
  0x74   :  { %v2369_v25 = vmul.f32 1.442695, %v2109_v24 }
  0x76   :  { %3360 = vpow2.f32 %v2369_v25 }
  0x7b   :  { %3153 = vset.pattern.permute.xlu1 %v3954_v8  ;;  %3154 = vset.pattern.permute.xlu2 %v3934_v3 }
  0x7c   :  { %v3361_v26 = vpop.eup %3360 }
  0x7d   :  { %2878 = vst.msk [vmem:[%s5823_s3 + $0x20] sm:$0xff] %vm2873_vm0, %v3361_v26  ;;  %v74_v27 = vpop.permute.xlu2 %73  ;;  %v4076_v26 = vadd.s32 104, %v3928_v1 }
  0x7e   :  { %v1598_v28 = vsub.f32 %v74_v27, %v4013_v20 }
  0x80   :  { %v1854_v29 = vmul.f32 %v1598_v28, %v1598_v28 }
  0x82   :  { %v2110_v30 = vsub.f32 0.0, %v1854_v29 }
  0x83   :  { %158 = vperm.xlu1 %3153, %v3992_v16   ;;  %164 = vperm.xlu2 %3154, %v3992_v16  }
  0x84   :  { %v2371_v31 = vmul.f32 1.442695, %v2110_v30 }
  0x85   :  { %v56_v32 = vpop.permute.xlu1 %55 }
  0x86   :  { %v1595_v33 = vsub.f32 %v56_v32, %v4013_v20  ;;  %3362 = vpow2.f32 %v2371_v31 }
  0x88   :  { %v1851_v34 = vmul.f32 %v1595_v33, %v1595_v33 }
  0x8a   :  { %v2107_v35 = vsub.f32 0.0, %v1851_v34 }
  0x8b   :  { %3155 = vset.pattern.permute.xlu1 %v3957_v9  ;;  %3156 = vset.pattern.permute.xlu2 %v3964_v10 }
  0x8c   :  { %v3363_v36 = vpop.eup %3362  ;;  %v2365_v37 = vmul.f32 1.442695, %v2107_v35 }
  0x8d   :  { %2879 = vst.msk [vmem:[%s5823_s3 + $0x28] sm:$0xff] %vm2873_vm0, %v3363_v36  ;;  %v86_v38 = vpop.permute.xlu2 %85 }
  0x8e   :  { %3364 = vpow2.f32 %v2365_v37  ;;  %v1600_v39 = vsub.f32 %v86_v38, %v4013_v20 }
  0x90   :  { %v1856_v40 = vmul.f32 %v1600_v39, %v1600_v39 }
  0x92   :  { %v2112_v41 = vsub.f32 0.0, %v1856_v40 }
  0x93   :  { %170 = vperm.xlu1 %3155, %v3992_v16   ;;  %176 = vperm.xlu2 %3156, %v3992_v16  }
  0x94   :  { %v3365_v42 = vpop.eup %3364  ;;  %v2375_v43 = vmul.f32 1.442695, %v2112_v41 }
  0x95   :  { %2876 = vst.msk [vmem:[%s5823_s3 + $0x10] sm:$0xff] %vm2873_vm0, %v3365_v42  ;;  %v62_v44 = vpop.permute.xlu1 %61 }
  0x96   :  { %v1596_v45 = vsub.f32 %v62_v44, %v4013_v20  ;;  %3366 = vpow2.f32 %v2375_v43 }
  0x98   :  { %v1852_v47 = vmul.f32 %v1596_v45, %v1596_v45 }
  0x9a   :  { %v2108_v48 = vsub.f32 0.0, %v1852_v47  ;;  %v4100_v47 = vperm.slane %v3946_v6, 2 }
  0x9b   :  { %3157 = vset.pattern.permute.xlu1 %v4045_v46  ;;  %3158 = vset.pattern.permute.xlu2 %v3974_v12 }
  0x9c   :  { %v3367_v49 = vpop.eup %3366  ;;  %v2367_v50 = vmul.f32 1.442695, %v2108_v48 }
  0x9d   :  { %2881 = vst.msk [vmem:[%s5823_s3 + $0x38] sm:$0xff] %vm2873_vm0, %v3367_v49  ;;  %v104_v51 = vpop.permute.xlu2 %103 }
  0x9e   :  { %3368 = vpow2.f32 %v2367_v50  ;;  %v1603_v52 = vsub.f32 %v104_v51, %v4013_v20 }
  0xa0   :  { %v1859_v53 = vmul.f32 %v1603_v52, %v1603_v52 }
  0xa2   :  { %v2115_v54 = vsub.f32 0.0, %v1859_v53 }
  0xa3   :  { %188 = vperm.xlu1 %3157, %v3992_v16   ;;  %194 = vperm.xlu2 %3158, %v3992_v16  }
  0xa4   :  { %v3369_v55 = vpop.eup %3368  ;;  %v2381_v56 = vmul.f32 1.442695, %v2115_v54 }
  0xa5   :  { %2877 = vst.msk [vmem:[%s5823_s3 + $0x18] sm:$0xff] %vm2873_vm0, %v3369_v55  ;;  %v80_v57 = vpop.permute.xlu1 %79 }
  0xa6   :  { %v1599_v58 = vsub.f32 %v80_v57, %v4013_v20  ;;  %3370 = vpow2.f32 %v2381_v56 }
  0xa8   :  { %v1855_v59 = vmul.f32 %v1599_v58, %v1599_v58 }
  0xaa   :  { %v2111_v60 = vsub.f32 0.0, %v1855_v59 }
  0xab   :  { %3159 = vset.pattern.permute.xlu1 %v3977_v13  ;;  %3160 = vset.pattern.permute.xlu2 %v3984_v14 }
  0xac   :  { %v3371_v61 = vpop.eup %3370  ;;  %v2373_v62 = vmul.f32 1.442695, %v2111_v60 }
  0xad   :  { %2884 = vst.msk [vmem:[%s5823_s3 + $0x50] sm:$0xff] %vm2873_vm0, %v3371_v61  ;;  %v116_v63 = vpop.permute.xlu2 %115 }
  0xae   :  { %3372 = vpow2.f32 %v2373_v62  ;;  %v1605_v0 = vsub.f32 %v116_v63, %v4013_v20 }
  0xb0   :  { %v1861_v5 = vmul.f32 %v1605_v0, %v1605_v0 }
  0xb2   :  { %v2117_v21 = vsub.f32 0.0, %v1861_v5 }
  0xb3   :  { %200 = vperm.xlu1 %3159, %v3992_v16   ;;  %206 = vperm.xlu2 %3160, %v3992_v16  }
  0xb4   :  { %v3373_v22 = vpop.eup %3372  ;;  %v2385_v23 = vmul.f32 1.442695, %v2117_v21 }
  0xb5   :  { %2880 = vst.msk [vmem:[%s5823_s3 + $0x30] sm:$0xff] %vm2873_vm0, %v3373_v22  ;;  %v98_v24 = vpop.permute.xlu1 %97 }
  0xb6   :  { %v1602_v25 = vsub.f32 %v98_v24, %v4013_v20  ;;  %3374 = vpow2.f32 %v2385_v23 }
  0xb8   :  { %v1858_v27 = vmul.f32 %v1602_v25, %v1602_v25 }
  0xba   :  { %v2114_v28 = vsub.f32 0.0, %v1858_v27 }
  0xbb   :  { %3161 = vset.pattern.permute.xlu1 %v4076_v26  ;;  %3162 = vset.pattern.permute.xlu2 %v3998_v17 }
  0xbc   :  { %v3375_v29 = vpop.eup %3374  ;;  %v2379_v30 = vmul.f32 1.442695, %v2114_v28 }
  0xbd   :  { %2886 = vst.msk [vmem:[%s5823_s3 + $0x60] sm:$0xff] %vm2873_vm0, %v3375_v29  ;;  %v134_v31 = vpop.permute.xlu2 %133 }
  0xbe   :  { %3376 = vpow2.f32 %v2379_v30  ;;  %v1608_v32 = vsub.f32 %v134_v31, %v4013_v20 }
  0xc0   :  { %v1864_v33 = vmul.f32 %v1608_v32, %v1608_v32 }
  0xc2   :  { %v2120_v34 = vsub.f32 0.0, %v1864_v33 }
  0xc3   :  { %218 = vperm.xlu1 %3161, %v3992_v16   ;;  %224 = vperm.xlu2 %3162, %v3992_v16  }
  0xc4   :  { %v3377_v35 = vpop.eup %3376  ;;  %v2391_v36 = vmul.f32 1.442695, %v2120_v34 }
  0xc5   :  { %2883 = vst.msk [vmem:[%s5823_s3 + $0x48] sm:$0xff] %vm2873_vm0, %v3377_v35  ;;  %v110_v37 = vpop.permute.xlu1 %109 }
  0xc6   :  { %v1604_v38 = vsub.f32 %v110_v37, %v4013_v20  ;;  %3378 = vpow2.f32 %v2391_v36 }
  0xc8   :  { %v1860_v39 = vmul.f32 %v1604_v38, %v1604_v38 }
  0xca   :  { %v2116_v40 = vsub.f32 0.0, %v1860_v39 }
  0xcb   :  { %3163 = vset.pattern.permute.xlu1 %v4001_v18  ;;  %3164 = vset.pattern.permute.xlu2 %v3928_v1 }
  0xcc   :  { %v3379_v41 = vpop.eup %3378  ;;  %v2383_v42 = vmul.f32 1.442695, %v2116_v40 }
  0xcd   :  { %2889 = vst.msk [vmem:[%s5823_s3 + $0x78] sm:$0xff] %vm2873_vm0, %v3379_v41  ;;  %v147_v43 = vpop.permute.xlu2 %146 }
  0xce   :  { %3380 = vpow2.f32 %v2383_v42  ;;  %v1610_v44 = vsub.f32 %v147_v43, %v4013_v20 }
  0xd0   :  { %v1866_v45 = vmul.f32 %v1610_v44, %v1610_v44 }
  0xd2   :  { %v2122_v48 = vsub.f32 0.0, %v1866_v45 }
  0xd3   :  { %230 = vperm.xlu1 %3163, %v3992_v16   ;;  %237 = vperm.xlu2 %3164, %v4100_v47  }
  0xd4   :  { %v3381_v49 = vpop.eup %3380  ;;  %v2395_v50 = vmul.f32 1.442695, %v2122_v48 }
  0xd5   :  { %2885 = vst.msk [vmem:[%s5823_s3 + $0x58] sm:$0xff] %vm2873_vm0, %v3381_v49  ;;  %v128_v51 = vpop.permute.xlu1 %127 }
  0xd6   :  { %v1607_v52 = vsub.f32 %v128_v51, %v4013_v20  ;;  %3382 = vpow2.f32 %v2395_v50 }
  0xd8   :  { %v1863_v53 = vmul.f32 %v1607_v52, %v1607_v52 }
  0xda   :  { %v2119_v54 = vsub.f32 0.0, %v1863_v53 }
  0xdb   :  { %3165 = vset.pattern.permute.xlu1 %v3931_v2  ;;  %3166 = vset.pattern.permute.xlu2 %v3954_v8 }
  0xdc   :  { %v3383_v55 = vpop.eup %3382  ;;  %v2389_v56 = vmul.f32 1.442695, %v2119_v54 }
  0xdd   :  { %2891 = vst.msk [vmem:[%s5823_s3 + $0x88] sm:$0xff] %vm2873_vm0, %v3383_v55  ;;  %v165_v57 = vpop.permute.xlu2 %164 }
  0xde   :  { %3384 = vpow2.f32 %v2389_v56  ;;  %v1613_v58 = vsub.f32 %v165_v57, %v4013_v20 }
  0xe0   :  { %v1869_v59 = vmul.f32 %v1613_v58, %v1613_v58 }
  0xe2   :  { %v2125_v60 = vsub.f32 0.0, %v1869_v59 }
  0xe3   :  { %249 = vperm.xlu1 %3165, %v4100_v47   ;;  %255 = vperm.xlu2 %3166, %v4100_v47  }
  0xe4   :  { %v3385_v61 = vpop.eup %3384  ;;  %v2401_v62 = vmul.f32 1.442695, %v2125_v60 }
  0xe5   :  { %2888 = vst.msk [vmem:[%s5823_s3 + $0x70] sm:$0xff] %vm2873_vm0, %v3385_v61  ;;  %v141_v63 = vpop.permute.xlu1 %140 }
  0xe6   :  { %v1609_v0 = vsub.f32 %v141_v63, %v4013_v20  ;;  %3386 = vpow2.f32 %v2401_v62 }
  0xe8   :  { %v1865_v5 = vmul.f32 %v1609_v0, %v1609_v0 }
  0xea   :  { %v2121_v21 = vsub.f32 0.0, %v1865_v5 }
  0xeb   :  { %3167 = vset.pattern.permute.xlu1 %v3934_v3  ;;  %3168 = vset.pattern.permute.xlu2 %v3957_v9 }
  0xec   :  { %v3387_v22 = vpop.eup %3386  ;;  %v2393_v23 = vmul.f32 1.442695, %v2121_v21 }
  0xed   :  { %2894 = vst.msk [vmem:[%s5823_s3 + $0xa0] sm:$0xff] %vm2873_vm0, %v3387_v22  ;;  %v177_v24 = vpop.permute.xlu2 %176 }
  0xee   :  { %3388 = vpow2.f32 %v2393_v23  ;;  %v1615_v25 = vsub.f32 %v177_v24, %v4013_v20 }
  0xf0   :  { %v1871_v27 = vmul.f32 %v1615_v25, %v1615_v25 }
  0xf2   :  { %v2127_v28 = vsub.f32 0.0, %v1871_v27 }
  0xf3   :  { %261 = vperm.xlu1 %3167, %v4100_v47   ;;  %267 = vperm.xlu2 %3168, %v4100_v47  }
  0xf4   :  { %v3389_v29 = vpop.eup %3388  ;;  %v2405_v30 = vmul.f32 1.442695, %v2127_v28 }
  0xf5   :  { %2890 = vst.msk [vmem:[%s5823_s3 + $0x80] sm:$0xff] %vm2873_vm0, %v3389_v29  ;;  %v159_v31 = vpop.permute.xlu1 %158 }
  0xf6   :  { %v1612_v32 = vsub.f32 %v159_v31, %v4013_v20  ;;  %3390 = vpow2.f32 %v2405_v30 }
  0xf8   :  { %v1868_v33 = vmul.f32 %v1612_v32, %v1612_v32 }
  0xfa   :  { %v2124_v34 = vsub.f32 0.0, %v1868_v33 }
  0xfb   :  { %3169 = vset.pattern.permute.xlu1 %v3967_v11  ;;  %3170 = vset.pattern.permute.xlu2 %v4045_v46 }
  0xfc   :  { %v3391_v35 = vpop.eup %3390  ;;  %v2399_v36 = vmul.f32 1.442695, %v2124_v34 }
  0xfd   :  { %2896 = vst.msk [vmem:[%s5823_s3 + $0xb0] sm:$0xff] %vm2873_vm0, %v3391_v35  ;;  %v195_v37 = vpop.permute.xlu2 %194 }
  0xfe   :  { %3392 = vpow2.f32 %v2399_v36  ;;  %v1618_v38 = vsub.f32 %v195_v37, %v4013_v20 }
 0x100   :  { %v1874_v39 = vmul.f32 %v1618_v38, %v1618_v38 }
 0x102   :  { %v2130_v40 = vsub.f32 0.0, %v1874_v39 }
 0x103   :  { %279 = vperm.xlu1 %3169, %v4100_v47   ;;  %285 = vperm.xlu2 %3170, %v4100_v47  }
 0x104   :  { %v3393_v41 = vpop.eup %3392  ;;  %v2411_v42 = vmul.f32 1.442695, %v2130_v40 }
 0x105   :  { %2893 = vst.msk [vmem:[%s5823_s3 + $0x98] sm:$0xff] %vm2873_vm0, %v3393_v41  ;;  %v171_v43 = vpop.permute.xlu1 %170 }
 0x106   :  { %v1614_v44 = vsub.f32 %v171_v43, %v4013_v20  ;;  %3394 = vpow2.f32 %v2411_v42 }
 0x108   :  { %v1870_v45 = vmul.f32 %v1614_v44, %v1614_v44 }
 0x10a   :  { %v2126_v48 = vsub.f32 0.0, %v1870_v45  ;;  %v4201_v45 = vperm.slane %v3946_v6, 3 }
 0x10b   :  { %3171 = vset.pattern.permute.xlu1 %v3974_v12  ;;  %3172 = vset.pattern.permute.xlu2 %v3977_v13 }
 0x10c   :  { %v3395_v49 = vpop.eup %3394  ;;  %v2403_v50 = vmul.f32 1.442695, %v2126_v48 }
 0x10d   :  { %2899 = vst.msk [vmem:[%s5823_s3 + $0xc8] sm:$0xff] %vm2873_vm0, %v3395_v49  ;;  %v207_v51 = vpop.permute.xlu2 %206 }
 0x10e   :  { %3396 = vpow2.f32 %v2403_v50  ;;  %v1620_v52 = vsub.f32 %v207_v51, %v4013_v20 }
 0x110   :  { %v1876_v53 = vmul.f32 %v1620_v52, %v1620_v52 }
 0x112   :  { %v2132_v54 = vsub.f32 0.0, %v1876_v53 }
 0x113   :  { %291 = vperm.xlu1 %3171, %v4100_v47   ;;  %297 = vperm.xlu2 %3172, %v4100_v47  }
 0x114   :  { %v3397_v55 = vpop.eup %3396  ;;  %v2415_v56 = vmul.f32 1.442695, %v2132_v54 }
 0x115   :  { %2895 = vst.msk [vmem:[%s5823_s3 + $0xa8] sm:$0xff] %vm2873_vm0, %v3397_v55  ;;  %v189_v57 = vpop.permute.xlu1 %188 }
 0x116   :  { %v1617_v58 = vsub.f32 %v189_v57, %v4013_v20  ;;  %3398 = vpow2.f32 %v2415_v56 }
 0x118   :  { %v1873_v59 = vmul.f32 %v1617_v58, %v1617_v58 }
 0x11a   :  { %v2129_v60 = vsub.f32 0.0, %v1873_v59 }
 0x11b   :  { %3173 = vset.pattern.permute.xlu1 %v3987_v15  ;;  %3174 = vset.pattern.permute.xlu2 %v4076_v26 }
 0x11c   :  { %v3399_v61 = vpop.eup %3398  ;;  %v2409_v62 = vmul.f32 1.442695, %v2129_v60 }
 0x11d   :  { %2901 = vst.msk [vmem:[%s5823_s3 + $0xd8] sm:$0xff] %vm2873_vm0, %v3399_v61  ;;  %v225_v63 = vpop.permute.xlu2 %224 }
 0x11e   :  { %3400 = vpow2.f32 %v2409_v62  ;;  %v1623_v0 = vsub.f32 %v225_v63, %v4013_v20 }
 0x120   :  { %v1879_v5 = vmul.f32 %v1623_v0, %v1623_v0 }
 0x122   :  { %v2135_v21 = vsub.f32 0.0, %v1879_v5 }
 0x123   :  { %309 = vperm.xlu1 %3173, %v4100_v47   ;;  %315 = vperm.xlu2 %3174, %v4100_v47  }
 0x124   :  { %v3401_v22 = vpop.eup %3400  ;;  %v2421_v23 = vmul.f32 1.442695, %v2135_v21 }
 0x125   :  { %2898 = vst.msk [vmem:[%s5823_s3 + $0xc0] sm:$0xff] %vm2873_vm0, %v3401_v22  ;;  %v201_v24 = vpop.permute.xlu1 %200 }
 0x126   :  { %v1619_v25 = vsub.f32 %v201_v24, %v4013_v20  ;;  %3402 = vpow2.f32 %v2421_v23 }
 0x128   :  { %v1875_v27 = vmul.f32 %v1619_v25, %v1619_v25 }
 0x12a   :  { %v2131_v28 = vsub.f32 0.0, %v1875_v27 }
 0x12b   :  { %3175 = vset.pattern.permute.xlu1 %v3998_v17  ;;  %3176 = vset.pattern.permute.xlu2 %v4001_v18 }
 0x12c   :  { %v3403_v29 = vpop.eup %3402  ;;  %v2413_v30 = vmul.f32 1.442695, %v2131_v28 }
 0x12d   :  { %2904 = vst.msk [vmem:[%s5823_s3 + $0xf0] sm:$0xff] %vm2873_vm0, %v3403_v29  ;;  %v238_v31 = vpop.permute.xlu2 %237 }
 0x12e   :  { %3404 = vpow2.f32 %v2413_v30  ;;  %v1625_v32 = vsub.f32 %v238_v31, %v4013_v20 }
 0x130   :  { %v1881_v33 = vmul.f32 %v1625_v32, %v1625_v32 }
 0x132   :  { %v2137_v34 = vsub.f32 0.0, %v1881_v33 }
 0x133   :  { %321 = vperm.xlu1 %3175, %v4100_v47   ;;  %327 = vperm.xlu2 %3176, %v4100_v47  }
 0x134   :  { %v3405_v35 = vpop.eup %3404  ;;  %v2425_v36 = vmul.f32 1.442695, %v2137_v34 }
 0x135   :  { %2900 = vst.msk [vmem:[%s5823_s3 + $0xd0] sm:$0xff] %vm2873_vm0, %v3405_v35  ;;  %v219_v37 = vpop.permute.xlu1 %218 }
 0x136   :  { %v1622_v38 = vsub.f32 %v219_v37, %v4013_v20  ;;  %3406 = vpow2.f32 %v2425_v36 }
 0x138   :  { %v1878_v39 = vmul.f32 %v1622_v38, %v1622_v38 }
 0x13a   :  { %v2134_v40 = vsub.f32 0.0, %v1878_v39 }
 0x13b   :  { %3177 = vset.pattern.permute.xlu1 %v4008_v19  ;;  %3178 = vset.pattern.permute.xlu2 %v3931_v2 }
 0x13c   :  { %v3407_v41 = vpop.eup %3406  ;;  %v2419_v42 = vmul.f32 1.442695, %v2134_v40 }
 0x13d   :  { %2906 = vst.msk [vmem:[%s5823_s3 + $0x100] sm:$0xff] %vm2873_vm0, %v3407_v41  ;;  %v256_v43 = vpop.permute.xlu2 %255 }
 0x13e   :  { %3408 = vpow2.f32 %v2419_v42  ;;  %v1628_v44 = vsub.f32 %v256_v43, %v4013_v20 }
 0x140   :  { %v1884_v48 = vmul.f32 %v1628_v44, %v1628_v44 }
 0x142   :  { %v2140_v49 = vsub.f32 0.0, %v1884_v48 }
 0x143   :  { %340 = vperm.xlu1 %3177, %v4201_v45   ;;  %346 = vperm.xlu2 %3178, %v4201_v45  }
 0x144   :  { %v3409_v50 = vpop.eup %3408  ;;  %v2431_v51 = vmul.f32 1.442695, %v2140_v49 }
 0x145   :  { %2903 = vst.msk [vmem:[%s5823_s3 + $0xe8] sm:$0xff] %vm2873_vm0, %v3409_v50  ;;  %v231_v52 = vpop.permute.xlu1 %230 }
 0x146   :  { %v1624_v53 = vsub.f32 %v231_v52, %v4013_v20  ;;  %3410 = vpow2.f32 %v2431_v51 }
 0x148   :  { %v1880_v54 = vmul.f32 %v1624_v53, %v1624_v53 }
 0x14a   :  { %v2136_v55 = vsub.f32 0.0, %v1880_v54 }
 0x14b   :  { %3179 = vset.pattern.permute.xlu1 %v3954_v8  ;;  %3180 = vset.pattern.permute.xlu2 %v3934_v3 }
 0x14c   :  { %v3411_v56 = vpop.eup %3410  ;;  %v2423_v57 = vmul.f32 1.442695, %v2136_v55 }
 0x14d   :  { %2909 = vst.msk [vmem:[%s5823_s3 + $0x118] sm:$0xff] %vm2873_vm0, %v3411_v56  ;;  %v268_v58 = vpop.permute.xlu2 %267 }
 0x14e   :  { %3412 = vpow2.f32 %v2423_v57  ;;  %v1630_v59 = vsub.f32 %v268_v58, %v4013_v20 }
 0x150   :  { %v1886_v60 = vmul.f32 %v1630_v59, %v1630_v59 }
 0x152   :  { %v2142_v61 = vsub.f32 0.0, %v1886_v60 }
 0x153   :  { %352 = vperm.xlu1 %3179, %v4201_v45   ;;  %358 = vperm.xlu2 %3180, %v4201_v45  }
 0x154   :  { %v3413_v62 = vpop.eup %3412  ;;  %v2435_v63 = vmul.f32 1.442695, %v2142_v61 }
 0x155   :  { %2905 = vst.msk [vmem:[%s5823_s3 + $0xf8] sm:$0xff] %vm2873_vm0, %v3413_v62  ;;  %v250_v0 = vpop.permute.xlu1 %249 }
 0x156   :  { %v1627_v5 = vsub.f32 %v250_v0, %v4013_v20  ;;  %3414 = vpow2.f32 %v2435_v63 }
 0x158   :  { %v1883_v21 = vmul.f32 %v1627_v5, %v1627_v5 }
 0x15a   :  { %v2139_v22 = vsub.f32 0.0, %v1883_v21 }
 0x15b   :  { %3181 = vset.pattern.permute.xlu1 %v3964_v10  ;;  %3182 = vset.pattern.permute.xlu2 %v3967_v11 }
 0x15c   :  { %v3415_v23 = vpop.eup %3414  ;;  %v2429_v24 = vmul.f32 1.442695, %v2139_v22 }
 0x15d   :  { %2911 = vst.msk [vmem:[%s5823_s3 + $0x128] sm:$0xff] %vm2873_vm0, %v3415_v23  ;;  %v286_v25 = vpop.permute.xlu2 %285 }
 0x15e   :  { %3416 = vpow2.f32 %v2429_v24  ;;  %v1633_v27 = vsub.f32 %v286_v25, %v4013_v20 }
 0x160   :  { %v1889_v28 = vmul.f32 %v1633_v27, %v1633_v27 }
 0x162   :  { %v2145_v29 = vsub.f32 0.0, %v1889_v28 }
 0x163   :  { %370 = vperm.xlu1 %3181, %v4201_v45   ;;  %376 = vperm.xlu2 %3182, %v4201_v45  }
 0x164   :  { %v3417_v30 = vpop.eup %3416  ;;  %v2441_v31 = vmul.f32 1.442695, %v2145_v29 }
 0x165   :  { %2908 = vst.msk [vmem:[%s5823_s3 + $0x110] sm:$0xff] %vm2873_vm0, %v3417_v30  ;;  %v262_v32 = vpop.permute.xlu1 %261 }
 0x166   :  { %v1629_v33 = vsub.f32 %v262_v32, %v4013_v20  ;;  %3418 = vpow2.f32 %v2441_v31 }
 0x168   :  { %v1885_v34 = vmul.f32 %v1629_v33, %v1629_v33 }
 0x16a   :  { %v2141_v35 = vsub.f32 0.0, %v1885_v34 }
 0x16b   :  { %3183 = vset.pattern.permute.xlu1 %v4045_v46  ;;  %3184 = vset.pattern.permute.xlu2 %v3974_v12 }
 0x16c   :  { %v3419_v36 = vpop.eup %3418  ;;  %v2433_v37 = vmul.f32 1.442695, %v2141_v35  ;;  %v4288_v35 = vperm.slane %v3946_v6, 4 }
 0x16d   :  { %2914 = vst.msk [vmem:[%s5823_s3 + $0x140] sm:$0xff] %vm2873_vm0, %v3419_v36  ;;  %v298_v38 = vpop.permute.xlu2 %297 }
 0x16e   :  { %3420 = vpow2.f32 %v2433_v37  ;;  %v1635_v39 = vsub.f32 %v298_v38, %v4013_v20 }
 0x170   :  { %v1891_v40 = vmul.f32 %v1635_v39, %v1635_v39 }
 0x172   :  { %v2147_v41 = vsub.f32 0.0, %v1891_v40 }
 0x173   :  { %382 = vperm.xlu1 %3183, %v4201_v45   ;;  %388 = vperm.xlu2 %3184, %v4201_v45  }
 0x174   :  { %v3421_v42 = vpop.eup %3420  ;;  %v2445_v43 = vmul.f32 1.442695, %v2147_v41 }
 0x175   :  { %2910 = vst.msk [vmem:[%s5823_s3 + $0x120] sm:$0xff] %vm2873_vm0, %v3421_v42  ;;  %v280_v44 = vpop.permute.xlu1 %279 }
 0x176   :  { %v1632_v48 = vsub.f32 %v280_v44, %v4013_v20  ;;  %3422 = vpow2.f32 %v2445_v43 }
 0x178   :  { %v1888_v49 = vmul.f32 %v1632_v48, %v1632_v48 }
 0x17a   :  { %v2144_v50 = vsub.f32 0.0, %v1888_v49 }
 0x17b   :  { %3185 = vset.pattern.permute.xlu1 %v3984_v14  ;;  %3186 = vset.pattern.permute.xlu2 %v3987_v15 }
 0x17c   :  { %v3423_v51 = vpop.eup %3422  ;;  %v2439_v52 = vmul.f32 1.442695, %v2144_v50 }
 0x17d   :  { %2916 = vst.msk [vmem:[%s5823_s3 + $0x150] sm:$0xff] %vm2873_vm0, %v3423_v51  ;;  %v316_v53 = vpop.permute.xlu2 %315 }
 0x17e   :  { %3424 = vpow2.f32 %v2439_v52  ;;  %v1638_v54 = vsub.f32 %v316_v53, %v4013_v20 }
 0x180   :  { %v1894_v55 = vmul.f32 %v1638_v54, %v1638_v54 }
 0x182   :  { %v2150_v56 = vsub.f32 0.0, %v1894_v55 }
 0x183   :  { %400 = vperm.xlu1 %3185, %v4201_v45   ;;  %406 = vperm.xlu2 %3186, %v4201_v45  }
 0x184   :  { %v3425_v57 = vpop.eup %3424  ;;  %v2451_v58 = vmul.f32 1.442695, %v2150_v56 }
 0x185   :  { %2913 = vst.msk [vmem:[%s5823_s3 + $0x138] sm:$0xff] %vm2873_vm0, %v3425_v57  ;;  %v292_v59 = vpop.permute.xlu1 %291 }
 0x186   :  { %v1634_v60 = vsub.f32 %v292_v59, %v4013_v20  ;;  %3426 = vpow2.f32 %v2451_v58 }
 0x188   :  { %v1890_v61 = vmul.f32 %v1634_v60, %v1634_v60 }
 0x18a   :  { %v2146_v62 = vsub.f32 0.0, %v1890_v61 }
 0x18b   :  { %3187 = vset.pattern.permute.xlu1 %v4076_v26  ;;  %3188 = vset.pattern.permute.xlu2 %v3998_v17 }
 0x18c   :  { %v3427_v63 = vpop.eup %3426  ;;  %v2443_v0 = vmul.f32 1.442695, %v2146_v62 }
 0x18d   :  { %2919 = vst.msk [vmem:[%s5823_s3 + $0x168] sm:$0xff] %vm2873_vm0, %v3427_v63  ;;  %v328_v5 = vpop.permute.xlu2 %327 }
 0x18e   :  { %3428 = vpow2.f32 %v2443_v0  ;;  %v1640_v21 = vsub.f32 %v328_v5, %v4013_v20 }
 0x190   :  { %v1896_v22 = vmul.f32 %v1640_v21, %v1640_v21 }
 0x192   :  { %v2152_v23 = vsub.f32 0.0, %v1896_v22 }
 0x193   :  { %412 = vperm.xlu1 %3187, %v4201_v45   ;;  %418 = vperm.xlu2 %3188, %v4201_v45  }
 0x194   :  { %v3429_v24 = vpop.eup %3428  ;;  %v2455_v25 = vmul.f32 1.442695, %v2152_v23 }
 0x195   :  { %2915 = vst.msk [vmem:[%s5823_s3 + $0x148] sm:$0xff] %vm2873_vm0, %v3429_v24  ;;  %v310_v27 = vpop.permute.xlu1 %309 }
 0x196   :  { %v1637_v28 = vsub.f32 %v310_v27, %v4013_v20  ;;  %3430 = vpow2.f32 %v2455_v25 }
 0x198   :  { %v1893_v29 = vmul.f32 %v1637_v28, %v1637_v28 }
 0x19a   :  { %v2149_v30 = vsub.f32 0.0, %v1893_v29 }
 0x19b   :  { %3189 = vset.pattern.permute.xlu1 %v3928_v1  ;;  %3190 = vset.pattern.permute.xlu2 %v4008_v19 }
 0x19c   :  { %v3431_v31 = vpop.eup %3430  ;;  %v2449_v32 = vmul.f32 1.442695, %v2149_v30 }
 0x19d   :  { %2921 = vst.msk [vmem:[%s5823_s3 + $0x178] sm:$0xff] %vm2873_vm0, %v3431_v31  ;;  %v347_v33 = vpop.permute.xlu2 %346 }
 0x19e   :  { %3432 = vpow2.f32 %v2449_v32  ;;  %v1643_v34 = vsub.f32 %v347_v33, %v4013_v20 }
 0x1a0   :  { %v1899_v36 = vmul.f32 %v1643_v34, %v1643_v34 }
 0x1a2   :  { %v2155_v37 = vsub.f32 0.0, %v1899_v36 }
 0x1a3   :  { %431 = vperm.xlu1 %3189, %v4288_v35   ;;  %437 = vperm.xlu2 %3190, %v4288_v35  }
 0x1a4   :  { %v3433_v38 = vpop.eup %3432  ;;  %v2461_v39 = vmul.f32 1.442695, %v2155_v37 }
 0x1a5   :  { %2918 = vst.msk [vmem:[%s5823_s3 + $0x160] sm:$0xff] %vm2873_vm0, %v3433_v38  ;;  %v322_v40 = vpop.permute.xlu1 %321 }
 0x1a6   :  { %v1639_v41 = vsub.f32 %v322_v40, %v4013_v20  ;;  %3434 = vpow2.f32 %v2461_v39 }
 0x1a8   :  { %v1895_v42 = vmul.f32 %v1639_v41, %v1639_v41 }
 0x1aa   :  { %v2151_v43 = vsub.f32 0.0, %v1895_v42 }
 0x1ab   :  { %3191 = vset.pattern.permute.xlu1 %v3931_v2  ;;  %3192 = vset.pattern.permute.xlu2 %v3954_v8 }
 0x1ac   :  { %v3435_v44 = vpop.eup %3434  ;;  %v2453_v48 = vmul.f32 1.442695, %v2151_v43 }
 0x1ad   :  { %2924 = vst.msk [vmem:[%s5823_s3 + $0x190] sm:$0xff] %vm2873_vm0, %v3435_v44  ;;  %v359_v49 = vpop.permute.xlu2 %358 }
 0x1ae   :  { %3436 = vpow2.f32 %v2453_v48  ;;  %v1645_v50 = vsub.f32 %v359_v49, %v4013_v20 }
 0x1b0   :  { %v1901_v51 = vmul.f32 %v1645_v50, %v1645_v50 }
 0x1b2   :  { %v2157_v52 = vsub.f32 0.0, %v1901_v51 }
 0x1b3   :  { %443 = vperm.xlu1 %3191, %v4288_v35   ;;  %449 = vperm.xlu2 %3192, %v4288_v35  }
 0x1b4   :  { %v3437_v53 = vpop.eup %3436  ;;  %v2465_v54 = vmul.f32 1.442695, %v2157_v52 }
 0x1b5   :  { %2920 = vst.msk [vmem:[%s5823_s3 + $0x170] sm:$0xff] %vm2873_vm0, %v3437_v53  ;;  %v341_v55 = vpop.permute.xlu1 %340 }
 0x1b6   :  { %v1642_v56 = vsub.f32 %v341_v55, %v4013_v20  ;;  %3438 = vpow2.f32 %v2465_v54 }
 0x1b8   :  { %v1898_v57 = vmul.f32 %v1642_v56, %v1642_v56 }
 0x1ba   :  { %v2154_v58 = vsub.f32 0.0, %v1898_v57 }
 0x1bb   :  { %3193 = vset.pattern.permute.xlu1 %v3957_v9  ;;  %3194 = vset.pattern.permute.xlu2 %v3964_v10 }
 0x1bc   :  { %v3439_v59 = vpop.eup %3438  ;;  %v2459_v60 = vmul.f32 1.442695, %v2154_v58 }
 0x1bd   :  { %2926 = vst.msk [vmem:[%s5823_s3 + $0x1a0] sm:$0xff] %vm2873_vm0, %v3439_v59  ;;  %v377_v61 = vpop.permute.xlu2 %376 }
 0x1be   :  { %3440 = vpow2.f32 %v2459_v60  ;;  %v1648_v62 = vsub.f32 %v377_v61, %v4013_v20 }
 0x1c0   :  { %v1904_v63 = vmul.f32 %v1648_v62, %v1648_v62 }
 0x1c2   :  { %v2160_v0 = vsub.f32 0.0, %v1904_v63 }
 0x1c3   :  { %461 = vperm.xlu1 %3193, %v4288_v35   ;;  %467 = vperm.xlu2 %3194, %v4288_v35  }
 0x1c4   :  { %v3441_v5 = vpop.eup %3440  ;;  %v2471_v21 = vmul.f32 1.442695, %v2160_v0 }
 0x1c5   :  { %2923 = vst.msk [vmem:[%s5823_s3 + $0x188] sm:$0xff] %vm2873_vm0, %v3441_v5  ;;  %v353_v22 = vpop.permute.xlu1 %352 }
 0x1c6   :  { %v1644_v23 = vsub.f32 %v353_v22, %v4013_v20  ;;  %3442 = vpow2.f32 %v2471_v21 }
 0x1c8   :  { %v1900_v24 = vmul.f32 %v1644_v23, %v1644_v23 }
 0x1ca   :  { %v2156_v25 = vsub.f32 0.0, %v1900_v24 }
 0x1cb   :  { %3195 = vset.pattern.permute.xlu1 %v3967_v11  ;;  %3196 = vset.pattern.permute.xlu2 %v4045_v46 }
 0x1cc   :  { %v3443_v27 = vpop.eup %3442  ;;  %v2463_v28 = vmul.f32 1.442695, %v2156_v25 }
 0x1cd   :  { %2929 = vst.msk [vmem:[%s5823_s3 + $0x1b8] sm:$0xff] %vm2873_vm0, %v3443_v27  ;;  %v389_v29 = vpop.permute.xlu2 %388 }
 0x1ce   :  { %3444 = vpow2.f32 %v2463_v28  ;;  %v1650_v30 = vsub.f32 %v389_v29, %v4013_v20  ;;  %v4375_v28 = vperm.slane %v3946_v6, 5 }
 0x1d0   :  { %v1906_v31 = vmul.f32 %v1650_v30, %v1650_v30 }
 0x1d2   :  { %v2162_v32 = vsub.f32 0.0, %v1906_v31 }
 0x1d3   :  { %473 = vperm.xlu1 %3195, %v4288_v35   ;;  %479 = vperm.xlu2 %3196, %v4288_v35  }
 0x1d4   :  { %v3445_v33 = vpop.eup %3444  ;;  %v2475_v34 = vmul.f32 1.442695, %v2162_v32 }
 0x1d5   :  { %2925 = vst.msk [vmem:[%s5823_s3 + $0x198] sm:$0xff] %vm2873_vm0, %v3445_v33  ;;  %v371_v36 = vpop.permute.xlu1 %370 }
 0x1d6   :  { %v1647_v37 = vsub.f32 %v371_v36, %v4013_v20  ;;  %3446 = vpow2.f32 %v2475_v34 }
 0x1d8   :  { %v1903_v38 = vmul.f32 %v1647_v37, %v1647_v37 }
 0x1da   :  { %v2159_v39 = vsub.f32 0.0, %v1903_v38 }
 0x1db   :  { %3197 = vset.pattern.permute.xlu1 %v3977_v13  ;;  %3198 = vset.pattern.permute.xlu2 %v3984_v14 }
 0x1dc   :  { %v3447_v40 = vpop.eup %3446  ;;  %v2469_v41 = vmul.f32 1.442695, %v2159_v39 }
 0x1dd   :  { %2931 = vst.msk [vmem:[%s5823_s3 + $0x1c8] sm:$0xff] %vm2873_vm0, %v3447_v40  ;;  %v407_v42 = vpop.permute.xlu2 %406 }
 0x1de   :  { %3448 = vpow2.f32 %v2469_v41  ;;  %v1653_v43 = vsub.f32 %v407_v42, %v4013_v20 }
 0x1e0   :  { %v1909_v44 = vmul.f32 %v1653_v43, %v1653_v43 }
 0x1e2   :  { %v2165_v48 = vsub.f32 0.0, %v1909_v44 }
 0x1e3   :  { %491 = vperm.xlu1 %3197, %v4288_v35   ;;  %497 = vperm.xlu2 %3198, %v4288_v35  }
 0x1e4   :  { %v3449_v49 = vpop.eup %3448  ;;  %v2481_v50 = vmul.f32 1.442695, %v2165_v48 }
 0x1e5   :  { %2928 = vst.msk [vmem:[%s5823_s3 + $0x1b0] sm:$0xff] %vm2873_vm0, %v3449_v49  ;;  %v383_v51 = vpop.permute.xlu1 %382 }
 0x1e6   :  { %v1649_v52 = vsub.f32 %v383_v51, %v4013_v20  ;;  %3450 = vpow2.f32 %v2481_v50 }
 0x1e8   :  { %v1905_v53 = vmul.f32 %v1649_v52, %v1649_v52 }
 0x1ea   :  { %v2161_v54 = vsub.f32 0.0, %v1905_v53 }
 0x1eb   :  { %3199 = vset.pattern.permute.xlu1 %v3987_v15  ;;  %3200 = vset.pattern.permute.xlu2 %v4076_v26 }
 0x1ec   :  { %v3451_v55 = vpop.eup %3450  ;;  %v2473_v56 = vmul.f32 1.442695, %v2161_v54 }
 0x1ed   :  { %2934 = vst.msk [vmem:[%s5823_s3 + $0x1e0] sm:$0xff] %vm2873_vm0, %v3451_v55  ;;  %v419_v57 = vpop.permute.xlu2 %418 }
 0x1ee   :  { %3452 = vpow2.f32 %v2473_v56  ;;  %v1655_v58 = vsub.f32 %v419_v57, %v4013_v20 }
 0x1f0   :  { %v1911_v59 = vmul.f32 %v1655_v58, %v1655_v58 }
 0x1f2   :  { %v2167_v60 = vsub.f32 0.0, %v1911_v59 }
 0x1f3   :  { %503 = vperm.xlu1 %3199, %v4288_v35   ;;  %509 = vperm.xlu2 %3200, %v4288_v35  }
 0x1f4   :  { %v3453_v61 = vpop.eup %3452  ;;  %v2485_v62 = vmul.f32 1.442695, %v2167_v60 }
 0x1f5   :  { %2930 = vst.msk [vmem:[%s5823_s3 + $0x1c0] sm:$0xff] %vm2873_vm0, %v3453_v61  ;;  %v401_v63 = vpop.permute.xlu1 %400 }
 0x1f6   :  { %v1652_v0 = vsub.f32 %v401_v63, %v4013_v20  ;;  %3454 = vpow2.f32 %v2485_v62 }
 0x1f8   :  { %v1908_v5 = vmul.f32 %v1652_v0, %v1652_v0 }
 0x1fa   :  { %v2164_v21 = vsub.f32 0.0, %v1908_v5 }
 0x1fb   :  { %3201 = vset.pattern.permute.xlu1 %v4001_v18  ;;  %3202 = vset.pattern.permute.xlu2 %v3928_v1 }
 0x1fc   :  { %v3455_v22 = vpop.eup %3454  ;;  %v2479_v23 = vmul.f32 1.442695, %v2164_v21 }
 0x1fd   :  { %2936 = vst.msk [vmem:[%s5823_s3 + $0x1f0] sm:$0xff] %vm2873_vm0, %v3455_v22  ;;  %v438_v24 = vpop.permute.xlu2 %437 }
 0x1fe   :  { %3456 = vpow2.f32 %v2479_v23  ;;  %v1658_v25 = vsub.f32 %v438_v24, %v4013_v20 }
 0x200   :  { %v1914_v27 = vmul.f32 %v1658_v25, %v1658_v25 }
 0x202   :  { %v2170_v29 = vsub.f32 0.0, %v1914_v27 }
 0x203   :  { %521 = vperm.xlu1 %3201, %v4288_v35   ;;  %528 = vperm.xlu2 %3202, %v4375_v28  }
 0x204   :  { %v3457_v30 = vpop.eup %3456  ;;  %v2491_v31 = vmul.f32 1.442695, %v2170_v29 }
 0x205   :  { %2933 = vst.msk [vmem:[%s5823_s3 + $0x1d8] sm:$0xff] %vm2873_vm0, %v3457_v30  ;;  %v413_v32 = vpop.permute.xlu1 %412 }
 0x206   :  { %v1654_v33 = vsub.f32 %v413_v32, %v4013_v20  ;;  %3458 = vpow2.f32 %v2491_v31  ;;  %v4393_v20 = vld [vmem:[%s5822_s2] ss:$0 sm:$0xff] }
 0x208   :  { %v1910_v34 = vmul.f32 %v1654_v33, %v1654_v33 }
 0x20a   :  { %v2166_v36 = vsub.f32 0.0, %v1910_v34 }
 0x20b   :  { %3203 = vset.pattern.permute.xlu1 %v4008_v19  ;;  %3204 = vset.pattern.permute.xlu2 %v3931_v2 }
 0x20c   :  { %v3459_v37 = vpop.eup %3458  ;;  %v2483_v38 = vmul.f32 1.442695, %v2166_v36 }
 0x20d   :  { %2939 = vst.msk [vmem:[%s5823_s3 + $0x208] sm:$0xff] %vm2873_vm0, %v3459_v37  ;;  %v450_v39 = vpop.permute.xlu2 %449 }
 0x20e   :  { %3460 = vpow2.f32 %v2483_v38  ;;  %v1660_v40 = vsub.f32 %v450_v39, %v4393_v20 }
 0x210   :  { %v1916_v41 = vmul.f32 %v1660_v40, %v1660_v40 }
 0x212   :  { %v2172_v42 = vsub.f32 0.0, %v1916_v41 }
 0x213   :  { %534 = vperm.xlu1 %3203, %v4375_v28   ;;  %540 = vperm.xlu2 %3204, %v4375_v28  }
 0x214   :  { %v3461_v43 = vpop.eup %3460  ;;  %v2495_v44 = vmul.f32 1.442695, %v2172_v42 }
 0x215   :  { %2935 = vst.msk [vmem:[%s5823_s3 + $0x1e8] sm:$0xff] %vm2873_vm0, %v3461_v43  ;;  %v432_v48 = vpop.permute.xlu1 %431 }
 0x216   :  { %v1657_v49 = vsub.f32 %v432_v48, %v4393_v20  ;;  %3462 = vpow2.f32 %v2495_v44 }
 0x218   :  { %v1913_v50 = vmul.f32 %v1657_v49, %v1657_v49 }
 0x21a   :  { %v2169_v51 = vsub.f32 0.0, %v1913_v50 }
 0x21b   :  { %3205 = vset.pattern.permute.xlu1 %v3934_v3  ;;  %3206 = vset.pattern.permute.xlu2 %v3957_v9 }
 0x21c   :  { %v3463_v52 = vpop.eup %3462  ;;  %v2489_v53 = vmul.f32 1.442695, %v2169_v51 }
 0x21d   :  { %2941 = vst.msk [vmem:[%s5823_s3 + $0x218] sm:$0xff] %vm2873_vm0, %v3463_v52  ;;  %v468_v54 = vpop.permute.xlu2 %467 }
 0x21e   :  { %3464 = vpow2.f32 %v2489_v53  ;;  %v1663_v55 = vsub.f32 %v468_v54, %v4393_v20 }
 0x220   :  { %v1919_v56 = vmul.f32 %v1663_v55, %v1663_v55  ;;  %v4453_v55 = vperm.slane %v3946_v6, 6 }
 0x222   :  { %v2175_v57 = vsub.f32 0.0, %v1919_v56  ;;  %637 = vperm.xlu0 %3152, %v4453_v55  }
 0x223   :  { %552 = vperm.xlu1 %3205, %v4375_v28   ;;  %558 = vperm.xlu2 %3206, %v4375_v28  }
 0x224   :  { %v3465_v58 = vpop.eup %3464  ;;  %v2501_v59 = vmul.f32 1.442695, %v2175_v57 }
 0x225   :  { %2938 = vst.msk [vmem:[%s5823_s3 + $0x200] sm:$0xff] %vm2873_vm0, %v3465_v58  ;;  %v444_v60 = vpop.permute.xlu1 %443 }
 0x226   :  { %v1659_v61 = vsub.f32 %v444_v60, %v4393_v20  ;;  %3466 = vpow2.f32 %v2501_v59 }
 0x228   :  { %v1915_v62 = vmul.f32 %v1659_v61, %v1659_v61 }
 0x22a   :  { %v2171_v63 = vsub.f32 0.0, %v1915_v62 }
 0x22b   :  { %3207 = vset.pattern.permute.xlu1 %v3964_v10  ;;  %3208 = vset.pattern.permute.xlu2 %v3967_v11 }
 0x22c   :  { %v3467_v0 = vpop.eup %3466  ;;  %v2493_v5 = vmul.f32 1.442695, %v2171_v63 }
 0x22d   :  { %2944 = vst.msk [vmem:[%s5823_s3 + $0x230] sm:$0xff] %vm2873_vm0, %v3467_v0  ;;  %v480_v21 = vpop.permute.xlu2 %479 }
 0x22e   :  { %3468 = vpow2.f32 %v2493_v5  ;;  %v1665_v22 = vsub.f32 %v480_v21, %v4393_v20 }
 0x230   :  { %v1921_v23 = vmul.f32 %v1665_v22, %v1665_v22 }
 0x232   :  { %v2177_v24 = vsub.f32 0.0, %v1921_v23 }
 0x233   :  { %564 = vperm.xlu1 %3207, %v4375_v28   ;;  %570 = vperm.xlu2 %3208, %v4375_v28  }
 0x234   :  { %v3469_v25 = vpop.eup %3468  ;;  %v2505_v27 = vmul.f32 1.442695, %v2177_v24 }
 0x235   :  { %2940 = vst.msk [vmem:[%s5823_s3 + $0x210] sm:$0xff] %vm2873_vm0, %v3469_v25  ;;  %v462_v29 = vpop.permute.xlu1 %461 }
 0x236   :  { %v1662_v30 = vsub.f32 %v462_v29, %v4393_v20  ;;  %3470 = vpow2.f32 %v2505_v27 }
 0x238   :  { %v1918_v31 = vmul.f32 %v1662_v30, %v1662_v30 }
 0x23a   :  { %v2174_v32 = vsub.f32 0.0, %v1918_v31 }
 0x23b   :  { %3209 = vset.pattern.permute.xlu1 %v3974_v12  ;;  %3210 = vset.pattern.permute.xlu2 %v3977_v13 }
 0x23c   :  { %v3471_v33 = vpop.eup %3470  ;;  %v2499_v34 = vmul.f32 1.442695, %v2174_v32 }
 0x23d   :  { %2946 = vst.msk [vmem:[%s5823_s3 + $0x240] sm:$0xff] %vm2873_vm0, %v3471_v33  ;;  %v498_v36 = vpop.permute.xlu2 %497 }
 0x23e   :  { %3472 = vpow2.f32 %v2499_v34  ;;  %v1668_v37 = vsub.f32 %v498_v36, %v4393_v20 }
 0x240   :  { %v1924_v38 = vmul.f32 %v1668_v37, %v1668_v37 }
 0x242   :  { %v2180_v39 = vsub.f32 0.0, %v1924_v38 }
 0x243   :  { %582 = vperm.xlu1 %3209, %v4375_v28   ;;  %588 = vperm.xlu2 %3210, %v4375_v28  }
 0x244   :  { %v3473_v40 = vpop.eup %3472  ;;  %v2511_v41 = vmul.f32 1.442695, %v2180_v39 }
 0x245   :  { %2943 = vst.msk [vmem:[%s5823_s3 + $0x228] sm:$0xff] %vm2873_vm0, %v3473_v40  ;;  %v474_v42 = vpop.permute.xlu1 %473 }
 0x246   :  { %v1664_v43 = vsub.f32 %v474_v42, %v4393_v20  ;;  %3474 = vpow2.f32 %v2511_v41 }
 0x248   :  { %v1920_v44 = vmul.f32 %v1664_v43, %v1664_v43 }
 0x24a   :  { %v2176_v48 = vsub.f32 0.0, %v1920_v44 }
 0x24b   :  { %3211 = vset.pattern.permute.xlu1 %v3984_v14  ;;  %3212 = vset.pattern.permute.xlu2 %v3987_v15 }
 0x24c   :  { %v3475_v49 = vpop.eup %3474  ;;  %v2503_v50 = vmul.f32 1.442695, %v2176_v48 }
 0x24d   :  { %2949 = vst.msk [vmem:[%s5823_s3 + $0x258] sm:$0xff] %vm2873_vm0, %v3475_v49  ;;  %v510_v51 = vpop.permute.xlu2 %509 }
 0x24e   :  { %3476 = vpow2.f32 %v2503_v50  ;;  %v1670_v52 = vsub.f32 %v510_v51, %v4393_v20 }
 0x250   :  { %v1926_v53 = vmul.f32 %v1670_v52, %v1670_v52 }
 0x252   :  { %v2182_v54 = vsub.f32 0.0, %v1926_v53 }
 0x253   :  { %594 = vperm.xlu1 %3211, %v4375_v28   ;;  %600 = vperm.xlu2 %3212, %v4375_v28  }
 0x254   :  { %v3477_v56 = vpop.eup %3476  ;;  %v2515_v57 = vmul.f32 1.442695, %v2182_v54 }
 0x255   :  { %2945 = vst.msk [vmem:[%s5823_s3 + $0x238] sm:$0xff] %vm2873_vm0, %v3477_v56  ;;  %v492_v58 = vpop.permute.xlu1 %491 }
 0x256   :  { %v1667_v59 = vsub.f32 %v492_v58, %v4393_v20  ;;  %3478 = vpow2.f32 %v2515_v57 }
 0x258   :  { %v1923_v60 = vmul.f32 %v1667_v59, %v1667_v59 }
 0x25a   :  { %v2179_v61 = vsub.f32 0.0, %v1923_v60 }
 0x25b   :  { %3213 = vset.pattern.permute.xlu1 %v3998_v17  ;;  %3214 = vset.pattern.permute.xlu2 %v4001_v18 }
 0x25c   :  { %v3479_v62 = vpop.eup %3478  ;;  %v2509_v63 = vmul.f32 1.442695, %v2179_v61 }
 0x25d   :  { %2951 = vst.msk [vmem:[%s5823_s3 + $0x268] sm:$0xff] %vm2873_vm0, %v3479_v62  ;;  %v529_v0 = vpop.permute.xlu2 %528 }
 0x25e   :  { %3480 = vpow2.f32 %v2509_v63  ;;  %v1673_v5 = vsub.f32 %v529_v0, %v4393_v20 }
 0x260   :  { %v1929_v21 = vmul.f32 %v1673_v5, %v1673_v5 }
 0x262   :  { %v2185_v22 = vsub.f32 0.0, %v1929_v21 }
 0x263   :  { %612 = vperm.xlu1 %3213, %v4375_v28   ;;  %618 = vperm.xlu2 %3214, %v4375_v28  }
 0x264   :  { %v3481_v23 = vpop.eup %3480  ;;  %v2521_v24 = vmul.f32 1.442695, %v2185_v22 }
 0x265   :  { %2948 = vst.msk [vmem:[%s5823_s3 + $0x250] sm:$0xff] %vm2873_vm0, %v3481_v23  ;;  %v504_v25 = vpop.permute.xlu1 %503 }
 0x266   :  { %v1669_v27 = vsub.f32 %v504_v25, %v4393_v20  ;;  %3482 = vpow2.f32 %v2521_v24 }
 0x268   :  { %v1925_v29 = vmul.f32 %v1669_v27, %v1669_v27 }
 0x26a   :  { %v2181_v30 = vsub.f32 0.0, %v1925_v29 }
 0x26b   :  { %3215 = vset.pattern.permute.xlu1 %v3928_v1  ;;  %3216 = vset.pattern.permute.xlu2 %v4008_v19 }
 0x26c   :  { %v3483_v31 = vpop.eup %3482  ;;  %v2513_v32 = vmul.f32 1.442695, %v2181_v30 }
 0x26d   :  { %2954 = vst.msk [vmem:[%s5823_s3 + $0x280] sm:$0xff] %vm2873_vm0, %v3483_v31  ;;  %v541_v33 = vpop.permute.xlu2 %540 }
 0x26e   :  { %3484 = vpow2.f32 %v2513_v32  ;;  %v1675_v34 = vsub.f32 %v541_v33, %v4393_v20 }
 0x270   :  { %v1931_v36 = vmul.f32 %v1675_v34, %v1675_v34 }
 0x272   :  { %v2187_v37 = vsub.f32 0.0, %v1931_v36 }
 0x273   :  { %625 = vperm.xlu1 %3215, %v4453_v55   ;;  %631 = vperm.xlu2 %3216, %v4453_v55  }
 0x274   :  { %v3485_v38 = vpop.eup %3484  ;;  %v2525_v39 = vmul.f32 1.442695, %v2187_v37 }
 0x275   :  { %2950 = vst.msk [vmem:[%s5823_s3 + $0x260] sm:$0xff] %vm2873_vm0, %v3485_v38  ;;  %v522_v40 = vpop.permute.xlu1 %521 }
 0x276   :  { %v1672_v41 = vsub.f32 %v522_v40, %v4393_v20  ;;  %3486 = vpow2.f32 %v2525_v39 }
 0x278   :  { %v1928_v42 = vmul.f32 %v1672_v41, %v1672_v41 }
 0x27a   :  { %v2184_v43 = vsub.f32 0.0, %v1928_v42 }
 0x27b   :  { %3217 = vset.pattern.permute.xlu1 %v3954_v8  ;;  %3218 = vset.pattern.permute.xlu2 %v3934_v3 }
 0x27c   :  { %v3487_v44 = vpop.eup %3486  ;;  %v2519_v48 = vmul.f32 1.442695, %v2184_v43 }
 0x27d   :  { %2956 = vst.msk [vmem:[%s5823_s3 + $0x290] sm:$0xff] %vm2873_vm0, %v3487_v44  ;;  %v559_v49 = vpop.permute.xlu2 %558 }
 0x27e   :  { %3488 = vpow2.f32 %v2519_v48  ;;  %v1678_v50 = vsub.f32 %v559_v49, %v4393_v20 }
 0x280   :  { %v1934_v51 = vmul.f32 %v1678_v50, %v1678_v50 }
 0x282   :  { %v2190_v52 = vsub.f32 0.0, %v1934_v51 }
 0x283   :  { %643 = vperm.xlu1 %3217, %v4453_v55   ;;  %649 = vperm.xlu2 %3218, %v4453_v55  }
 0x284   :  { %v3489_v53 = vpop.eup %3488  ;;  %v2531_v54 = vmul.f32 1.442695, %v2190_v52 }
 0x285   :  { %2953 = vst.msk [vmem:[%s5823_s3 + $0x278] sm:$0xff] %vm2873_vm0, %v3489_v53  ;;  %v535_v56 = vpop.permute.xlu1 %534 }
 0x286   :  { %v1674_v57 = vsub.f32 %v535_v56, %v4393_v20  ;;  %3490 = vpow2.f32 %v2531_v54 }
 0x288   :  { %v1930_v58 = vmul.f32 %v1674_v57, %v1674_v57 }
 0x28a   :  { %v2186_v59 = vsub.f32 0.0, %v1930_v58 }
 0x28b   :  { %3219 = vset.pattern.permute.xlu1 %v3957_v9  ;;  %3220 = vset.pattern.permute.xlu2 %v3964_v10 }
 0x28c   :  { %v3491_v60 = vpop.eup %3490  ;;  %v2523_v61 = vmul.f32 1.442695, %v2186_v59 }
 0x28d   :  { %2959 = vst.msk [vmem:[%s5823_s3 + $0x2a8] sm:$0xff] %vm2873_vm0, %v3491_v60  ;;  %v571_v62 = vpop.permute.xlu2 %570 }
 0x28e   :  { %3492 = vpow2.f32 %v2523_v61  ;;  %v1680_v63 = vsub.f32 %v571_v62, %v4393_v20 }
 0x290   :  { %v1936_v0 = vmul.f32 %v1680_v63, %v1680_v63 }
 0x292   :  { %v2192_v5 = vsub.f32 0.0, %v1936_v0 }
 0x293   :  { %655 = vperm.xlu1 %3219, %v4453_v55   ;;  %661 = vperm.xlu2 %3220, %v4453_v55  }
 0x294   :  { %v3493_v21 = vpop.eup %3492  ;;  %v2535_v22 = vmul.f32 1.442695, %v2192_v5 }
 0x295   :  { %2955 = vst.msk [vmem:[%s5823_s3 + $0x288] sm:$0xff] %vm2873_vm0, %v3493_v21  ;;  %v553_v23 = vpop.permute.xlu1 %552 }
 0x296   :  { %v1677_v24 = vsub.f32 %v553_v23, %v4393_v20  ;;  %3494 = vpow2.f32 %v2535_v22 }
 0x298   :  { %v1933_v25 = vmul.f32 %v1677_v24, %v1677_v24 }
 0x29a   :  { %v2189_v27 = vsub.f32 0.0, %v1933_v25 }
 0x29b   :  { %3221 = vset.pattern.permute.xlu1 %v4045_v46  ;;  %3222 = vset.pattern.permute.xlu2 %v3974_v12 }
 0x29c   :  { %v3495_v29 = vpop.eup %3494  ;;  %v2529_v30 = vmul.f32 1.442695, %v2189_v27 }
 0x29d   :  { %2961 = vst.msk [vmem:[%s5823_s3 + $0x2b8] sm:$0xff] %vm2873_vm0, %v3495_v29  ;;  %v589_v31 = vpop.permute.xlu2 %588 }
 0x29e   :  { %3496 = vpow2.f32 %v2529_v30  ;;  %v1683_v32 = vsub.f32 %v589_v31, %v4393_v20 }
 0x2a0   :  { %v1939_v33 = vmul.f32 %v1683_v32, %v1683_v32  ;;  %v4569_v32 = vperm.slane %v3946_v6, 7 }
 0x2a2   :  { %v2195_v34 = vsub.f32 0.0, %v1939_v33 }
 0x2a3   :  { %673 = vperm.xlu1 %3221, %v4453_v55   ;;  %679 = vperm.xlu2 %3222, %v4453_v55  }
 0x2a4   :  { %v3497_v36 = vpop.eup %3496  ;;  %v2541_v37 = vmul.f32 1.442695, %v2195_v34 }
 0x2a5   :  { %2958 = vst.msk [vmem:[%s5823_s3 + $0x2a0] sm:$0xff] %vm2873_vm0, %v3497_v36  ;;  %v565_v38 = vpop.permute.xlu1 %564 }
 0x2a6   :  { %v1679_v39 = vsub.f32 %v565_v38, %v4393_v20  ;;  %3498 = vpow2.f32 %v2541_v37 }
 0x2a8   :  { %v1935_v40 = vmul.f32 %v1679_v39, %v1679_v39 }
 0x2aa   :  { %v2191_v41 = vsub.f32 0.0, %v1935_v40 }
 0x2ab   :  { %3223 = vset.pattern.permute.xlu1 %v3977_v13  ;;  %3224 = vset.pattern.permute.xlu2 %v3984_v14 }
 0x2ac   :  { %v3499_v42 = vpop.eup %3498  ;;  %v2533_v43 = vmul.f32 1.442695, %v2191_v41 }
 0x2ad   :  { %2964 = vst.msk [vmem:[%s5823_s3 + $0x2d0] sm:$0xff] %vm2873_vm0, %v3499_v42  ;;  %v601_v44 = vpop.permute.xlu2 %600 }
 0x2ae   :  { %3500 = vpow2.f32 %v2533_v43  ;;  %v1685_v48 = vsub.f32 %v601_v44, %v4393_v20 }
 0x2b0   :  { %v1941_v49 = vmul.f32 %v1685_v48, %v1685_v48 }
 0x2b2   :  { %v2197_v50 = vsub.f32 0.0, %v1941_v49 }
 0x2b3   :  { %685 = vperm.xlu1 %3223, %v4453_v55   ;;  %691 = vperm.xlu2 %3224, %v4453_v55  }
 0x2b4   :  { %v3501_v51 = vpop.eup %3500  ;;  %v2545_v52 = vmul.f32 1.442695, %v2197_v50 }
 0x2b5   :  { %2960 = vst.msk [vmem:[%s5823_s3 + $0x2b0] sm:$0xff] %vm2873_vm0, %v3501_v51  ;;  %v583_v53 = vpop.permute.xlu1 %582 }
 0x2b6   :  { %v1682_v54 = vsub.f32 %v583_v53, %v4393_v20  ;;  %3502 = vpow2.f32 %v2545_v52 }
 0x2b8   :  { %v1938_v56 = vmul.f32 %v1682_v54, %v1682_v54 }
 0x2ba   :  { %v2194_v57 = vsub.f32 0.0, %v1938_v56 }
 0x2bb   :  { %3225 = vset.pattern.permute.xlu1 %v4076_v26  ;;  %3226 = vset.pattern.permute.xlu2 %v3998_v17 }
 0x2bc   :  { %v3503_v58 = vpop.eup %3502  ;;  %v2539_v59 = vmul.f32 1.442695, %v2194_v57 }
 0x2bd   :  { %2966 = vst.msk [vmem:[%s5823_s3 + $0x2e0] sm:$0xff] %vm2873_vm0, %v3503_v58  ;;  %v619_v60 = vpop.permute.xlu2 %618 }
 0x2be   :  { %3504 = vpow2.f32 %v2539_v59  ;;  %v1688_v61 = vsub.f32 %v619_v60, %v4393_v20 }
 0x2c0   :  { %v1944_v62 = vmul.f32 %v1688_v61, %v1688_v61 }
 0x2c2   :  { %v2200_v63 = vsub.f32 0.0, %v1944_v62 }
 0x2c3   :  { %703 = vperm.xlu1 %3225, %v4453_v55   ;;  %709 = vperm.xlu2 %3226, %v4453_v55  }
 0x2c4   :  { %v3505_v0 = vpop.eup %3504  ;;  %v2551_v5 = vmul.f32 1.442695, %v2200_v63 }
 0x2c5   :  { %2963 = vst.msk [vmem:[%s5823_s3 + $0x2c8] sm:$0xff] %vm2873_vm0, %v3505_v0  ;;  %v595_v21 = vpop.permute.xlu1 %594 }
 0x2c6   :  { %v1684_v22 = vsub.f32 %v595_v21, %v4393_v20  ;;  %3506 = vpow2.f32 %v2551_v5 }
 0x2c8   :  { %v1940_v23 = vmul.f32 %v1684_v22, %v1684_v22 }
 0x2ca   :  { %v2196_v24 = vsub.f32 0.0, %v1940_v23 }
 0x2cb   :  { %3227 = vset.pattern.permute.xlu1 %v4001_v18  ;;  %3228 = vset.pattern.permute.xlu2 %v3928_v1 }
 0x2cc   :  { %v3507_v25 = vpop.eup %3506  ;;  %v2543_v27 = vmul.f32 1.442695, %v2196_v24 }
 0x2cd   :  { %2969 = vst.msk [vmem:[%s5823_s3 + $0x2f8] sm:$0xff] %vm2873_vm0, %v3507_v25  ;;  %v632_v29 = vpop.permute.xlu2 %631 }
 0x2ce   :  { %3508 = vpow2.f32 %v2543_v27  ;;  %v1690_v30 = vsub.f32 %v632_v29, %v4393_v20 }
 0x2d0   :  { %v1946_v31 = vmul.f32 %v1690_v30, %v1690_v30 }
 0x2d2   :  { %v2202_v33 = vsub.f32 0.0, %v1946_v31 }
 0x2d3   :  { %715 = vperm.xlu1 %3227, %v4453_v55   ;;  %722 = vperm.xlu2 %3228, %v4569_v32  }
 0x2d4   :  { %v3509_v34 = vpop.eup %3508  ;;  %v2555_v36 = vmul.f32 1.442695, %v2202_v33 }
 0x2d5   :  { %2965 = vst.msk [vmem:[%s5823_s3 + $0x2d8] sm:$0xff] %vm2873_vm0, %v3509_v34  ;;  %v613_v37 = vpop.permute.xlu1 %612 }
 0x2d6   :  { %v1687_v38 = vsub.f32 %v613_v37, %v4393_v20  ;;  %3510 = vpow2.f32 %v2555_v36 }
 0x2d8   :  { %v1943_v39 = vmul.f32 %v1687_v38, %v1687_v38 }
 0x2da   :  { %v2199_v40 = vsub.f32 0.0, %v1943_v39 }
 0x2db   :  { %3229 = vset.pattern.permute.xlu1 %v3931_v2  ;;  %3230 = vset.pattern.permute.xlu2 %v3954_v8 }
 0x2dc   :  { %v3511_v6 = vpop.eup %3510  ;;  %v2549_v41 = vmul.f32 1.442695, %v2199_v40 }
 0x2dd   :  { %2971 = vst.msk [vmem:[%s5823_s3 + $0x308] sm:$0xff] %vm2873_vm0, %v3511_v6  ;;  %v650_v42 = vpop.permute.xlu2 %649 }
 0x2de   :  { %3512 = vpow2.f32 %v2549_v41  ;;  %v1693_v43 = vsub.f32 %v650_v42, %v4393_v20 }
 0x2e0   :  { %v1949_v44 = vmul.f32 %v1693_v43, %v1693_v43 }
 0x2e2   :  { %v2205_v48 = vsub.f32 0.0, %v1949_v44 }
 0x2e3   :  { %734 = vperm.xlu1 %3229, %v4569_v32   ;;  %740 = vperm.xlu2 %3230, %v4569_v32  }
 0x2e4   :  { %v3513_v49 = vpop.eup %3512  ;;  %v2561_v50 = vmul.f32 1.442695, %v2205_v48 }
 0x2e5   :  { %2968 = vst.msk [vmem:[%s5823_s3 + $0x2f0] sm:$0xff] %vm2873_vm0, %v3513_v49  ;;  %v626_v51 = vpop.permute.xlu1 %625 }
 0x2e6   :  { %v1689_v52 = vsub.f32 %v626_v51, %v4393_v20  ;;  %3514 = vpow2.f32 %v2561_v50 }
 0x2e8   :  { %v1945_v53 = vmul.f32 %v1689_v52, %v1689_v52 }
 0x2ea   :  { %v2201_v54 = vsub.f32 0.0, %v1945_v53 }
 0x2eb   :  { %3231 = vset.pattern.permute.xlu1 %v3934_v3  ;;  %3232 = vset.pattern.permute.xlu2 %v3957_v9 }
 0x2ec   :  { %v3515_v56 = vpop.eup %3514  ;;  %v2553_v57 = vmul.f32 1.442695, %v2201_v54 }
 0x2ed   :  { %2974 = vst.msk [vmem:[%s5823_s3 + $0x320] sm:$0xff] %vm2873_vm0, %v3515_v56  ;;  %v662_v58 = vpop.permute.xlu2 %661 }
 0x2ee   :  { %3516 = vpow2.f32 %v2553_v57  ;;  %v1695_v59 = vsub.f32 %v662_v58, %v4393_v20 }
 0x2f0   :  { %v1951_v60 = vmul.f32 %v1695_v59, %v1695_v59 }
 0x2f2   :  { %v2207_v61 = vsub.f32 0.0, %v1951_v60 }
 0x2f3   :  { %746 = vperm.xlu1 %3231, %v4569_v32   ;;  %752 = vperm.xlu2 %3232, %v4569_v32  }
 0x2f4   :  { %v3517_v62 = vpop.eup %3516  ;;  %v2565_v63 = vmul.f32 1.442695, %v2207_v61 }
 0x2f5   :  { %2970 = vst.msk [vmem:[%s5823_s3 + $0x300] sm:$0xff] %vm2873_vm0, %v3517_v62  ;;  %v644_v0 = vpop.permute.xlu1 %643 }
 0x2f6   :  { %v1692_v5 = vsub.f32 %v644_v0, %v4393_v20  ;;  %3518 = vpow2.f32 %v2565_v63 }
 0x2f8   :  { %v1948_v21 = vmul.f32 %v1692_v5, %v1692_v5 }
 0x2fa   :  { %v2204_v22 = vsub.f32 0.0, %v1948_v21 }
 0x2fb   :  { %3233 = vset.pattern.permute.xlu1 %v3967_v11  ;;  %3234 = vset.pattern.permute.xlu2 %v4045_v46 }
 0x2fc   :  { %v3519_v23 = vpop.eup %3518  ;;  %v2559_v24 = vmul.f32 1.442695, %v2204_v22 }
 0x2fd   :  { %2976 = vst.msk [vmem:[%s5823_s3 + $0x330] sm:$0xff] %vm2873_vm0, %v3519_v23  ;;  %v680_v25 = vpop.permute.xlu2 %679 }
 0x2fe   :  { %3520 = vpow2.f32 %v2559_v24  ;;  %v1698_v27 = vsub.f32 %v680_v25, %v4393_v20 }
 0x300   :  { %v1954_v29 = vmul.f32 %v1698_v27, %v1698_v27 }
 0x302   :  { %v2210_v30 = vsub.f32 0.0, %v1954_v29 }
 0x303   :  { %764 = vperm.xlu1 %3233, %v4569_v32   ;;  %770 = vperm.xlu2 %3234, %v4569_v32  }
 0x304   :  { %v3521_v31 = vpop.eup %3520  ;;  %v2571_v33 = vmul.f32 1.442695, %v2210_v30 }
 0x305   :  { %2973 = vst.msk [vmem:[%s5823_s3 + $0x318] sm:$0xff] %vm2873_vm0, %v3521_v31  ;;  %v656_v34 = vpop.permute.xlu1 %655 }
 0x306   :  { %v1694_v36 = vsub.f32 %v656_v34, %v4393_v20  ;;  %3522 = vpow2.f32 %v2571_v33 }
 0x308   :  { %v1950_v37 = vmul.f32 %v1694_v36, %v1694_v36  ;;  %v33_v36 = vld [vmem:[#allocation3 + $0x8] sm:$0xff] }
 0x30a   :  { %v2206_v38 = vsub.f32 0.0, %v1950_v37 }
 0x30b   :  { %3235 = vset.pattern.permute.xlu1 %v3974_v12  ;;  %3236 = vset.pattern.permute.xlu2 %v3977_v13 }
 0x30c   :  { %v3523_v39 = vpop.eup %3522  ;;  %v2563_v40 = vmul.f32 1.442695, %v2206_v38  ;;  %v4667_v38 = vmul.f32 %v34_v4, %v33_v36 }
 0x30d   :  { %2979 = vst.msk [vmem:[%s5823_s3 + $0x348] sm:$0xff] %vm2873_vm0, %v3523_v39  ;;  %v692_v6 = vpop.permute.xlu2 %691 }
 0x30e   :  { %3524 = vpow2.f32 %v2563_v40  ;;  %v1700_v41 = vsub.f32 %v692_v6, %v4393_v20 }
 0x310   :  { %v1956_v42 = vmul.f32 %v1700_v41, %v1700_v41 }
 0x312   :  { %v2212_v43 = vsub.f32 0.0, %v1956_v42  ;;  %v4676_v42 = vperm.slane %v4667_v38, 0 }
 0x313   :  { %776 = vperm.xlu1 %3235, %v4569_v32   ;;  %782 = vperm.xlu2 %3236, %v4569_v32  }
 0x314   :  { %v3525_v44 = vpop.eup %3524  ;;  %v2575_v48 = vmul.f32 1.442695, %v2212_v43 }
 0x315   :  { %2975 = vst.msk [vmem:[%s5823_s3 + $0x328] sm:$0xff] %vm2873_vm0, %v3525_v44  ;;  %v674_v49 = vpop.permute.xlu1 %673 }
 0x316   :  { %v1697_v50 = vsub.f32 %v674_v49, %v4393_v20  ;;  %3526 = vpow2.f32 %v2575_v48 }
 0x318   :  { %v1953_v51 = vmul.f32 %v1697_v50, %v1697_v50 }
 0x31a   :  { %v2209_v52 = vsub.f32 0.0, %v1953_v51 }
 0x31b   :  { %3237 = vset.pattern.permute.xlu1 %v3987_v15  ;;  %3238 = vset.pattern.permute.xlu2 %v4076_v26 }
 0x31c   :  { %v3527_v53 = vpop.eup %3526  ;;  %v2569_v54 = vmul.f32 1.442695, %v2209_v52 }
 0x31d   :  { %2981 = vst.msk [vmem:[%s5823_s3 + $0x358] sm:$0xff] %vm2873_vm0, %v3527_v53  ;;  %v710_v56 = vpop.permute.xlu2 %709 }
 0x31e   :  { %3528 = vpow2.f32 %v2569_v54  ;;  %v1703_v57 = vsub.f32 %v710_v56, %v4393_v20 }
 0x320   :  { %v1959_v58 = vmul.f32 %v1703_v57, %v1703_v57 }
 0x322   :  { %v2215_v59 = vsub.f32 0.0, %v1959_v58 }
 0x323   :  { %794 = vperm.xlu1 %3237, %v4569_v32   ;;  %800 = vperm.xlu2 %3238, %v4569_v32  }
 0x324   :  { %v3529_v60 = vpop.eup %3528  ;;  %v2581_v61 = vmul.f32 1.442695, %v2215_v59 }
 0x325   :  { %2978 = vst.msk [vmem:[%s5823_s3 + $0x340] sm:$0xff] %vm2873_vm0, %v3529_v60  ;;  %v686_v62 = vpop.permute.xlu1 %685 }
 0x326   :  { %v1699_v63 = vsub.f32 %v686_v62, %v4393_v20  ;;  %3530 = vpow2.f32 %v2581_v61 }
 0x328   :  { %v1955_v0 = vmul.f32 %v1699_v63, %v1699_v63 }
 0x32a   :  { %v2211_v5 = vsub.f32 0.0, %v1955_v0 }
 0x32b   :  { %3239 = vset.pattern.permute.xlu1 %v3998_v17  ;;  %3240 = vset.pattern.permute.xlu2 %v4001_v18 }
 0x32c   :  { %v3531_v21 = vpop.eup %3530  ;;  %v2573_v22 = vmul.f32 1.442695, %v2211_v5 }
 0x32d   :  { %2984 = vst.msk [vmem:[%s5823_s3 + $0x370] sm:$0xff] %vm2873_vm0, %v3531_v21  ;;  %v723_v23 = vpop.permute.xlu2 %722 }
 0x32e   :  { %3532 = vpow2.f32 %v2573_v22  ;;  %v1705_v24 = vsub.f32 %v723_v23, %v4393_v20 }
 0x330   :  { %v1961_v25 = vmul.f32 %v1705_v24, %v1705_v24 }
 0x332   :  { %v2217_v27 = vsub.f32 0.0, %v1961_v25 }
 0x333   :  { %806 = vperm.xlu1 %3239, %v4569_v32   ;;  %812 = vperm.xlu2 %3240, %v4569_v32  }
 0x334   :  { %v3533_v29 = vpop.eup %3532  ;;  %v2585_v30 = vmul.f32 1.442695, %v2217_v27 }
 0x335   :  { %2980 = vst.msk [vmem:[%s5823_s3 + $0x350] sm:$0xff] %vm2873_vm0, %v3533_v29  ;;  %v704_v31 = vpop.permute.xlu1 %703 }
 0x336   :  { %v1702_v33 = vsub.f32 %v704_v31, %v4393_v20  ;;  %3534 = vpow2.f32 %v2585_v30 }
 0x338   :  { %v1958_v34 = vmul.f32 %v1702_v33, %v1702_v33 }
 0x33a   :  { %v2214_v37 = vsub.f32 0.0, %v1958_v34 }
 0x33b   :  { %3241 = vset.pattern.permute.xlu1 %v4008_v19  ;;  %3242 = vset.pattern.permute.xlu2 %v3931_v2 }
 0x33c   :  { %v3535_v39 = vpop.eup %3534  ;;  %v2579_v40 = vmul.f32 1.442695, %v2214_v37 }
 0x33d   :  { %2986 = vst.msk [vmem:[%s5823_s3 + $0x380] sm:$0xff] %vm2873_vm0, %v3535_v39  ;;  %v741_v6 = vpop.permute.xlu2 %740 }
 0x33e   :  { %3536 = vpow2.f32 %v2579_v40  ;;  %v1708_v41 = vsub.f32 %v741_v6, %v4393_v20 }
 0x340   :  { %v1964_v43 = vmul.f32 %v1708_v41, %v1708_v41 }
 0x342   :  { %v2220_v44 = vsub.f32 0.0, %v1964_v43 }
 0x343   :  { %825 = vperm.xlu1 %3241, %v4676_v42   ;;  %831 = vperm.xlu2 %3242, %v4676_v42  }
 0x344   :  { %v3537_v4 = vpop.eup %3536  ;;  %v2591_v48 = vmul.f32 1.442695, %v2220_v44 }
 0x345   :  { %2983 = vst.msk [vmem:[%s5823_s3 + $0x368] sm:$0xff] %vm2873_vm0, %v3537_v4  ;;  %v716_v49 = vpop.permute.xlu1 %715 }
 0x346   :  { %v1704_v50 = vsub.f32 %v716_v49, %v4393_v20  ;;  %3538 = vpow2.f32 %v2591_v48 }
 0x348   :  { %v1960_v51 = vmul.f32 %v1704_v50, %v1704_v50 }
 0x34a   :  { %v2216_v52 = vsub.f32 0.0, %v1960_v51 }
 0x34b   :  { %3243 = vset.pattern.permute.xlu1 %v3954_v8  ;;  %3244 = vset.pattern.permute.xlu2 %v3934_v3 }
 0x34c   :  { %v3539_v53 = vpop.eup %3538  ;;  %v2583_v54 = vmul.f32 1.442695, %v2216_v52 }
 0x34d   :  { %2989 = vst.msk [vmem:[%s5823_s3 + $0x398] sm:$0xff] %vm2873_vm0, %v3539_v53  ;;  %v753_v56 = vpop.permute.xlu2 %752 }
 0x34e   :  { %3540 = vpow2.f32 %v2583_v54  ;;  %v1710_v57 = vsub.f32 %v753_v56, %v4393_v20 }
 0x350   :  { %v1966_v58 = vmul.f32 %v1710_v57, %v1710_v57 }
 0x352   :  { %v2222_v59 = vsub.f32 0.0, %v1966_v58 }
 0x353   :  { %837 = vperm.xlu1 %3243, %v4676_v42   ;;  %843 = vperm.xlu2 %3244, %v4676_v42  }
 0x354   :  { %v3541_v60 = vpop.eup %3540  ;;  %v2595_v61 = vmul.f32 1.442695, %v2222_v59 }
 0x355   :  { %2985 = vst.msk [vmem:[%s5823_s3 + $0x378] sm:$0xff] %vm2873_vm0, %v3541_v60  ;;  %v735_v62 = vpop.permute.xlu1 %734 }
 0x356   :  { %v1707_v63 = vsub.f32 %v735_v62, %v4393_v20  ;;  %3542 = vpow2.f32 %v2595_v61 }
 0x358   :  { %v1963_v0 = vmul.f32 %v1707_v63, %v1707_v63 }
 0x35a   :  { %v2219_v5 = vsub.f32 0.0, %v1963_v0 }
 0x35b   :  { %3245 = vset.pattern.permute.xlu1 %v3964_v10  ;;  %3246 = vset.pattern.permute.xlu2 %v3967_v11 }
 0x35c   :  { %v3543_v21 = vpop.eup %3542  ;;  %v2589_v22 = vmul.f32 1.442695, %v2219_v5 }
 0x35d   :  { %2991 = vst.msk [vmem:[%s5823_s3 + $0x3a8] sm:$0xff] %vm2873_vm0, %v3543_v21  ;;  %v771_v23 = vpop.permute.xlu2 %770 }
 0x35e   :  { %3544 = vpow2.f32 %v2589_v22  ;;  %v1713_v24 = vsub.f32 %v771_v23, %v4393_v20 }
 0x360   :  { %v1969_v25 = vmul.f32 %v1713_v24, %v1713_v24 }
 0x362   :  { %v2225_v27 = vsub.f32 0.0, %v1969_v25 }
 0x363   :  { %855 = vperm.xlu1 %3245, %v4676_v42   ;;  %861 = vperm.xlu2 %3246, %v4676_v42  }
 0x364   :  { %v3545_v29 = vpop.eup %3544  ;;  %v2601_v30 = vmul.f32 1.442695, %v2225_v27 }
 0x365   :  { %2988 = vst.msk [vmem:[%s5823_s3 + $0x390] sm:$0xff] %vm2873_vm0, %v3545_v29  ;;  %v747_v31 = vpop.permute.xlu1 %746 }
 0x366   :  { %v1709_v33 = vsub.f32 %v747_v31, %v4393_v20  ;;  %3546 = vpow2.f32 %v2601_v30 }
 0x368   :  { %v1965_v34 = vmul.f32 %v1709_v33, %v1709_v33 }
 0x36a   :  { %v2221_v36 = vsub.f32 0.0, %v1965_v34 }
 0x36b   :  { %3247 = vset.pattern.permute.xlu1 %v4045_v46  ;;  %3248 = vset.pattern.permute.xlu2 %v3974_v12 }
 0x36c   :  { %v3547_v37 = vpop.eup %3546  ;;  %v2593_v39 = vmul.f32 1.442695, %v2221_v36 }
 0x36d   :  { %2994 = vst.msk [vmem:[%s5823_s3 + $0x3c0] sm:$0xff] %vm2873_vm0, %v3547_v37  ;;  %v783_v40 = vpop.permute.xlu2 %782 }
 0x36e   :  { %3548 = vpow2.f32 %v2593_v39  ;;  %v1715_v6 = vsub.f32 %v783_v40, %v4393_v20 }
 0x370   :  { %v1971_v41 = vmul.f32 %v1715_v6, %v1715_v6  ;;  %v4763_v6 = vperm.slane %v4667_v38, 1 }
 0x372   :  { %v2227_v43 = vsub.f32 0.0, %v1971_v41 }
 0x373   :  { %867 = vperm.xlu1 %3247, %v4676_v42   ;;  %873 = vperm.xlu2 %3248, %v4676_v42  }
 0x374   :  { %v3549_v44 = vpop.eup %3548  ;;  %v2605_v4 = vmul.f32 1.442695, %v2227_v43 }
 0x375   :  { %2990 = vst.msk [vmem:[%s5823_s3 + $0x3a0] sm:$0xff] %vm2873_vm0, %v3549_v44  ;;  %v765_v48 = vpop.permute.xlu1 %764 }
 0x376   :  { %v1712_v49 = vsub.f32 %v765_v48, %v4393_v20  ;;  %3550 = vpow2.f32 %v2605_v4 }
 0x378   :  { %v1968_v50 = vmul.f32 %v1712_v49, %v1712_v49 }
 0x37a   :  { %v2224_v51 = vsub.f32 0.0, %v1968_v50 }
 0x37b   :  { %3249 = vset.pattern.permute.xlu1 %v3984_v14  ;;  %3250 = vset.pattern.permute.xlu2 %v3987_v15 }
 0x37c   :  { %v3551_v52 = vpop.eup %3550  ;;  %v2599_v53 = vmul.f32 1.442695, %v2224_v51 }
 0x37d   :  { %2996 = vst.msk [vmem:[%s5823_s3 + $0x3d0] sm:$0xff] %vm2873_vm0, %v3551_v52  ;;  %v801_v54 = vpop.permute.xlu2 %800 }
 0x37e   :  { %3552 = vpow2.f32 %v2599_v53  ;;  %v1718_v56 = vsub.f32 %v801_v54, %v4393_v20 }
 0x380   :  { %v1974_v57 = vmul.f32 %v1718_v56, %v1718_v56 }
 0x382   :  { %v2230_v58 = vsub.f32 0.0, %v1974_v57 }
 0x383   :  { %885 = vperm.xlu1 %3249, %v4676_v42   ;;  %891 = vperm.xlu2 %3250, %v4676_v42  }
 0x384   :  { %v3553_v59 = vpop.eup %3552  ;;  %v2611_v60 = vmul.f32 1.442695, %v2230_v58 }
 0x385   :  { %2993 = vst.msk [vmem:[%s5823_s3 + $0x3b8] sm:$0xff] %vm2873_vm0, %v3553_v59  ;;  %v777_v61 = vpop.permute.xlu1 %776 }
 0x386   :  { %v1714_v62 = vsub.f32 %v777_v61, %v4393_v20  ;;  %3554 = vpow2.f32 %v2611_v60 }
 0x388   :  { %v1970_v63 = vmul.f32 %v1714_v62, %v1714_v62 }
 0x38a   :  { %v2226_v0 = vsub.f32 0.0, %v1970_v63 }
 0x38b   :  { %3251 = vset.pattern.permute.xlu1 %v4076_v26  ;;  %3252 = vset.pattern.permute.xlu2 %v3998_v17 }
 0x38c   :  { %v3555_v5 = vpop.eup %3554  ;;  %v2603_v21 = vmul.f32 1.442695, %v2226_v0 }
 0x38d   :  { %2999 = vst.msk [vmem:[%s5823_s3 + $0x3e8] sm:$0xff] %vm2873_vm0, %v3555_v5  ;;  %v813_v22 = vpop.permute.xlu2 %812 }
 0x38e   :  { %3556 = vpow2.f32 %v2603_v21  ;;  %v1720_v23 = vsub.f32 %v813_v22, %v4393_v20 }
 0x390   :  { %v1976_v24 = vmul.f32 %v1720_v23, %v1720_v23 }
 0x392   :  { %v2232_v25 = vsub.f32 0.0, %v1976_v24 }
 0x393   :  { %897 = vperm.xlu1 %3251, %v4676_v42   ;;  %903 = vperm.xlu2 %3252, %v4676_v42  }
 0x394   :  { %v3557_v27 = vpop.eup %3556  ;;  %v2615_v29 = vmul.f32 1.442695, %v2232_v25 }
 0x395   :  { %2995 = vst.msk [vmem:[%s5823_s3 + $0x3c8] sm:$0xff] %vm2873_vm0, %v3557_v27  ;;  %v795_v30 = vpop.permute.xlu1 %794 }
 0x396   :  { %v1717_v31 = vsub.f32 %v795_v30, %v4393_v20  ;;  %3558 = vpow2.f32 %v2615_v29 }
 0x398   :  { %v1973_v33 = vmul.f32 %v1717_v31, %v1717_v31 }
 0x39a   :  { %v2229_v34 = vsub.f32 0.0, %v1973_v33 }
 0x39b   :  { %3253 = vset.pattern.permute.xlu1 %v3928_v1  ;;  %3254 = vset.pattern.permute.xlu2 %v4008_v19 }
 0x39c   :  { %v3559_v36 = vpop.eup %3558  ;;  %v2609_v37 = vmul.f32 1.442695, %v2229_v34 }
 0x39d   :  { %3001 = vst.msk [vmem:[%s5823_s3 + $0x3f8] sm:$0xff] %vm2873_vm0, %v3559_v36  ;;  %v832_v39 = vpop.permute.xlu2 %831 }
 0x39e   :  { %3560 = vpow2.f32 %v2609_v37  ;;  %v1723_v40 = vsub.f32 %v832_v39, %v4393_v20  ;;  %v4774_v20 = vld [vmem:[%s5822_s2] ss:$0 sm:$0xff] }
 0x3a0   :  { %v1979_v41 = vmul.f32 %v1723_v40, %v1723_v40 }
 0x3a2   :  { %v2235_v43 = vsub.f32 0.0, %v1979_v41 }
 0x3a3   :  { %916 = vperm.xlu1 %3253, %v4763_v6   ;;  %922 = vperm.xlu2 %3254, %v4763_v6  }
 0x3a4   :  { %v3561_v44 = vpop.eup %3560  ;;  %v2621_v4 = vmul.f32 1.442695, %v2235_v43 }
 0x3a5   :  { %2998 = vst.msk [vmem:[%s5823_s3 + $0x3e0] sm:$0xff] %vm2873_vm0, %v3561_v44  ;;  %v807_v48 = vpop.permute.xlu1 %806 }
 0x3a6   :  { %v1719_v49 = vsub.f32 %v807_v48, %v4774_v20  ;;  %3562 = vpow2.f32 %v2621_v4 }
 0x3a8   :  { %v1975_v50 = vmul.f32 %v1719_v49, %v1719_v49 }
 0x3aa   :  { %v2231_v51 = vsub.f32 0.0, %v1975_v50 }
 0x3ab   :  { %3255 = vset.pattern.permute.xlu1 %v3931_v2  ;;  %3256 = vset.pattern.permute.xlu2 %v3954_v8 }
 0x3ac   :  { %v3563_v52 = vpop.eup %3562  ;;  %v2613_v53 = vmul.f32 1.442695, %v2231_v51 }
 0x3ad   :  { %3004 = vst.msk [vmem:[%s5823_s3 + $0x410] sm:$0xff] %vm2873_vm0, %v3563_v52  ;;  %v844_v54 = vpop.permute.xlu2 %843 }
 0x3ae   :  { %3564 = vpow2.f32 %v2613_v53  ;;  %v1725_v56 = vsub.f32 %v844_v54, %v4774_v20 }
 0x3b0   :  { %v1981_v57 = vmul.f32 %v1725_v56, %v1725_v56 }
 0x3b2   :  { %v2237_v58 = vsub.f32 0.0, %v1981_v57 }
 0x3b3   :  { %928 = vperm.xlu1 %3255, %v4763_v6   ;;  %934 = vperm.xlu2 %3256, %v4763_v6  }
 0x3b4   :  { %v3565_v59 = vpop.eup %3564  ;;  %v2625_v60 = vmul.f32 1.442695, %v2237_v58 }
 0x3b5   :  { %3000 = vst.msk [vmem:[%s5823_s3 + $0x3f0] sm:$0xff] %vm2873_vm0, %v3565_v59  ;;  %v826_v61 = vpop.permute.xlu1 %825 }
 0x3b6   :  { %v1722_v62 = vsub.f32 %v826_v61, %v4774_v20  ;;  %3566 = vpow2.f32 %v2625_v60 }
 0x3b8   :  { %v1978_v63 = vmul.f32 %v1722_v62, %v1722_v62 }
 0x3ba   :  { %v2234_v0 = vsub.f32 0.0, %v1978_v63 }
 0x3bb   :  { %3257 = vset.pattern.permute.xlu1 %v3957_v9  ;;  %3258 = vset.pattern.permute.xlu2 %v3964_v10 }
 0x3bc   :  { %v3567_v5 = vpop.eup %3566  ;;  %v2619_v21 = vmul.f32 1.442695, %v2234_v0 }
 0x3bd   :  { %3006 = vst.msk [vmem:[%s5823_s3 + $0x420] sm:$0xff] %vm2873_vm0, %v3567_v5  ;;  %v862_v22 = vpop.permute.xlu2 %861 }
 0x3be   :  { %3568 = vpow2.f32 %v2619_v21  ;;  %v1728_v23 = vsub.f32 %v862_v22, %v4774_v20 }
 0x3c0   :  { %v1984_v24 = vmul.f32 %v1728_v23, %v1728_v23 }
 0x3c2   :  { %v2240_v25 = vsub.f32 0.0, %v1984_v24 }
 0x3c3   :  { %946 = vperm.xlu1 %3257, %v4763_v6   ;;  %952 = vperm.xlu2 %3258, %v4763_v6  }
 0x3c4   :  { %v3569_v27 = vpop.eup %3568  ;;  %v2631_v29 = vmul.f32 1.442695, %v2240_v25 }
 0x3c5   :  { %3003 = vst.msk [vmem:[%s5823_s3 + $0x408] sm:$0xff] %vm2873_vm0, %v3569_v27  ;;  %v838_v30 = vpop.permute.xlu1 %837 }
 0x3c6   :  { %v1724_v31 = vsub.f32 %v838_v30, %v4774_v20  ;;  %3570 = vpow2.f32 %v2631_v29 }
 0x3c8   :  { %v1980_v33 = vmul.f32 %v1724_v31, %v1724_v31 }
 0x3ca   :  { %v2236_v34 = vsub.f32 0.0, %v1980_v33 }
 0x3cb   :  { %3259 = vset.pattern.permute.xlu1 %v3967_v11  ;;  %3260 = vset.pattern.permute.xlu2 %v4045_v46 }
 0x3cc   :  { %v3571_v36 = vpop.eup %3570  ;;  %v2623_v37 = vmul.f32 1.442695, %v2236_v34 }
 0x3cd   :  { %3009 = vst.msk [vmem:[%s5823_s3 + $0x438] sm:$0xff] %vm2873_vm0, %v3571_v36  ;;  %v874_v39 = vpop.permute.xlu2 %873 }
 0x3ce   :  { %3572 = vpow2.f32 %v2623_v37  ;;  %v1730_v40 = vsub.f32 %v874_v39, %v4774_v20 }
 0x3d0   :  { %v1986_v41 = vmul.f32 %v1730_v40, %v1730_v40 }
 0x3d2   :  { %v2242_v43 = vsub.f32 0.0, %v1986_v41 }
 0x3d3   :  { %958 = vperm.xlu1 %3259, %v4763_v6   ;;  %964 = vperm.xlu2 %3260, %v4763_v6  }
 0x3d4   :  { %v3573_v44 = vpop.eup %3572  ;;  %v2635_v4 = vmul.f32 1.442695, %v2242_v43  ;;  %v4855_v43 = vperm.slane %v4667_v38, 2 }
 0x3d5   :  { %3005 = vst.msk [vmem:[%s5823_s3 + $0x418] sm:$0xff] %vm2873_vm0, %v3573_v44  ;;  %v856_v48 = vpop.permute.xlu1 %855 }
 0x3d6   :  { %v1727_v49 = vsub.f32 %v856_v48, %v4774_v20  ;;  %3574 = vpow2.f32 %v2635_v4 }
 0x3d8   :  { %v1983_v50 = vmul.f32 %v1727_v49, %v1727_v49 }
 0x3da   :  { %v2239_v51 = vsub.f32 0.0, %v1983_v50 }
 0x3db   :  { %3261 = vset.pattern.permute.xlu1 %v3977_v13  ;;  %3262 = vset.pattern.permute.xlu2 %v3984_v14 }
 0x3dc   :  { %v3575_v52 = vpop.eup %3574  ;;  %v2629_v53 = vmul.f32 1.442695, %v2239_v51 }
 0x3dd   :  { %3011 = vst.msk [vmem:[%s5823_s3 + $0x448] sm:$0xff] %vm2873_vm0, %v3575_v52  ;;  %v892_v54 = vpop.permute.xlu2 %891 }
 0x3de   :  { %3576 = vpow2.f32 %v2629_v53  ;;  %v1733_v56 = vsub.f32 %v892_v54, %v4774_v20 }
 0x3e0   :  { %v1989_v57 = vmul.f32 %v1733_v56, %v1733_v56 }
 0x3e2   :  { %v2245_v58 = vsub.f32 0.0, %v1989_v57 }
 0x3e3   :  { %976 = vperm.xlu1 %3261, %v4763_v6   ;;  %982 = vperm.xlu2 %3262, %v4763_v6  }
 0x3e4   :  { %v3577_v59 = vpop.eup %3576  ;;  %v2641_v60 = vmul.f32 1.442695, %v2245_v58 }
 0x3e5   :  { %3008 = vst.msk [vmem:[%s5823_s3 + $0x430] sm:$0xff] %vm2873_vm0, %v3577_v59  ;;  %v868_v61 = vpop.permute.xlu1 %867 }
 0x3e6   :  { %v1729_v62 = vsub.f32 %v868_v61, %v4774_v20  ;;  %3578 = vpow2.f32 %v2641_v60 }
 0x3e8   :  { %v1985_v63 = vmul.f32 %v1729_v62, %v1729_v62 }
 0x3ea   :  { %v2241_v0 = vsub.f32 0.0, %v1985_v63 }
 0x3eb   :  { %3263 = vset.pattern.permute.xlu1 %v3987_v15  ;;  %3264 = vset.pattern.permute.xlu2 %v4076_v26 }
 0x3ec   :  { %v3579_v5 = vpop.eup %3578  ;;  %v2633_v21 = vmul.f32 1.442695, %v2241_v0 }
 0x3ed   :  { %3014 = vst.msk [vmem:[%s5823_s3 + $0x460] sm:$0xff] %vm2873_vm0, %v3579_v5  ;;  %v904_v22 = vpop.permute.xlu2 %903 }
 0x3ee   :  { %3580 = vpow2.f32 %v2633_v21  ;;  %v1735_v23 = vsub.f32 %v904_v22, %v4774_v20 }
 0x3f0   :  { %v1991_v24 = vmul.f32 %v1735_v23, %v1735_v23 }
 0x3f2   :  { %v2247_v25 = vsub.f32 0.0, %v1991_v24 }
 0x3f3   :  { %988 = vperm.xlu1 %3263, %v4763_v6   ;;  %994 = vperm.xlu2 %3264, %v4763_v6  }
 0x3f4   :  { %v3581_v27 = vpop.eup %3580  ;;  %v2645_v29 = vmul.f32 1.442695, %v2247_v25 }
 0x3f5   :  { %3010 = vst.msk [vmem:[%s5823_s3 + $0x440] sm:$0xff] %vm2873_vm0, %v3581_v27  ;;  %v886_v30 = vpop.permute.xlu1 %885 }
 0x3f6   :  { %v1732_v31 = vsub.f32 %v886_v30, %v4774_v20  ;;  %3582 = vpow2.f32 %v2645_v29 }
 0x3f8   :  { %v1988_v33 = vmul.f32 %v1732_v31, %v1732_v31 }
 0x3fa   :  { %v2244_v34 = vsub.f32 0.0, %v1988_v33 }
 0x3fb   :  { %3265 = vset.pattern.permute.xlu1 %v4001_v18  ;;  %3266 = vset.pattern.permute.xlu2 %v3928_v1 }
 0x3fc   :  { %v3583_v36 = vpop.eup %3582  ;;  %v2639_v37 = vmul.f32 1.442695, %v2244_v34 }
 0x3fd   :  { %3016 = vst.msk [vmem:[%s5823_s3 + $0x470] sm:$0xff] %vm2873_vm0, %v3583_v36  ;;  %v923_v39 = vpop.permute.xlu2 %922  ;;  %v4893_v36 = vperm.slane %v4667_v38, 3 }
 0x3fe   :  { %3584 = vpow2.f32 %v2639_v37  ;;  %v1738_v40 = vsub.f32 %v923_v39, %v4774_v20 }
 0x3ff   :  { %1122 = vperm.xlu0 %3152, %v4893_v36  }
 0x400   :  { %v1994_v41 = vmul.f32 %v1738_v40, %v1738_v40 }
 0x402   :  { %v2250_v44 = vsub.f32 0.0, %v1994_v41 }
 0x403   :  { %1006 = vperm.xlu1 %3265, %v4763_v6   ;;  %1013 = vperm.xlu2 %3266, %v4855_v43  }
 0x404   :  { %v3585_v4 = vpop.eup %3584  ;;  %v2651_v48 = vmul.f32 1.442695, %v2250_v44 }
 0x405   :  { %3013 = vst.msk [vmem:[%s5823_s3 + $0x458] sm:$0xff] %vm2873_vm0, %v3585_v4  ;;  %v898_v49 = vpop.permute.xlu1 %897 }
 0x406   :  { %v1734_v50 = vsub.f32 %v898_v49, %v4774_v20  ;;  %3586 = vpow2.f32 %v2651_v48 }
 0x407   :  { %3281 = vset.pattern.permute.xlu0 %v3967_v11 }
 0x408   :  { %v1990_v51 = vmul.f32 %v1734_v50, %v1734_v50 }
 0x40a   :  { %v2246_v52 = vsub.f32 0.0, %v1990_v51 }
 0x40b   :  { %3267 = vset.pattern.permute.xlu1 %v4008_v19  ;;  %3268 = vset.pattern.permute.xlu2 %v3931_v2 }
 0x40c   :  { %v3587_v53 = vpop.eup %3586  ;;  %v2643_v54 = vmul.f32 1.442695, %v2246_v52 }
 0x40d   :  { %3019 = vst.msk [vmem:[%s5823_s3 + $0x488] sm:$0xff] %vm2873_vm0, %v3587_v53  ;;  %v935_v56 = vpop.permute.xlu2 %934 }
 0x40e   :  { %3588 = vpow2.f32 %v2643_v54  ;;  %v1740_v57 = vsub.f32 %v935_v56, %v4774_v20 }
 0x40f   :  { %182 = vperm.xlu0 %3281, %v3992_v16  }
 0x410   :  { %v1996_v58 = vmul.f32 %v1740_v57, %v1740_v57 }
 0x412   :  { %v2252_v59 = vsub.f32 0.0, %v1996_v58 }
 0x413   :  { %1019 = vperm.xlu1 %3267, %v4855_v43   ;;  %1025 = vperm.xlu2 %3268, %v4855_v43  }
 0x414   :  { %v3589_v60 = vpop.eup %3588  ;;  %v2655_v61 = vmul.f32 1.442695, %v2252_v59 }
 0x415   :  { %3015 = vst.msk [vmem:[%s5823_s3 + $0x468] sm:$0xff] %vm2873_vm0, %v3589_v60  ;;  %v917_v62 = vpop.permute.xlu1 %916 }
 0x416   :  { %v1737_v63 = vsub.f32 %v917_v62, %v4774_v20  ;;  %3590 = vpow2.f32 %v2655_v61 }
 0x417   :  { %667 = vperm.xlu0 %3281, %v4453_v55  }
 0x418   :  { %v1993_v0 = vmul.f32 %v1737_v63, %v1737_v63 }
 0x41a   :  { %v2249_v5 = vsub.f32 0.0, %v1993_v0 }
 0x41b   :  { %3269 = vset.pattern.permute.xlu1 %v3934_v3  ;;  %3270 = vset.pattern.permute.xlu2 %v3957_v9 }
 0x41c   :  { %v3591_v21 = vpop.eup %3590  ;;  %v2649_v22 = vmul.f32 1.442695, %v2249_v5 }
 0x41d   :  { %3021 = vst.msk [vmem:[%s5823_s3 + $0x498] sm:$0xff] %vm2873_vm0, %v3591_v21  ;;  %v953_v23 = vpop.permute.xlu2 %952 }
 0x41e   :  { %3592 = vpow2.f32 %v2649_v22  ;;  %v1743_v24 = vsub.f32 %v953_v23, %v4774_v20 }
 0x41f   :  { %1152 = vperm.xlu0 %3281, %v4893_v36  }
 0x420   :  { %v1999_v25 = vmul.f32 %v1743_v24, %v1743_v24 }
 0x422   :  { %v2255_v27 = vsub.f32 0.0, %v1999_v25 }
 0x423   :  { %1037 = vperm.xlu1 %3269, %v4855_v43   ;;  %1043 = vperm.xlu2 %3270, %v4855_v43  }
 0x424   :  { %v3593_v29 = vpop.eup %3592  ;;  %v2661_v30 = vmul.f32 1.442695, %v2255_v27 }
 0x425   :  { %3018 = vst.msk [vmem:[%s5823_s3 + $0x480] sm:$0xff] %vm2873_vm0, %v3593_v29  ;;  %v929_v31 = vpop.permute.xlu1 %928 }
 0x426   :  { %v1739_v33 = vsub.f32 %v929_v31, %v4774_v20  ;;  %3594 = vpow2.f32 %v2661_v30 }
 0x427   :  { %3286 = vset.pattern.permute.xlu0 %v3987_v15 }
 0x428   :  { %v1995_v34 = vmul.f32 %v1739_v33, %v1739_v33 }
 0x42a   :  { %v2251_v37 = vsub.f32 0.0, %v1995_v34 }
 0x42b   :  { %3271 = vset.pattern.permute.xlu1 %v3964_v10  ;;  %3272 = vset.pattern.permute.xlu2 %v3967_v11 }
 0x42c   :  { %v3595_v39 = vpop.eup %3594  ;;  %v2653_v40 = vmul.f32 1.442695, %v2251_v37 }
 0x42d   :  { %3024 = vst.msk [vmem:[%s5823_s3 + $0x4b0] sm:$0xff] %vm2873_vm0, %v3595_v39  ;;  %v965_v41 = vpop.permute.xlu2 %964 }
 0x42e   :  { %3596 = vpow2.f32 %v2653_v40  ;;  %v1745_v44 = vsub.f32 %v965_v41, %v4774_v20 }
 0x42f   :  { %212 = vperm.xlu0 %3286, %v3992_v16  }
 0x430   :  { %v2001_v4 = vmul.f32 %v1745_v44, %v1745_v44 }
 0x432   :  { %v2257_v48 = vsub.f32 0.0, %v2001_v4 }
 0x433   :  { %1049 = vperm.xlu1 %3271, %v4855_v43   ;;  %1055 = vperm.xlu2 %3272, %v4855_v43  }
 0x434   :  { %v3597_v49 = vpop.eup %3596  ;;  %v2665_v50 = vmul.f32 1.442695, %v2257_v48 }
 0x435   :  { %3020 = vst.msk [vmem:[%s5823_s3 + $0x490] sm:$0xff] %vm2873_vm0, %v3597_v49  ;;  %v947_v51 = vpop.permute.xlu1 %946 }
 0x436   :  { %v1742_v52 = vsub.f32 %v947_v51, %v4774_v20  ;;  %3598 = vpow2.f32 %v2665_v50 }
 0x437   :  { %697 = vperm.xlu0 %3286, %v4453_v55  }
 0x438   :  { %v1998_v53 = vmul.f32 %v1742_v52, %v1742_v52 }
 0x43a   :  { %v2254_v54 = vsub.f32 0.0, %v1998_v53 }
 0x43b   :  { %3273 = vset.pattern.permute.xlu1 %v3974_v12  ;;  %3274 = vset.pattern.permute.xlu2 %v3977_v13 }
 0x43c   :  { %v3599_v56 = vpop.eup %3598  ;;  %v2659_v57 = vmul.f32 1.442695, %v2254_v54 }
 0x43d   :  { %3026 = vst.msk [vmem:[%s5823_s3 + $0x4c0] sm:$0xff] %vm2873_vm0, %v3599_v56  ;;  %v983_v58 = vpop.permute.xlu2 %982 }
 0x43e   :  { %3600 = vpow2.f32 %v2659_v57  ;;  %v1748_v59 = vsub.f32 %v983_v58, %v4774_v20 }
 0x43f   :  { %1182 = vperm.xlu0 %3286, %v4893_v36  }
 0x440   :  { %v2004_v60 = vmul.f32 %v1748_v59, %v1748_v59 }
 0x442   :  { %v2260_v61 = vsub.f32 0.0, %v2004_v60 }
 0x443   :  { %1067 = vperm.xlu1 %3273, %v4855_v43   ;;  %1073 = vperm.xlu2 %3274, %v4855_v43  }
 0x444   :  { %v3601_v62 = vpop.eup %3600  ;;  %v2671_v63 = vmul.f32 1.442695, %v2260_v61 }
 0x445   :  { %3023 = vst.msk [vmem:[%s5823_s3 + $0x4a8] sm:$0xff] %vm2873_vm0, %v3601_v62  ;;  %v959_v0 = vpop.permute.xlu1 %958 }
 0x446   :  { %v1744_v5 = vsub.f32 %v959_v0, %v4774_v20  ;;  %3602 = vpow2.f32 %v2671_v63 }
 0x447   :  { %3291 = vset.pattern.permute.xlu0 %v4008_v19 }
 0x448   :  { %v2000_v21 = vmul.f32 %v1744_v5, %v1744_v5 }
 0x44a   :  { %v2256_v22 = vsub.f32 0.0, %v2000_v21 }
 0x44b   :  { %3275 = vset.pattern.permute.xlu1 %v3984_v14  ;;  %3276 = vset.pattern.permute.xlu2 %v3987_v15 }
 0x44c   :  { %v3603_v23 = vpop.eup %3602  ;;  %v2663_v24 = vmul.f32 1.442695, %v2256_v22 }
 0x44d   :  { %3029 = vst.msk [vmem:[%s5823_s3 + $0x4d8] sm:$0xff] %vm2873_vm0, %v3603_v23  ;;  %v995_v25 = vpop.permute.xlu2 %994 }
 0x44e   :  { %3604 = vpow2.f32 %v2663_v24  ;;  %v1750_v27 = vsub.f32 %v995_v25, %v4774_v20 }
 0x44f   :  { %49 = vperm.xlu0 %3291, %v3949_v7  }
 0x450   :  { %v2006_v29 = vmul.f32 %v1750_v27, %v1750_v27 }
 0x452   :  { %v2262_v30 = vsub.f32 0.0, %v2006_v29 }
 0x453   :  { %1079 = vperm.xlu1 %3275, %v4855_v43   ;;  %1085 = vperm.xlu2 %3276, %v4855_v43  }
 0x454   :  { %v3605_v31 = vpop.eup %3604  ;;  %v2675_v33 = vmul.f32 1.442695, %v2262_v30 }
 0x455   :  { %3025 = vst.msk [vmem:[%s5823_s3 + $0x4b8] sm:$0xff] %vm2873_vm0, %v3605_v31  ;;  %v977_v34 = vpop.permute.xlu1 %976 }
 0x456   :  { %v1747_v37 = vsub.f32 %v977_v34, %v4774_v20  ;;  %3606 = vpow2.f32 %v2675_v33 }
 0x457   :  { %243 = vperm.xlu0 %3291, %v4100_v47  }
 0x458   :  { %v2003_v39 = vmul.f32 %v1747_v37, %v1747_v37 }
 0x45a   :  { %v2259_v40 = vsub.f32 0.0, %v2003_v39 }
 0x45b   :  { %3277 = vset.pattern.permute.xlu1 %v3998_v17  ;;  %3278 = vset.pattern.permute.xlu2 %v4001_v18 }
 0x45c   :  { %v3607_v41 = vpop.eup %3606  ;;  %v2669_v44 = vmul.f32 1.442695, %v2259_v40 }
 0x45d   :  { %3031 = vst.msk [vmem:[%s5823_s3 + $0x4e8] sm:$0xff] %vm2873_vm0, %v3607_v41  ;;  %v1014_v4 = vpop.permute.xlu2 %1013 }
 0x45e   :  { %3608 = vpow2.f32 %v2669_v44  ;;  %v1753_v48 = vsub.f32 %v1014_v4, %v4774_v20 }
 0x45f   :  { %728 = vperm.xlu0 %3291, %v4569_v32  }
 0x460   :  { %v2009_v49 = vmul.f32 %v1753_v48, %v1753_v48 }
 0x462   :  { %v2265_v50 = vsub.f32 0.0, %v2009_v49 }
 0x463   :  { %1097 = vperm.xlu1 %3277, %v4855_v43   ;;  %1103 = vperm.xlu2 %3278, %v4855_v43  }
 0x464   :  { %v3609_v51 = vpop.eup %3608  ;;  %v2681_v52 = vmul.f32 1.442695, %v2265_v50  ;;  %v5000_v50 = vperm.slane %v4667_v38, 4 }
 0x465   :  { %3028 = vst.msk [vmem:[%s5823_s3 + $0x4d0] sm:$0xff] %vm2873_vm0, %v3609_v51  ;;  %v989_v16 = vpop.permute.xlu1 %988 }
 0x466   :  { %v1749_v53 = vsub.f32 %v989_v16, %v4774_v20  ;;  %3610 = vpow2.f32 %v2681_v52 }
 0x467   :  { %1213 = vperm.xlu0 %3291, %v5000_v50  }
 0x468   :  { %v2005_v54 = vmul.f32 %v1749_v53, %v1749_v53 }
 0x46a   :  { %v2261_v56 = vsub.f32 0.0, %v2005_v54  ;;  %v153_v54 = vpop.permute.xlu0 %152 }
 0x46b   :  { %3279 = vset.pattern.permute.xlu1 %v3928_v1  ;;  %3280 = vset.pattern.permute.xlu2 %v4008_v19 }
 0x46c   :  { %v3611_v57 = vpop.eup %3610  ;;  %v2673_v58 = vmul.f32 1.442695, %v2261_v56 }
 0x46d   :  { %3034 = vst.msk [vmem:[%s5823_s3 + $0x500] sm:$0xff] %vm2873_vm0, %v3611_v57  ;;  %v1026_v55 = vpop.permute.xlu2 %1025  ;;  %v1611_v57 = vsub.f32 %v153_v54, %v4774_v20 }
 0x46e   :  { %3612 = vpow2.f32 %v2673_v58  ;;  %v1755_v59 = vsub.f32 %v1026_v55, %v4774_v20 }
 0x46f   :  { %v1867_v55 = vmul.f32 %v1611_v57, %v1611_v57  ;;  %3296 = vset.pattern.permute.xlu0 %v3964_v10 }
 0x470   :  { %v2011_v60 = vmul.f32 %v1755_v59, %v1755_v59 }
 0x472   :  { %v2267_v61 = vsub.f32 0.0, %v2011_v60  ;;  %v2123_v60 = vsub.f32 0.0, %v1867_v55 }
 0x473   :  { %1110 = vperm.xlu1 %3279, %v4893_v36   ;;  %1116 = vperm.xlu2 %3280, %v4893_v36  }
 0x474   :  { %v3613_v62 = vpop.eup %3612  ;;  %v2685_v63 = vmul.f32 1.442695, %v2267_v61 }
 0x475   :  { %3030 = vst.msk [vmem:[%s5823_s3 + $0x4e0] sm:$0xff] %vm2873_vm0, %v3613_v62  ;;  %v1007_v0 = vpop.permute.xlu1 %1006 }
 0x476   :  { %v1752_v5 = vsub.f32 %v1007_v0, %v4774_v20  ;;  %3614 = vpow2.f32 %v2685_v63  ;;  %v2397_v63 = vmul.f32 1.442695, %v2123_v60 }
 0x477   :  { %273 = vperm.xlu0 %3296, %v4100_v47  }
 0x478   :  { %v2008_v21 = vmul.f32 %v1752_v5, %v1752_v5  ;;  %v638_v5 = vpop.permute.xlu0 %637 }
 0x47a   :  { %v2264_v22 = vsub.f32 0.0, %v2008_v21 }
 0x47b   :  { %3282 = vset.pattern.permute.xlu1 %v3954_v8  ;;  %3283 = vset.pattern.permute.xlu2 %v3934_v3 }
 0x47c   :  { %v3615_v23 = vpop.eup %3614  ;;  %v2679_v24 = vmul.f32 1.442695, %v2264_v22 }
 0x47d   :  { %3036 = vst.msk [vmem:[%s5823_s3 + $0x510] sm:$0xff] %vm2873_vm0, %v3615_v23  ;;  %v1044_v25 = vpop.permute.xlu2 %1043 }
 0x47e   :  { %3616 = vpow2.f32 %v2679_v24  ;;  %v1758_v27 = vsub.f32 %v1044_v25, %v4774_v20 }
 0x47f   :  { %758 = vperm.xlu0 %3296, %v4569_v32  }
 0x480   :  { %v2014_v29 = vmul.f32 %v1758_v27, %v1758_v27 }
 0x482   :  { %v2270_v30 = vsub.f32 0.0, %v2014_v29 }
 0x483   :  { %1128 = vperm.xlu1 %3282, %v4893_v36   ;;  %1134 = vperm.xlu2 %3283, %v4893_v36  }
 0x484   :  { %v3617_v31 = vpop.eup %3616  ;;  %v2691_v33 = vmul.f32 1.442695, %v2270_v30  ;;  %v1691_v30 = vsub.f32 %v638_v5, %v4774_v20 }
 0x485   :  { %3033 = vst.msk [vmem:[%s5823_s3 + $0x4f8] sm:$0xff] %vm2873_vm0, %v3617_v31  ;;  %v1020_v34 = vpop.permute.xlu1 %1019  ;;  %v1123_v31 = vpop.permute.xlu0 %1122 }
 0x486   :  { %v1754_v37 = vsub.f32 %v1020_v34, %v4774_v20  ;;  %3618 = vpow2.f32 %v2691_v33  ;;  %v1771_v34 = vsub.f32 %v1123_v31, %v4774_v20 }
 0x487   :  { %1243 = vperm.xlu0 %3296, %v5000_v50  }
 0x488   :  { %v2010_v39 = vmul.f32 %v1754_v37, %v1754_v37  ;;  %v1947_v37 = vmul.f32 %v1691_v30, %v1691_v30 }
 0x48a   :  { %v2266_v40 = vsub.f32 0.0, %v2010_v39 }
 0x48b   :  { %3284 = vset.pattern.permute.xlu1 %v3957_v9  ;;  %3285 = vset.pattern.permute.xlu2 %v3964_v10 }
 0x48c   :  { %v3619_v41 = vpop.eup %3618  ;;  %v2683_v44 = vmul.f32 1.442695, %v2266_v40  ;;  %v2027_v40 = vmul.f32 %v1771_v34, %v1771_v34 }
 0x48d   :  { %3039 = vst.msk [vmem:[%s5823_s3 + $0x528] sm:$0xff] %vm2873_vm0, %v3619_v41  ;;  %v1056_v4 = vpop.permute.xlu2 %1055  ;;  %v2203_v41 = vsub.f32 0.0, %v1947_v37 }
 0x48e   :  { %3620 = vpow2.f32 %v2683_v44  ;;  %v1760_v48 = vsub.f32 %v1056_v4, %v4774_v20  ;;  %v2283_v4 = vsub.f32 0.0, %v2027_v40 }
 0x48f   :  { %3301 = vset.pattern.permute.xlu0 %v3984_v14 }
 0x490   :  { %v2016_v49 = vmul.f32 %v1760_v48, %v1760_v48  ;;  %v2557_v48 = vmul.f32 1.442695, %v2203_v41 }
 0x492   :  { %v2272_v51 = vsub.f32 0.0, %v2016_v49 }
 0x493   :  { %1140 = vperm.xlu1 %3284, %v4893_v36   ;;  %1146 = vperm.xlu2 %3285, %v4893_v36  }
 0x494   :  { %v3621_v52 = vpop.eup %3620  ;;  %v2695_v16 = vmul.f32 1.442695, %v2272_v51 }
 0x495   :  { %3035 = vst.msk [vmem:[%s5823_s3 + $0x508] sm:$0xff] %vm2873_vm0, %v3621_v52  ;;  %v1038_v53 = vpop.permute.xlu1 %1037  ;;  %v2717_v52 = vmul.f32 1.442695, %v2283_v4 }
 0x496   :  { %v1757_v56 = vsub.f32 %v1038_v53, %v4774_v20  ;;  %3622 = vpow2.f32 %v2695_v16 }
 0x497   :  { %303 = vperm.xlu0 %3301, %v4100_v47  }
 0x498   :  { %v2013_v58 = vmul.f32 %v1757_v56, %v1757_v56 }
 0x49a   :  { %v2269_v59 = vsub.f32 0.0, %v2013_v58 }
 0x49b   :  { %3287 = vset.pattern.permute.xlu1 %v4045_v46  ;;  %3288 = vset.pattern.permute.xlu2 %v3974_v12 }
 0x49c   :  { %v3623_v61 = vpop.eup %3622  ;;  %v2689_v62 = vmul.f32 1.442695, %v2269_v59 }
 0x49d   :  { %3041 = vst.msk [vmem:[%s5823_s3 + $0x538] sm:$0xff] %vm2873_vm0, %v3623_v61  ;;  %v1074_v0 = vpop.permute.xlu2 %1073  ;;  %v183_v61 = vpop.permute.xlu0 %182 }
 0x49e   :  { %3624 = vpow2.f32 %v2689_v62  ;;  %v1763_v21 = vsub.f32 %v1074_v0, %v4774_v20 }
 0x49f   :  { %3626 = vpow2.f32 %v2397_v63  ;;  %v1616_v63 = vsub.f32 %v183_v61, %v4774_v20  ;;  %788 = vperm.xlu0 %3301, %v4569_v32  }
 0x4a0   :  { %v2019_v22 = vmul.f32 %v1763_v21, %v1763_v21 }
 0x4a1   :  { %v1872_v5 = vmul.f32 %v1616_v63, %v1616_v63 }
 0x4a2   :  { %v2275_v23 = vsub.f32 0.0, %v2019_v22 }
 0x4a3   :  { %1158 = vperm.xlu1 %3287, %v4893_v36   ;;  %1164 = vperm.xlu2 %3288, %v4893_v36   ;;  %v2128_v22 = vsub.f32 0.0, %v1872_v5 }
 0x4a4   :  { %v3625_v24 = vpop.eup %3624  ;;  %v2701_v25 = vmul.f32 1.442695, %v2275_v23 }
 0x4a5   :  { %v3627_v27 = vpop.eup %3626  ;;  %3038 = vst.msk [vmem:[%s5823_s3 + $0x520] sm:$0xff] %vm2873_vm0, %v3625_v24  ;;  %v1050_v29 = vpop.permute.xlu1 %1049 }
 0x4a6   :  { %v1759_v33 = vsub.f32 %v1050_v29, %v4774_v20  ;;  %2892 = vst.msk [vmem:[%s5823_s3 + $0x90] sm:$0xff] %vm2873_vm0, %v3627_v27  ;;  %3628 = vpow2.f32 %v2701_v25  ;;  %v2407_v25 = vmul.f32 1.442695, %v2128_v22  ;;  %v668_v29 = vpop.permute.xlu0 %667 }
 0x4a7   :  { %3630 = vpow2.f32 %v2557_v48  ;;  %v1696_v41 = vsub.f32 %v668_v29, %v4774_v20  ;;  %1273 = vperm.xlu0 %3301, %v5000_v50  }
 0x4a8   :  { %v2015_v39 = vmul.f32 %v1759_v33, %v1759_v33 }
 0x4a9   :  { %v1952_v48 = vmul.f32 %v1696_v41, %v1696_v41 }
 0x4aa   :  { %v2271_v44 = vsub.f32 0.0, %v2015_v39 }
 0x4ab   :  { %3289 = vset.pattern.permute.xlu1 %v3977_v13  ;;  %3290 = vset.pattern.permute.xlu2 %v3984_v14 }
 0x4ac   :  { %v3629_v49 = vpop.eup %3628  ;;  %v2693_v51 = vmul.f32 1.442695, %v2271_v44 }
 0x4ad   :  { %3044 = vst.msk [vmem:[%s5823_s3 + $0x550] sm:$0xff] %vm2873_vm0, %v3629_v49  ;;  %v1086_v16 = vpop.permute.xlu2 %1085  ;;  %v3631_v57 = vpop.eup %3630 }
 0x4ae   :  { %3632 = vpow2.f32 %v2693_v51  ;;  %v1765_v53 = vsub.f32 %v1086_v16, %v4774_v20  ;;  %2972 = vst.msk [vmem:[%s5823_s3 + $0x310] sm:$0xff] %vm2873_vm0, %v3631_v57  ;;  %v1153_v44 = vpop.permute.xlu0 %1152 }
 0x4af   :  { %3634 = vpow2.f32 %v2717_v52  ;;  %v1776_v47 = vsub.f32 %v1153_v44, %v4774_v20  ;;  %v2208_v52 = vsub.f32 0.0, %v1952_v48  ;;  %3306 = vset.pattern.permute.xlu0 %v3928_v1 }
 0x4b0   :  { %v2021_v54 = vmul.f32 %v1765_v53, %v1765_v53 }
 0x4b1   :  { %v2032_v51 = vmul.f32 %v1776_v47, %v1776_v47 }
 0x4b2   :  { %v2277_v56 = vsub.f32 0.0, %v2021_v54  ;;  %v2567_v54 = vmul.f32 1.442695, %v2208_v52 }
 0x4b3   :  { %1170 = vperm.xlu1 %3289, %v4893_v36   ;;  %1176 = vperm.xlu2 %3290, %v4893_v36   ;;  %v2288_v53 = vsub.f32 0.0, %v2032_v51 }
 0x4b4   :  { %v3633_v58 = vpop.eup %3632  ;;  %v2705_v55 = vmul.f32 1.442695, %v2277_v56 }
 0x4b5   :  { %v3635_v59 = vpop.eup %3634  ;;  %3040 = vst.msk [vmem:[%s5823_s3 + $0x530] sm:$0xff] %vm2873_vm0, %v3633_v58  ;;  %v1068_v60 = vpop.permute.xlu1 %1067  ;;  %v2727_v58 = vmul.f32 1.442695, %v2288_v53 }
 0x4b6   :  { %v1762_v62 = vsub.f32 %v1068_v60, %v4774_v20  ;;  %3052 = vst.msk [vmem:[%s5823_s3 + $0x590] sm:$0xff] %vm2873_vm0, %v3635_v59  ;;  %3636 = vpow2.f32 %v2705_v55 }
 0x4b7   :  { %43 = vperm.xlu0 %3306, %v3949_v7  }
 0x4b8   :  { %v2018_v0 = vmul.f32 %v1762_v62, %v1762_v62 }
 0x4ba   :  { %v2274_v21 = vsub.f32 0.0, %v2018_v0 }
 0x4bb   :  { %3292 = vset.pattern.permute.xlu1 %v4076_v26  ;;  %3293 = vset.pattern.permute.xlu2 %v3998_v17 }
 0x4bc   :  { %v3637_v23 = vpop.eup %3636  ;;  %v2699_v24 = vmul.f32 1.442695, %v2274_v21  ;;  %v213_v21 = vpop.permute.xlu0 %212 }
 0x4bd   :  { %3046 = vst.msk [vmem:[%s5823_s3 + $0x560] sm:$0xff] %vm2873_vm0, %v3637_v23  ;;  %v1104_v27 = vpop.permute.xlu2 %1103  ;;  %v1621_v22 = vsub.f32 %v213_v21, %v4774_v20 }
 0x4be   :  { %3638 = vpow2.f32 %v2699_v24  ;;  %v1768_v30 = vsub.f32 %v1104_v27, %v4774_v20 }
 0x4bf   :  { %3640 = vpow2.f32 %v2407_v25  ;;  %v1877_v24 = vmul.f32 %v1621_v22, %v1621_v22  ;;  %334 = vperm.xlu0 %3306, %v4201_v45  }
 0x4c0   :  { %v2024_v31 = vmul.f32 %v1768_v30, %v1768_v30 }
 0x4c1   :  { %v2133_v27 = vsub.f32 0.0, %v1877_v24  ;;  %v5149_v24 = vld [vmem:[%s5822_s2] ss:$0 sm:$0xff] }
 0x4c2   :  { %v2280_v33 = vsub.f32 0.0, %v2024_v31 }
 0x4c3   :  { %1188 = vperm.xlu1 %3292, %v4893_v36   ;;  %1194 = vperm.xlu2 %3293, %v4893_v36   ;;  %v2417_v31 = vmul.f32 1.442695, %v2133_v27 }
 0x4c4   :  { %v3639_v34 = vpop.eup %3638  ;;  %v2711_v37 = vmul.f32 1.442695, %v2280_v33 }
 0x4c5   :  { %v3641_v39 = vpop.eup %3640  ;;  %3043 = vst.msk [vmem:[%s5823_s3 + $0x548] sm:$0xff] %vm2873_vm0, %v3639_v34  ;;  %v1080_v40 = vpop.permute.xlu1 %1079 }
 0x4c6   :  { %v1764_v4 = vsub.f32 %v1080_v40, %v4774_v20  ;;  %2897 = vst.msk [vmem:[%s5823_s3 + $0xb8] sm:$0xff] %vm2873_vm0, %v3641_v39  ;;  %3642 = vpow2.f32 %v2711_v37  ;;  %v698_v34 = vpop.permute.xlu0 %697 }
 0x4c7   :  { %3644 = vpow2.f32 %v2567_v54  ;;  %v1701_v48 = vsub.f32 %v698_v34, %v4774_v20  ;;  %819 = vperm.xlu0 %3306, %v4676_v42  }
 0x4c8   :  { %v2020_v49 = vmul.f32 %v1764_v4, %v1764_v4 }
 0x4ca   :  { %v2276_v16 = vsub.f32 0.0, %v2020_v49 }
 0x4cb   :  { %3294 = vset.pattern.permute.xlu1 %v4001_v18  ;;  %3295 = vset.pattern.permute.xlu2 %v3928_v1 }
 0x4cc   :  { %v3643_v56 = vpop.eup %3642  ;;  %v2703_v57 = vmul.f32 1.442695, %v2276_v16  ;;  %v1957_v16 = vmul.f32 %v1701_v48, %v1701_v48 }
 0x4cd   :  { %3049 = vst.msk [vmem:[%s5823_s3 + $0x578] sm:$0xff] %vm2873_vm0, %v3643_v56  ;;  %v1117_v55 = vpop.permute.xlu2 %1116  ;;  %v3645_v62 = vpop.eup %3644 }
 0x4ce   :  { %3646 = vpow2.f32 %v2703_v57  ;;  %v1770_v59 = vsub.f32 %v1117_v55, %v4774_v20  ;;  %2977 = vst.msk [vmem:[%s5823_s3 + $0x338] sm:$0xff] %vm2873_vm0, %v3645_v62  ;;  %v1183_v49 = vpop.permute.xlu0 %1182  ;;  %v2213_v56 = vsub.f32 0.0, %v1957_v16 }
 0x4cf   :  { %3648 = vpow2.f32 %v2727_v58  ;;  %v1781_v52 = vsub.f32 %v1183_v49, %v4774_v20 }
 0x4d0   :  { %v2026_v60 = vmul.f32 %v1770_v59, %v1770_v59  ;;  %v2577_v55 = vmul.f32 1.442695, %v2213_v56 }
 0x4d1   :  { %v2037_v54 = vmul.f32 %v1781_v52, %v1781_v52 }
 0x4d2   :  { %v2282_v61 = vsub.f32 0.0, %v2026_v60 }
 0x4d3   :  { %1200 = vperm.xlu1 %3294, %v4893_v36   ;;  %1207 = vperm.xlu2 %3295, %v5000_v50   ;;  %v2293_v58 = vsub.f32 0.0, %v2037_v54 }
 0x4d4   :  { %v3647_v63 = vpop.eup %3646  ;;  %v2715_v32 = vmul.f32 1.442695, %v2282_v61 }
 0x4d5   :  { %v3649_v0 = vpop.eup %3648  ;;  %3045 = vst.msk [vmem:[%s5823_s3 + $0x558] sm:$0xff] %vm2873_vm0, %v3647_v63  ;;  %v1098_v5 = vpop.permute.xlu1 %1097  ;;  %v2737_v61 = vmul.f32 1.442695, %v2293_v58 }
 0x4d6   :  { %v1767_v36 = vsub.f32 %v1098_v5, %v4774_v20  ;;  %3057 = vst.msk [vmem:[%s5823_s3 + $0x5b8] sm:$0xff] %vm2873_vm0, %v3649_v0  ;;  %3650 = vpow2.f32 %v2715_v32  ;;  %v50_v32 = vpop.permute.xlu0 %49 }
 0x4d8   :  { %v2023_v23 = vmul.f32 %v1767_v36, %v1767_v36 }
 0x4da   :  { %v2279_v25 = vsub.f32 0.0, %v2023_v23 }
 0x4db   :  { %3297 = vset.pattern.permute.xlu1 %v3931_v2  ;;  %3298 = vset.pattern.permute.xlu2 %v3954_v8 }
 0x4dc   :  { %v3651_v29 = vpop.eup %3650  ;;  %v2709_v30 = vmul.f32 1.442695, %v2279_v25  ;;  %v1594_v25 = vsub.f32 %v50_v32, %v5149_v24 }
 0x4dd   :  { %3051 = vst.msk [vmem:[%s5823_s3 + $0x588] sm:$0xff] %vm2873_vm0, %v3651_v29  ;;  %v1135_v33 = vpop.permute.xlu2 %1134 }
 0x4de   :  { %3652 = vpow2.f32 %v2709_v30  ;;  %v1773_v37 = vsub.f32 %v1135_v33, %v4774_v20  ;;  %v244_v29 = vpop.permute.xlu0 %243  ;;  %v1850_v30 = vmul.f32 %v1594_v25, %v1594_v25 }
 0x4df   :  { %3654 = vpow2.f32 %v2417_v31  ;;  %v1626_v31 = vsub.f32 %v244_v29, %v5149_v24 }
 0x4e0   :  { %v2029_v39 = vmul.f32 %v1773_v37, %v1773_v37  ;;  %v2106_v34 = vsub.f32 0.0, %v1850_v30 }
 0x4e1   :  { %v1882_v37 = vmul.f32 %v1626_v31, %v1626_v31 }
 0x4e2   :  { %v2285_v40 = vsub.f32 0.0, %v2029_v39  ;;  %v5159_v39 = vperm.slane %v4667_v38, 5 }
 0x4e3   :  { %1219 = vperm.xlu1 %3297, %v5000_v50   ;;  %1225 = vperm.xlu2 %3298, %v5000_v50  }
 0x4e4   :  { %v3653_v41 = vpop.eup %3652  ;;  %v2721_v44 = vmul.f32 1.442695, %v2285_v40  ;;  %1304 = vperm.xlu0 %3306, %v5159_v39  }
 0x4e5   :  { %v3655_v4 = vpop.eup %3654  ;;  %3048 = vst.msk [vmem:[%s5823_s3 + $0x570] sm:$0xff] %vm2873_vm0, %v3653_v41  ;;  %v1111_v47 = vpop.permute.xlu1 %1110  ;;  %v2363_v41 = vmul.f32 1.442695, %v2106_v34 }
 0x4e6   :  { %v1769_v51 = vsub.f32 %v1111_v47, %v4774_v20  ;;  %2902 = vst.msk [vmem:[%s5823_s3 + $0xe0] sm:$0xff] %vm2873_vm0, %v3655_v4  ;;  %3656 = vpow2.f32 %v2721_v44  ;;  %v2138_v44 = vsub.f32 0.0, %v1882_v37  ;;  %v729_v52 = vpop.permute.xlu0 %728 }
 0x4e7   :  { %3658 = vpow2.f32 %v2577_v55 }
 0x4e8   :  { %v2025_v53 = vmul.f32 %v1769_v51, %v1769_v51  ;;  %v2427_v48 = vmul.f32 1.442695, %v2138_v44 }
 0x4ea   :  { %v2281_v57 = vsub.f32 0.0, %v2025_v53 }
 0x4eb   :  { %3299 = vset.pattern.permute.xlu1 %v3934_v3  ;;  %3300 = vset.pattern.permute.xlu2 %v3957_v9 }
 0x4ec   :  { %v3657_v59 = vpop.eup %3656  ;;  %v2713_v60 = vmul.f32 1.442695, %v2281_v57  ;;  %3311 = vset.pattern.permute.xlu0 %v3957_v9 }
 0x4ed   :  { %3054 = vst.msk [vmem:[%s5823_s3 + $0x5a0] sm:$0xff] %vm2873_vm0, %v3657_v59  ;;  %v1147_v62 = vpop.permute.xlu2 %1146  ;;  %v3659_v21 = vpop.eup %3658  ;;  %v1706_v59 = vsub.f32 %v729_v52, %v5149_v24 }
 0x4ee   :  { %3660 = vpow2.f32 %v2713_v60  ;;  %v1775_v63 = vsub.f32 %v1147_v62, %v4774_v20  ;;  %2982 = vst.msk [vmem:[%s5823_s3 + $0x360] sm:$0xff] %vm2873_vm0, %v3659_v21 }
 0x4ef   :  { %3662 = vpow2.f32 %v2737_v61  ;;  %v1214_v61 = vpop.permute.xlu0 %1213  ;;  %v1962_v62 = vmul.f32 %v1706_v59, %v1706_v59 }
 0x4f0   :  { %v2031_v0 = vmul.f32 %v1775_v63, %v1775_v63  ;;  %v1786_v63 = vsub.f32 %v1214_v61, %v5149_v24 }
 0x4f2   :  { %v2287_v5 = vsub.f32 0.0, %v2031_v0  ;;  %v2218_v0 = vsub.f32 0.0, %v1962_v62 }
 0x4f3   :  { %1231 = vperm.xlu1 %3299, %v5000_v50   ;;  %1237 = vperm.xlu2 %3300, %v5000_v50  }
 0x4f4   :  { %v3661_v36 = vpop.eup %3660  ;;  %v2725_v22 = vmul.f32 1.442695, %v2287_v5  ;;  %v2042_v5 = vmul.f32 %v1786_v63, %v1786_v63  ;;  %364 = vperm.xlu0 %3311, %v4201_v45  }
 0x4f5   :  { %v3663_v23 = vpop.eup %3662  ;;  %3050 = vst.msk [vmem:[%s5823_s3 + $0x580] sm:$0xff] %vm2873_vm0, %v3661_v36  ;;  %v1129_v20 = vpop.permute.xlu1 %1128  ;;  %v2587_v36 = vmul.f32 1.442695, %v2218_v0 }
 0x4f6   :  { %v1772_v27 = vsub.f32 %v1129_v20, %v5149_v24  ;;  %3062 = vst.msk [vmem:[%s5823_s3 + $0x5e0] sm:$0xff] %vm2873_vm0, %v3663_v23  ;;  %3664 = vpow2.f32 %v2725_v22  ;;  %v2298_v22 = vsub.f32 0.0, %v2042_v5 }
 0x4f7   :  { %3666 = vpow2.f32 %v2363_v41  ;;  %v274_v52 = vpop.permute.xlu0 %273 }
 0x4f8   :  { %v2028_v33 = vmul.f32 %v1772_v27, %v1772_v27  ;;  %v2747_v25 = vmul.f32 1.442695, %v2298_v22 }
 0x4fa   :  { %v2284_v40 = vsub.f32 0.0, %v2028_v33 }
 0x4fb   :  { %3302 = vset.pattern.permute.xlu1 %v3967_v11  ;;  %3303 = vset.pattern.permute.xlu2 %v4045_v46 }
 0x4fc   :  { %v3665_v4 = vpop.eup %3664  ;;  %v2719_v47 = vmul.f32 1.442695, %v2284_v40  ;;  %849 = vperm.xlu0 %3311, %v4676_v42  }
 0x4fd   :  { %3056 = vst.msk [vmem:[%s5823_s3 + $0x5b0] sm:$0xff] %vm2873_vm0, %v3665_v4  ;;  %v1165_v49 = vpop.permute.xlu2 %1164  ;;  %v3667_v54 = vpop.eup %3666 }
 0x4fe   :  { %3668 = vpow2.f32 %v2719_v47  ;;  %v1778_v51 = vsub.f32 %v1165_v49, %v5149_v24  ;;  %2875 = vst.msk [vmem:[%s5823_s3 + $0x8] sm:$0xff] %vm2873_vm0, %v3667_v54 }
 0x4ff   :  { %3670 = vpow2.f32 %v2427_v48  ;;  %v759_v59 = vpop.permute.xlu0 %758 }
 0x500   :  { %v2034_v16 = vmul.f32 %v1778_v51, %v1778_v51  ;;  %v1711_v61 = vsub.f32 %v759_v59, %v5149_v24 }
 0x502   :  { %v2290_v53 = vsub.f32 0.0, %v2034_v16 }
 0x503   :  { %1249 = vperm.xlu1 %3302, %v5000_v50   ;;  %1255 = vperm.xlu2 %3303, %v5000_v50  }
 0x504   :  { %v3669_v56 = vpop.eup %3668  ;;  %v2731_v57 = vmul.f32 1.442695, %v2290_v53  ;;  %1334 = vperm.xlu0 %3311, %v5159_v39  }
 0x505   :  { %v3671_v58 = vpop.eup %3670  ;;  %3053 = vst.msk [vmem:[%s5823_s3 + $0x598] sm:$0xff] %vm2873_vm0, %v3669_v56  ;;  %v1141_v55 = vpop.permute.xlu1 %1140 }
 0x506   :  { %v1774_v60 = vsub.f32 %v1141_v55, %v5149_v24  ;;  %2907 = vst.msk [vmem:[%s5823_s3 + $0x108] sm:$0xff] %vm2873_vm0, %v3671_v58  ;;  %3672 = vpow2.f32 %v2731_v57  ;;  %v1631_v55 = vsub.f32 %v274_v52, %v5149_v24 }
 0x507   :  { %3674 = vpow2.f32 %v2587_v36 }
 0x508   :  { %v2030_v32 = vmul.f32 %v1774_v60, %v1774_v60  ;;  %v1887_v62 = vmul.f32 %v1631_v55, %v1631_v55 }
 0x50a   :  { %v2286_v21 = vsub.f32 0.0, %v2030_v32  ;;  %v1967_v32 = vmul.f32 %v1711_v61, %v1711_v61  ;;  %v2143_v0 = vsub.f32 0.0, %v1887_v62 }
 0x50b   :  { %3304 = vset.pattern.permute.xlu1 %v3974_v12  ;;  %3305 = vset.pattern.permute.xlu2 %v3977_v13 }
 0x50c   :  { %v3673_v23 = vpop.eup %3672  ;;  %v2723_v20 = vmul.f32 1.442695, %v2286_v21  ;;  %3316 = vset.pattern.permute.xlu0 %v3977_v13  ;;  %v2223_v21 = vsub.f32 0.0, %v1967_v32  ;;  %v2437_v36 = vmul.f32 1.442695, %v2143_v0 }
 0x50d   :  { %3059 = vst.msk [vmem:[%s5823_s3 + $0x5c8] sm:$0xff] %vm2873_vm0, %v3673_v23  ;;  %v1177_v27 = vpop.permute.xlu2 %1176  ;;  %v3675_v33 = vpop.eup %3674 }
 0x50e   :  { %3676 = vpow2.f32 %v2723_v20  ;;  %v1780_v29 = vsub.f32 %v1177_v27, %v5149_v24  ;;  %2987 = vst.msk [vmem:[%s5823_s3 + $0x388] sm:$0xff] %vm2873_vm0, %v3675_v33  ;;  %v2597_v20 = vmul.f32 1.442695, %v2223_v21  ;;  %v1244_v27 = vpop.permute.xlu0 %1243 }
 0x50f   :  { %3678 = vpow2.f32 %v2747_v25 }
 0x510   :  { %v2036_v30 = vmul.f32 %v1780_v29, %v1780_v29 }
 0x512   :  { %v2292_v31 = vsub.f32 0.0, %v2036_v30  ;;  %v1791_v30 = vsub.f32 %v1244_v27, %v5149_v24 }
 0x513   :  { %1261 = vperm.xlu1 %3304, %v5000_v50   ;;  %1267 = vperm.xlu2 %3305, %v5000_v50  }
 0x514   :  { %v3677_v34 = vpop.eup %3676  ;;  %v2735_v37 = vmul.f32 1.442695, %v2292_v31  ;;  %394 = vperm.xlu0 %3316, %v4201_v45   ;;  %v2047_v33 = vmul.f32 %v1791_v30, %v1791_v30 }
 0x515   :  { %v3679_v40 = vpop.eup %3678  ;;  %3055 = vst.msk [vmem:[%s5823_s3 + $0x5a8] sm:$0xff] %vm2873_vm0, %v3677_v34  ;;  %v1159_v41 = vpop.permute.xlu1 %1158 }
 0x516   :  { %v1777_v44 = vsub.f32 %v1159_v41, %v5149_v24  ;;  %3067 = vst.msk [vmem:[%s5823_s3 + $0x608] sm:$0xff] %vm2873_vm0, %v3679_v40  ;;  %3680 = vpow2.f32 %v2735_v37  ;;  %v2303_v37 = vsub.f32 0.0, %v2047_v33 }
 0x518   :  { %v2033_v4 = vmul.f32 %v1777_v44, %v1777_v44 }
 0x51a   :  { %v2289_v47 = vsub.f32 0.0, %v2033_v4  ;;  %v2757_v4 = vmul.f32 1.442695, %v2303_v37 }
 0x51b   :  { %3307 = vset.pattern.permute.xlu1 %v3987_v15  ;;  %3308 = vset.pattern.permute.xlu2 %v4076_v26 }
 0x51c   :  { %v3681_v48 = vpop.eup %3680  ;;  %v2729_v49 = vmul.f32 1.442695, %v2289_v47  ;;  %879 = vperm.xlu0 %3316, %v4676_v42  }
 0x51d   :  { %3061 = vst.msk [vmem:[%s5823_s3 + $0x5d8] sm:$0xff] %vm2873_vm0, %v3681_v48  ;;  %v1195_v51 = vpop.permute.xlu2 %1194 }
 0x51e   :  { %3682 = vpow2.f32 %v2729_v49  ;;  %v1783_v16 = vsub.f32 %v1195_v51, %v5149_v24 }
 0x520   :  { %v2039_v53 = vmul.f32 %v1783_v16, %v1783_v16 }
 0x522   :  { %v2295_v54 = vsub.f32 0.0, %v2039_v53 }
 0x523   :  { %1279 = vperm.xlu1 %3307, %v5000_v50   ;;  %1285 = vperm.xlu2 %3308, %v5000_v50  }
 0x524   :  { %v3683_v56 = vpop.eup %3682  ;;  %v2741_v57 = vmul.f32 1.442695, %v2295_v54  ;;  %1364 = vperm.xlu0 %3316, %v5159_v39  }
 0x525   :  { %3058 = vst.msk [vmem:[%s5823_s3 + $0x5c0] sm:$0xff] %vm2873_vm0, %v3683_v56  ;;  %v1171_v58 = vpop.permute.xlu1 %1170  ;;  %v304_v56 = vpop.permute.xlu0 %303 }
 0x526   :  { %v1779_v60 = vsub.f32 %v1171_v58, %v5149_v24  ;;  %3684 = vpow2.f32 %v2741_v57  ;;  %v1636_v62 = vsub.f32 %v304_v56, %v5149_v24 }
 0x527   :  { %3686 = vpow2.f32 %v2437_v36 }
 0x528   :  { %v2035_v63 = vmul.f32 %v1779_v60, %v1779_v60 }
 0x52a   :  { %v2291_v5 = vsub.f32 0.0, %v2035_v63 }
 0x52b   :  { %3309 = vset.pattern.permute.xlu1 %v3998_v17  ;;  %3310 = vset.pattern.permute.xlu2 %v4001_v18 }
 0x52c   :  { %v3685_v22 = vpop.eup %3684  ;;  %v2733_v23 = vmul.f32 1.442695, %v2291_v5  ;;  %3321 = vset.pattern.permute.xlu0 %v4001_v18  ;;  %v1892_v5 = vmul.f32 %v1636_v62, %v1636_v62 }
 0x52d   :  { %3064 = vst.msk [vmem:[%s5823_s3 + $0x5f0] sm:$0xff] %vm2873_vm0, %v3685_v22  ;;  %v1208_v25 = vpop.permute.xlu2 %1207  ;;  %v3687_v40 = vpop.eup %3686 }
 0x52e   :  { %3688 = vpow2.f32 %v2733_v23  ;;  %v1785_v29 = vsub.f32 %v1208_v25, %v5149_v24  ;;  %2912 = vst.msk [vmem:[%s5823_s3 + $0x130] sm:$0xff] %vm2873_vm0, %v3687_v40  ;;  %v789_v63 = vpop.permute.xlu0 %788  ;;  %v2148_v22 = vsub.f32 0.0, %v1892_v5 }
 0x52f   :  { %3690 = vpow2.f32 %v2597_v20  ;;  %v1716_v0 = vsub.f32 %v789_v63, %v5149_v24 }
 0x530   :  { %v2041_v31 = vmul.f32 %v1785_v29, %v1785_v29  ;;  %v2447_v25 = vmul.f32 1.442695, %v2148_v22 }
 0x531   :  { %v1972_v36 = vmul.f32 %v1716_v0, %v1716_v0 }
 0x532   :  { %v2297_v34 = vsub.f32 0.0, %v2041_v31 }
 0x533   :  { %1291 = vperm.xlu1 %3309, %v5000_v50   ;;  %1297 = vperm.xlu2 %3310, %v5000_v50   ;;  %v2228_v20 = vsub.f32 0.0, %v1972_v36 }
 0x534   :  { %v3689_v41 = vpop.eup %3688  ;;  %v2745_v44 = vmul.f32 1.442695, %v2297_v34  ;;  %424 = vperm.xlu0 %3321, %v4201_v45  }
 0x535   :  { %v3691_v47 = vpop.eup %3690  ;;  %3060 = vst.msk [vmem:[%s5823_s3 + $0x5d0] sm:$0xff] %vm2873_vm0, %v3689_v41  ;;  %v1189_v48 = vpop.permute.xlu1 %1188  ;;  %v2607_v30 = vmul.f32 1.442695, %v2228_v20 }
 0x536   :  { %v1782_v49 = vsub.f32 %v1189_v48, %v5149_v24  ;;  %2992 = vst.msk [vmem:[%s5823_s3 + $0x3b0] sm:$0xff] %vm2873_vm0, %v3691_v47  ;;  %3692 = vpow2.f32 %v2745_v44  ;;  %v1274_v33 = vpop.permute.xlu0 %1273 }
 0x537   :  { %3694 = vpow2.f32 %v2757_v4  ;;  %v1796_v37 = vsub.f32 %v1274_v33, %v5149_v24 }
 0x538   :  { %v2038_v50 = vmul.f32 %v1782_v49, %v1782_v49 }
 0x539   :  { %v2052_v41 = vmul.f32 %v1796_v37, %v1796_v37 }
 0x53a   :  { %v2294_v51 = vsub.f32 0.0, %v2038_v50 }
 0x53b   :  { %3312 = vset.pattern.permute.xlu1 %v4008_v19  ;;  %3313 = vset.pattern.permute.xlu2 %v3931_v2  ;;  %v2308_v4 = vsub.f32 0.0, %v2052_v41 }
 0x53c   :  { %v3693_v52 = vpop.eup %3692  ;;  %v2739_v16 = vmul.f32 1.442695, %v2294_v51  ;;  %909 = vperm.xlu0 %3321, %v4676_v42  }
 0x53d   :  { %v3695_v53 = vpop.eup %3694  ;;  %3066 = vst.msk [vmem:[%s5823_s3 + $0x600] sm:$0xff] %vm2873_vm0, %v3693_v52  ;;  %v1226_v54 = vpop.permute.xlu2 %1225  ;;  %v2767_v49 = vmul.f32 1.442695, %v2308_v4 }
 0x53e   :  { %3696 = vpow2.f32 %v2739_v16  ;;  %3072 = vst.msk [vmem:[%s5823_s3 + $0x630] sm:$0xff] %vm2873_vm0, %v3695_v53  ;;  %v1788_v57 = vsub.f32 %v1226_v54, %v5149_v24  ;;  %v44_v16 = vpop.permute.xlu0 %43 }
 0x53f   :  { %v1593_v53 = vsub.f32 %v44_v16, %v5149_v24 }
 0x540   :  { %v2044_v58 = vmul.f32 %v1788_v57, %v1788_v57 }
 0x541   :  { %v1849_v54 = vmul.f32 %v1593_v53, %v1593_v53 }
 0x542   :  { %v2300_v55 = vsub.f32 0.0, %v2044_v58 }
 0x543   :  { %1310 = vperm.xlu1 %3312, %v5159_v39   ;;  %1316 = vperm.xlu2 %3313, %v5159_v39   ;;  %v2105_v57 = vsub.f32 0.0, %v1849_v54 }
 0x544   :  { %v3697_v59 = vpop.eup %3696  ;;  %v2751_v60 = vmul.f32 1.442695, %v2300_v55  ;;  %1394 = vperm.xlu0 %3321, %v5159_v39  }
 0x545   :  { %3063 = vst.msk [vmem:[%s5823_s3 + $0x5e8] sm:$0xff] %vm2873_vm0, %v3697_v59  ;;  %v1201_v61 = vpop.permute.xlu1 %1200 }
 0x546   :  { %v1784_v32 = vsub.f32 %v1201_v61, %v5149_v24  ;;  %3698 = vpow2.f32 %v2751_v60  ;;  %v2361_v60 = vmul.f32 1.442695, %v2105_v57  ;;  %v335_v63 = vpop.permute.xlu0 %334 }
 0x547   :  { %3700 = vpow2.f32 %v2447_v25 }
 0x548   :  { %v2040_v21 = vmul.f32 %v1784_v32, %v1784_v32 }
 0x54a   :  { %v2296_v23 = vsub.f32 0.0, %v2040_v21 }
 0x54b   :  { %3314 = vset.pattern.permute.xlu1 %v3954_v8  ;;  %3315 = vset.pattern.permute.xlu2 %v3934_v3 }
 0x54c   :  { %v3699_v27 = vpop.eup %3698  ;;  %v2743_v29 = vmul.f32 1.442695, %v2296_v23  ;;  %3326 = vset.pattern.permute.xlu0 %v3934_v3  ;;  %v1641_v23 = vsub.f32 %v335_v63, %v5149_v24 }
 0x54d   :  { %3069 = vst.msk [vmem:[%s5823_s3 + $0x618] sm:$0xff] %vm2873_vm0, %v3699_v27  ;;  %v1238_v31 = vpop.permute.xlu2 %1237  ;;  %v3701_v47 = vpop.eup %3700 }
 0x54e   :  { %3702 = vpow2.f32 %v2743_v29  ;;  %v1790_v34 = vsub.f32 %v1238_v31, %v5149_v24  ;;  %2917 = vst.msk [vmem:[%s5823_s3 + $0x158] sm:$0xff] %vm2873_vm0, %v3701_v47  ;;  %v820_v25 = vpop.permute.xlu0 %819  ;;  %v1897_v27 = vmul.f32 %v1641_v23, %v1641_v23 }
 0x54f   :  { %3704 = vpow2.f32 %v2607_v30  ;;  %v1721_v29 = vsub.f32 %v820_v25, %v5149_v24 }
 0x550   :  { %v2046_v40 = vmul.f32 %v1790_v34, %v1790_v34  ;;  %v2153_v31 = vsub.f32 0.0, %v1897_v27 }
 0x551   :  { %v1977_v33 = vmul.f32 %v1721_v29, %v1721_v29 }
 0x552   :  { %v2302_v44 = vsub.f32 0.0, %v2046_v40  ;;  %v2457_v37 = vmul.f32 1.442695, %v2153_v31 }
 0x553   :  { %1322 = vperm.xlu1 %3314, %v5159_v39   ;;  %1328 = vperm.xlu2 %3315, %v5159_v39   ;;  %v2233_v40 = vsub.f32 0.0, %v1977_v33 }
 0x554   :  { %v3703_v45 = vpop.eup %3702  ;;  %v2755_v48 = vmul.f32 1.442695, %v2302_v44  ;;  %455 = vperm.xlu0 %3326, %v4288_v35  }
 0x555   :  { %v3705_v50 = vpop.eup %3704  ;;  %3065 = vst.msk [vmem:[%s5823_s3 + $0x5f8] sm:$0xff] %vm2873_vm0, %v3703_v45  ;;  %v1220_v51 = vpop.permute.xlu1 %1219  ;;  %v2617_v4 = vmul.f32 1.442695, %v2233_v40 }
 0x556   :  { %v1787_v52 = vsub.f32 %v1220_v51, %v5149_v24  ;;  %2997 = vst.msk [vmem:[%s5823_s3 + $0x3d8] sm:$0xff] %vm2873_vm0, %v3705_v50  ;;  %3706 = vpow2.f32 %v2755_v48  ;;  %v1305_v48 = vpop.permute.xlu0 %1304 }
 0x557   :  { %3708 = vpow2.f32 %v2767_v49  ;;  %v1801_v49 = vsub.f32 %v1305_v48, %v5149_v24 }
 0x558   :  { %v2043_v42 = vmul.f32 %v1787_v52, %v1787_v52 }
 0x559   :  { %v2057_v51 = vmul.f32 %v1801_v49, %v1801_v49 }
 0x55a   :  { %v2299_v56 = vsub.f32 0.0, %v2043_v42 }
 0x55b   :  { %3317 = vset.pattern.permute.xlu1 %v3964_v10  ;;  %3318 = vset.pattern.permute.xlu2 %v3967_v11  ;;  %v2313_v53 = vsub.f32 0.0, %v2057_v51 }
 0x55c   :  { %v3707_v58 = vpop.eup %3706  ;;  %v2749_v55 = vmul.f32 1.442695, %v2299_v56  ;;  %940 = vperm.xlu0 %3326, %v4763_v6  }
 0x55d   :  { %v3709_v59 = vpop.eup %3708  ;;  %3071 = vst.msk [vmem:[%s5823_s3 + $0x628] sm:$0xff] %vm2873_vm0, %v3707_v58  ;;  %v1256_v61 = vpop.permute.xlu2 %1255  ;;  %v2777_v58 = vmul.f32 1.442695, %v2313_v53 }
 0x55e   :  { %3710 = vpow2.f32 %v2749_v55  ;;  %3077 = vst.msk [vmem:[%s5823_s3 + $0x658] sm:$0xff] %vm2873_vm0, %v3709_v59  ;;  %v1793_v62 = vsub.f32 %v1256_v61, %v5149_v24 }
 0x55f   :  { %3712 = vpow2.f32 %v2361_v60  ;;  %v5354_v60 = vperm.slane %v4667_v38, 6 }
 0x560   :  { %v2049_v32 = vmul.f32 %v1793_v62, %v1793_v62 }
 0x562   :  { %v2305_v0 = vsub.f32 0.0, %v2049_v32 }
 0x563   :  { %1340 = vperm.xlu1 %3317, %v5159_v39   ;;  %1346 = vperm.xlu2 %3318, %v5159_v39  }
 0x564   :  { %v3711_v5 = vpop.eup %3710  ;;  %v2761_v21 = vmul.f32 1.442695, %v2305_v0  ;;  %1425 = vperm.xlu0 %3326, %v5354_v60  }
 0x565   :  { %v3713_v36 = vpop.eup %3712  ;;  %3068 = vst.msk [vmem:[%s5823_s3 + $0x610] sm:$0xff] %vm2873_vm0, %v3711_v5  ;;  %v1232_v22 = vpop.permute.xlu1 %1231 }
 0x566   :  { %v1789_v20 = vsub.f32 %v1232_v22, %v5149_v24  ;;  %2874 = vst.msk [vmem:[%s5823_s3] sm:$0xff] %vm2873_vm0, %v3713_v36  ;;  %3714 = vpow2.f32 %v2761_v21  ;;  %v365_v25 = vpop.permute.xlu0 %364 }
 0x567   :  { %3716 = vpow2.f32 %v2457_v37  ;;  %v1646_v29 = vsub.f32 %v365_v25, %v5149_v24 }
 0x568   :  { %v2045_v30 = vmul.f32 %v1789_v20, %v1789_v20 }
 0x569   :  { %v1902_v31 = vmul.f32 %v1646_v29, %v1646_v29 }
 0x56a   :  { %v2301_v34 = vsub.f32 0.0, %v2045_v30 }
 0x56b   :  { %3319 = vset.pattern.permute.xlu1 %v4045_v46  ;;  %3320 = vset.pattern.permute.xlu2 %v3974_v12 }
 0x56c   :  { %v3715_v41 = vpop.eup %3714  ;;  %v2753_v44 = vmul.f32 1.442695, %v2301_v34  ;;  %3331 = vset.pattern.permute.xlu0 %v3974_v12  ;;  %v2158_v34 = vsub.f32 0.0, %v1902_v31 }
 0x56d   :  { %3074 = vst.msk [vmem:[%s5823_s3 + $0x640] sm:$0xff] %vm2873_vm0, %v3715_v41  ;;  %v1268_v47 = vpop.permute.xlu2 %1267  ;;  %v3717_v16 = vpop.eup %3716 }
 0x56e   :  { %3718 = vpow2.f32 %v2753_v44  ;;  %v1795_v45 = vsub.f32 %v1268_v47, %v5149_v24  ;;  %2922 = vst.msk [vmem:[%s5823_s3 + $0x180] sm:$0xff] %vm2873_vm0, %v3717_v16  ;;  %v2467_v41 = vmul.f32 1.442695, %v2158_v34 }
 0x56f   :  { %3720 = vpow2.f32 %v2617_v4  ;;  %v850_v4 = vpop.permute.xlu0 %849 }
 0x570   :  { %v2051_v50 = vmul.f32 %v1795_v45, %v1795_v45  ;;  %v1726_v16 = vsub.f32 %v850_v4, %v5149_v24 }
 0x572   :  { %v2307_v52 = vsub.f32 0.0, %v2051_v50 }
 0x573   :  { %1352 = vperm.xlu1 %3319, %v5159_v39   ;;  %1358 = vperm.xlu2 %3320, %v5159_v39  }
 0x574   :  { %v3719_v42 = vpop.eup %3718  ;;  %v2765_v54 = vmul.f32 1.442695, %v2307_v52  ;;  %485 = vperm.xlu0 %3331, %v4288_v35  }
 0x575   :  { %v3721_v56 = vpop.eup %3720  ;;  %3070 = vst.msk [vmem:[%s5823_s3 + $0x620] sm:$0xff] %vm2873_vm0, %v3719_v42  ;;  %v1250_v57 = vpop.permute.xlu1 %1249 }
 0x576   :  { %v1792_v55 = vsub.f32 %v1250_v57, %v5149_v24  ;;  %3002 = vst.msk [vmem:[%s5823_s3 + $0x400] sm:$0xff] %vm2873_vm0, %v3721_v56  ;;  %3722 = vpow2.f32 %v2765_v54  ;;  %v1982_v54 = vmul.f32 %v1726_v16, %v1726_v16 }
 0x577   :  { %3724 = vpow2.f32 %v2777_v58  ;;  %v1335_v53 = vpop.permute.xlu0 %1334 }
 0x578   :  { %v2048_v59 = vmul.f32 %v1792_v55, %v1792_v55  ;;  %v2238_v58 = vsub.f32 0.0, %v1982_v54 }
 0x57a   :  { %v2304_v61 = vsub.f32 0.0, %v2048_v59 }
 0x57b   :  { %3322 = vset.pattern.permute.xlu1 %v3984_v14  ;;  %3323 = vset.pattern.permute.xlu2 %v3987_v15 }
 0x57c   :  { %v3723_v62 = vpop.eup %3722  ;;  %v2759_v63 = vmul.f32 1.442695, %v2304_v61  ;;  %970 = vperm.xlu0 %3331, %v4763_v6   ;;  %v2627_v61 = vmul.f32 1.442695, %v2238_v58 }
 0x57d   :  { %v3725_v32 = vpop.eup %3724  ;;  %3076 = vst.msk [vmem:[%s5823_s3 + $0x650] sm:$0xff] %vm2873_vm0, %v3723_v62  ;;  %v1286_v0 = vpop.permute.xlu2 %1285 }
 0x57e   :  { %3726 = vpow2.f32 %v2759_v63  ;;  %3082 = vst.msk [vmem:[%s5823_s3 + $0x680] sm:$0xff] %vm2873_vm0, %v3725_v32  ;;  %v1798_v5 = vsub.f32 %v1286_v0, %v5149_v24 }
 0x580   :  { %v2054_v21 = vmul.f32 %v1798_v5, %v1798_v5 }
 0x582   :  { %v2310_v36 = vsub.f32 0.0, %v2054_v21 }
 0x583   :  { %1370 = vperm.xlu1 %3322, %v5159_v39   ;;  %1376 = vperm.xlu2 %3323, %v5159_v39  }
 0x584   :  { %v3727_v22 = vpop.eup %3726  ;;  %v2771_v23 = vmul.f32 1.442695, %v2310_v36  ;;  %1455 = vperm.xlu0 %3331, %v5354_v60  }
 0x585   :  { %3073 = vst.msk [vmem:[%s5823_s3 + $0x638] sm:$0xff] %vm2873_vm0, %v3727_v22  ;;  %v1262_v20 = vpop.permute.xlu1 %1261 }
 0x586   :  { %v1794_v27 = vsub.f32 %v1262_v20, %v5149_v24  ;;  %3728 = vpow2.f32 %v2771_v23  ;;  %v395_v29 = vpop.permute.xlu0 %394 }
 0x587   :  { %v1651_v31 = vsub.f32 %v395_v29, %v5149_v24 }
 0x588   :  { %v2050_v30 = vmul.f32 %v1794_v27, %v1794_v27 }
 0x589   :  { %v1907_v34 = vmul.f32 %v1651_v31, %v1651_v31 }
 0x58a   :  { %v2306_v33 = vsub.f32 0.0, %v2050_v30 }
 0x58b   :  { %3324 = vset.pattern.permute.xlu1 %v4076_v26  ;;  %3325 = vset.pattern.permute.xlu2 %v3998_v17 }
 0x58c   :  { %v3729_v37 = vpop.eup %3728  ;;  %v2763_v40 = vmul.f32 1.442695, %v2306_v33  ;;  %3336 = vset.pattern.permute.xlu0 %v3998_v17 }
 0x58d   :  { %3079 = vst.msk [vmem:[%s5823_s3 + $0x668] sm:$0xff] %vm2873_vm0, %v3729_v37  ;;  %v1298_v44 = vpop.permute.xlu2 %1297 }
 0x58e   :  { %3730 = vpow2.f32 %v2763_v40  ;;  %v1800_v47 = vsub.f32 %v1298_v44, %v5149_v24  ;;  %v2163_v40 = vsub.f32 0.0, %v1907_v34 }
 0x58f   :  { %3732 = vpow2.f32 %v2467_v41 }
 0x590   :  { %v2056_v45 = vmul.f32 %v1800_v47, %v1800_v47  ;;  %v2477_v4 = vmul.f32 1.442695, %v2163_v40 }
 0x592   :  { %v2312_v48 = vsub.f32 0.0, %v2056_v45  ;;  %v880_v45 = vpop.permute.xlu0 %879 }
 0x593   :  { %1382 = vperm.xlu1 %3324, %v5159_v39   ;;  %1388 = vperm.xlu2 %3325, %v5159_v39   ;;  %v1806_v39 = vsub.f32 %v1335_v53, %v5149_v24  ;;  %v1731_v53 = vsub.f32 %v880_v45, %v5149_v24 }
 0x594   :  { %v3731_v49 = vpop.eup %3730  ;;  %v2775_v50 = vmul.f32 1.442695, %v2312_v48  ;;  %515 = vperm.xlu0 %3336, %v4288_v35  }
 0x595   :  { %v3733_v51 = vpop.eup %3732  ;;  %3075 = vst.msk [vmem:[%s5823_s3 + $0x648] sm:$0xff] %vm2873_vm0, %v3731_v49  ;;  %v1280_v52 = vpop.permute.xlu1 %1279  ;;  %v2062_v57 = vmul.f32 %v1806_v39, %v1806_v39  ;;  %v1987_v54 = vmul.f32 %v1731_v53, %v1731_v53 }
 0x596   :  { %v1797_v42 = vsub.f32 %v1280_v52, %v5149_v24  ;;  %2927 = vst.msk [vmem:[%s5823_s3 + $0x1a8] sm:$0xff] %vm2873_vm0, %v3733_v51  ;;  %3734 = vpow2.f32 %v2775_v50 }
 0x597   :  { %v2318_v59 = vsub.f32 0.0, %v2062_v57  ;;  %3736 = vpow2.f32 %v2627_v61  ;;  %v2243_v58 = vsub.f32 0.0, %v1987_v54 }
 0x598   :  { %v2053_v56 = vmul.f32 %v1797_v42, %v1797_v42 }
 0x599   :  { %v2787_v32 = vmul.f32 1.442695, %v2318_v59  ;;  %v2637_v61 = vmul.f32 1.442695, %v2243_v58  ;;  %v5494_v58 = vperm.slane %v4667_v38, 7 }
 0x59a   :  { %v2309_v55 = vsub.f32 0.0, %v2053_v56  ;;  %v1365_v42 = vpop.permute.xlu0 %1364 }
 0x59b   :  { %3327 = vset.pattern.permute.xlu1 %v3928_v1  ;;  %3328 = vset.pattern.permute.xlu2 %v4008_v19 }
 0x59c   :  { %v3735_v62 = vpop.eup %3734  ;;  %v2769_v63 = vmul.f32 1.442695, %v2309_v55  ;;  %1000 = vperm.xlu0 %3336, %v4763_v6   ;;  %v1811_v6 = vsub.f32 %v1365_v42, %v5149_v24 }
 0x59d   :  { %3081 = vst.msk [vmem:[%s5823_s3 + $0x678] sm:$0xff] %vm2873_vm0, %v3735_v62  ;;  %v1317_v0 = vpop.permute.xlu2 %1316  ;;  %v3737_v22 = vpop.eup %3736 }
 0x59e   :  { %3738 = vpow2.f32 %v2769_v63  ;;  %v1803_v5 = vsub.f32 %v1317_v0, %v5149_v24  ;;  %3007 = vst.msk [vmem:[%s5823_s3 + $0x428] sm:$0xff] %vm2873_vm0, %v3737_v22  ;;  %v2067_v57 = vmul.f32 %v1811_v6, %v1811_v6 }
 0x59f   :  { %3740 = vpow2.f32 %v2787_v32 }
 0x5a0   :  { %v2059_v21 = vmul.f32 %v1803_v5, %v1803_v5  ;;  %v2323_v59 = vsub.f32 0.0, %v2067_v57 }
 0x5a2   :  { %v2315_v36 = vsub.f32 0.0, %v2059_v21  ;;  %v2797_v32 = vmul.f32 1.442695, %v2323_v59 }
 0x5a3   :  { %1401 = vperm.xlu1 %3327, %v5354_v60   ;;  %1407 = vperm.xlu2 %3328, %v5354_v60  }
 0x5a4   :  { %v3739_v23 = vpop.eup %3738  ;;  %v2781_v20 = vmul.f32 1.442695, %v2315_v36  ;;  %1485 = vperm.xlu0 %3336, %v5354_v60  }
 0x5a5   :  { %v3741_v25 = vpop.eup %3740  ;;  %3078 = vst.msk [vmem:[%s5823_s3 + $0x660] sm:$0xff] %vm2873_vm0, %v3739_v23  ;;  %v1292_v27 = vpop.permute.xlu1 %1291 }
 0x5a6   :  { %v1799_v30 = vsub.f32 %v1292_v27, %v5149_v24  ;;  %3087 = vst.msk [vmem:[%s5823_s3 + $0x6a8] sm:$0xff] %vm2873_vm0, %v3741_v25  ;;  %3742 = vpow2.f32 %v2781_v20  ;;  %v425_v29 = vpop.permute.xlu0 %424 }
 0x5a7   :  { %v1656_v31 = vsub.f32 %v425_v29, %v5149_v24 }
 0x5a8   :  { %v2055_v33 = vmul.f32 %v1799_v30, %v1799_v30 }
 0x5aa   :  { %v2311_v37 = vsub.f32 0.0, %v2055_v33 }
 0x5ab   :  { %3329 = vset.pattern.permute.xlu1 %v3931_v2  ;;  %3330 = vset.pattern.permute.xlu2 %v3954_v8 }
 0x5ac   :  { %v3743_v41 = vpop.eup %3742  ;;  %v2773_v44 = vmul.f32 1.442695, %v2311_v37  ;;  %3341 = vset.pattern.permute.xlu0 %v3954_v8  ;;  %v1912_v8 = vmul.f32 %v1656_v31, %v1656_v31 }
 0x5ad   :  { %3084 = vst.msk [vmem:[%s5823_s3 + $0x690] sm:$0xff] %vm2873_vm0, %v3743_v41  ;;  %v1329_v47 = vpop.permute.xlu2 %1328 }
 0x5ae   :  { %3744 = vpow2.f32 %v2773_v44  ;;  %v1805_v48 = vsub.f32 %v1329_v47, %v5149_v24  ;;  %v2168_v37 = vsub.f32 0.0, %v1912_v8  ;;  %v910_v47 = vpop.permute.xlu0 %909 }
 0x5af   :  { %3746 = vpow2.f32 %v2477_v4 }
 0x5b0   :  { %v2061_v49 = vmul.f32 %v1805_v48, %v1805_v48  ;;  %v2487_v44 = vmul.f32 1.442695, %v2168_v37 }
 0x5b2   :  { %v2317_v50 = vsub.f32 0.0, %v2061_v49 }
 0x5b3   :  { %1413 = vperm.xlu1 %3329, %v5354_v60   ;;  %1419 = vperm.xlu2 %3330, %v5354_v60  }
 0x5b4   :  { %v3745_v51 = vpop.eup %3744  ;;  %v2785_v52 = vmul.f32 1.442695, %v2317_v50  ;;  %546 = vperm.xlu0 %3341, %v4375_v28  }
 0x5b5   :  { %v3747_v35 = vpop.eup %3746  ;;  %3080 = vst.msk [vmem:[%s5823_s3 + $0x670] sm:$0xff] %vm2873_vm0, %v3745_v51  ;;  %v1311_v16 = vpop.permute.xlu1 %1310 }
 0x5b6   :  { %v1802_v39 = vsub.f32 %v1311_v16, %v5149_v24  ;;  %2932 = vst.msk [vmem:[%s5823_s3 + $0x1d0] sm:$0xff] %vm2873_vm0, %v3747_v35  ;;  %3748 = vpow2.f32 %v2785_v52  ;;  %v1736_v16 = vsub.f32 %v910_v47, %v5149_v24  ;;  %v1395_v53 = vpop.permute.xlu0 %1394 }
 0x5b7   :  { %3750 = vpow2.f32 %v2637_v61 }
 0x5b8   :  { %v2058_v56 = vmul.f32 %v1802_v39, %v1802_v39  ;;  %v1816_v39 = vsub.f32 %v1395_v53, %v5149_v24  ;;  %v1992_v6 = vmul.f32 %v1736_v16, %v1736_v16 }
 0x5ba   :  { %v2314_v55 = vsub.f32 0.0, %v2058_v56  ;;  %v2072_v56 = vmul.f32 %v1816_v39, %v1816_v39  ;;  %v2248_v57 = vsub.f32 0.0, %v1992_v6 }
 0x5bb   :  { %3332 = vset.pattern.permute.xlu1 %v3957_v9  ;;  %3333 = vset.pattern.permute.xlu2 %v3964_v10 }
 0x5bc   :  { %v3749_v62 = vpop.eup %3748  ;;  %v2779_v63 = vmul.f32 1.442695, %v2314_v55  ;;  %1031 = vperm.xlu0 %3341, %v4855_v43   ;;  %v2328_v59 = vsub.f32 0.0, %v2072_v56  ;;  %v2647_v61 = vmul.f32 1.442695, %v2248_v57 }
 0x5bd   :  { %3086 = vst.msk [vmem:[%s5823_s3 + $0x6a0] sm:$0xff] %vm2873_vm0, %v3749_v62  ;;  %v1347_v0 = vpop.permute.xlu2 %1346  ;;  %v3751_v22 = vpop.eup %3750 }
 0x5be   :  { %3752 = vpow2.f32 %v2779_v63  ;;  %v1808_v5 = vsub.f32 %v1347_v0, %v5149_v24  ;;  %3012 = vst.msk [vmem:[%s5823_s3 + $0x450] sm:$0xff] %vm2873_vm0, %v3751_v22 }
 0x5bf   :  { %3754 = vpow2.f32 %v2797_v32  ;;  %v2807_v32 = vmul.f32 1.442695, %v2328_v59 }
 0x5c0   :  { %v2064_v21 = vmul.f32 %v1808_v5, %v1808_v5 }
 0x5c2   :  { %v2320_v36 = vsub.f32 0.0, %v2064_v21 }
 0x5c3   :  { %1431 = vperm.xlu1 %3332, %v5354_v60   ;;  %1437 = vperm.xlu2 %3333, %v5354_v60  }
 0x5c4   :  { %v3753_v23 = vpop.eup %3752  ;;  %v2791_v20 = vmul.f32 1.442695, %v2320_v36  ;;  %1516 = vperm.xlu0 %3341, %v5494_v58  }
 0x5c5   :  { %v3755_v25 = vpop.eup %3754  ;;  %3083 = vst.msk [vmem:[%s5823_s3 + $0x688] sm:$0xff] %vm2873_vm0, %v3753_v23  ;;  %v1323_v27 = vpop.permute.xlu1 %1322 }
 0x5c6   :  { %v1804_v30 = vsub.f32 %v1323_v27, %v5149_v24  ;;  %3092 = vst.msk [vmem:[%s5823_s3 + $0x6d0] sm:$0xff] %vm2873_vm0, %v3755_v25  ;;  %3756 = vpow2.f32 %v2791_v20  ;;  %v456_v25 = vpop.permute.xlu0 %455  ;;  %v5518_v27 = vld [vmem:[%s5822_s2] ss:$0 sm:$0xff] }
 0x5c8   :  { %v2060_v33 = vmul.f32 %v1804_v30, %v1804_v30 }
 0x5ca   :  { %v2316_v34 = vsub.f32 0.0, %v2060_v33 }
 0x5cb   :  { %3334 = vset.pattern.permute.xlu1 %v3967_v11  ;;  %3335 = vset.pattern.permute.xlu2 %v4045_v46 }
 0x5cc   :  { %v3757_v40 = vpop.eup %3756  ;;  %v2783_v41 = vmul.f32 1.442695, %v2316_v34  ;;  %3346 = vset.pattern.permute.xlu0 %v4045_v46  ;;  %v1661_v46 = vsub.f32 %v456_v25, %v5518_v27 }
 0x5cd   :  { %3089 = vst.msk [vmem:[%s5823_s3 + $0x6b8] sm:$0xff] %vm2873_vm0, %v3757_v40  ;;  %v1359_v4 = vpop.permute.xlu2 %1358 }
 0x5ce   :  { %3758 = vpow2.f32 %v2783_v41  ;;  %v1810_v45 = vsub.f32 %v1359_v4, %v5149_v24  ;;  %v1917_v31 = vmul.f32 %v1661_v46, %v1661_v46 }
 0x5cf   :  { %3760 = vpow2.f32 %v2487_v44  ;;  %v941_v44 = vpop.permute.xlu0 %940 }
 0x5d0   :  { %v2066_v48 = vmul.f32 %v1810_v45, %v1810_v45  ;;  %v2173_v8 = vsub.f32 0.0, %v1917_v31 }
 0x5d2   :  { %v2322_v49 = vsub.f32 0.0, %v2066_v48  ;;  %v2497_v40 = vmul.f32 1.442695, %v2173_v8 }
 0x5d3   :  { %1443 = vperm.xlu1 %3334, %v5354_v60   ;;  %1449 = vperm.xlu2 %3335, %v5354_v60  }
 0x5d4   :  { %v3759_v50 = vpop.eup %3758  ;;  %v2795_v51 = vmul.f32 1.442695, %v2322_v49  ;;  %91 = vperm.xlu0 %3346, %v3949_v7  }
 0x5d5   :  { %v3761_v52 = vpop.eup %3760  ;;  %3085 = vst.msk [vmem:[%s5823_s3 + $0x698] sm:$0xff] %vm2873_vm0, %v3759_v50  ;;  %v1341_v35 = vpop.permute.xlu1 %1340 }
 0x5d6   :  { %v1807_v42 = vsub.f32 %v1341_v35, %v5149_v24  ;;  %2937 = vst.msk [vmem:[%s5823_s3 + $0x1f8] sm:$0xff] %vm2873_vm0, %v3761_v52  ;;  %3762 = vpow2.f32 %v2795_v51  ;;  %v1741_v52 = vsub.f32 %v941_v44, %v5518_v27 }
 0x5d7   :  { %3764 = vpow2.f32 %v2647_v61  ;;  %v1426_v35 = vpop.permute.xlu0 %1425 }
 0x5d8   :  { %v2063_v54 = vmul.f32 %v1807_v42, %v1807_v42  ;;  %v1821_v53 = vsub.f32 %v1426_v35, %v5518_v27  ;;  %v1997_v42 = vmul.f32 %v1741_v52, %v1741_v52 }
 0x5da   :  { %v2319_v55 = vsub.f32 0.0, %v2063_v54  ;;  %v2077_v6 = vmul.f32 %v1821_v53, %v1821_v53  ;;  %v2253_v54 = vsub.f32 0.0, %v1997_v42 }
 0x5db   :  { %3337 = vset.pattern.permute.xlu1 %v3977_v13  ;;  %3338 = vset.pattern.permute.xlu2 %v3984_v14 }
 0x5dc   :  { %v3763_v62 = vpop.eup %3762  ;;  %v2789_v63 = vmul.f32 1.442695, %v2319_v55  ;;  %576 = vperm.xlu0 %3346, %v4375_v28   ;;  %v2333_v57 = vsub.f32 0.0, %v2077_v6  ;;  %v2657_v55 = vmul.f32 1.442695, %v2253_v54 }
 0x5dd   :  { %3091 = vst.msk [vmem:[%s5823_s3 + $0x6c8] sm:$0xff] %vm2873_vm0, %v3763_v62  ;;  %v1377_v38 = vpop.permute.xlu2 %1376  ;;  %v3765_v36 = vpop.eup %3764 }
 0x5de   :  { %3766 = vpow2.f32 %v2789_v63  ;;  %v1813_v0 = vsub.f32 %v1377_v38, %v5149_v24  ;;  %3017 = vst.msk [vmem:[%s5823_s3 + $0x478] sm:$0xff] %vm2873_vm0, %v3765_v36  ;;  %v2817_v62 = vmul.f32 1.442695, %v2333_v57 }
 0x5df   :  { %3768 = vpow2.f32 %v2807_v32 }
 0x5e0   :  { %v2069_v5 = vmul.f32 %v1813_v0, %v1813_v0 }
 0x5e2   :  { %v2325_v21 = vsub.f32 0.0, %v2069_v5 }
 0x5e3   :  { %1461 = vperm.xlu1 %3337, %v5354_v60   ;;  %1467 = vperm.xlu2 %3338, %v5354_v60  }
 0x5e4   :  { %v3767_v22 = vpop.eup %3766  ;;  %v2801_v23 = vmul.f32 1.442695, %v2325_v21  ;;  %1061 = vperm.xlu0 %3346, %v4855_v43  }
 0x5e5   :  { %v3769_v20 = vpop.eup %3768  ;;  %3088 = vst.msk [vmem:[%s5823_s3 + $0x6b0] sm:$0xff] %vm2873_vm0, %v3767_v22  ;;  %v1353_v24 = vpop.permute.xlu1 %1352 }
 0x5e6   :  { %v1809_v29 = vsub.f32 %v1353_v24, %v5518_v27  ;;  %3097 = vst.msk [vmem:[%s5823_s3 + $0x6f8] sm:$0xff] %vm2873_vm0, %v3769_v20  ;;  %3770 = vpow2.f32 %v2801_v23  ;;  %v486_v23 = vpop.permute.xlu0 %485 }
 0x5e7   :  { %v1666_v20 = vsub.f32 %v486_v23, %v5518_v27 }
 0x5e8   :  { %v2065_v30 = vmul.f32 %v1809_v29, %v1809_v29 }
 0x5e9   :  { %v1922_v25 = vmul.f32 %v1666_v20, %v1666_v20 }
 0x5ea   :  { %v2321_v33 = vsub.f32 0.0, %v2065_v30 }
 0x5eb   :  { %3339 = vset.pattern.permute.xlu1 %v3987_v15  ;;  %3340 = vset.pattern.permute.xlu2 %v4076_v26  ;;  %v2178_v46 = vsub.f32 0.0, %v1922_v25 }
 0x5ec   :  { %v3771_v34 = vpop.eup %3770  ;;  %v2793_v37 = vmul.f32 1.442695, %v2321_v33  ;;  %1546 = vperm.xlu0 %3346, %v5494_v58  }
 0x5ed   :  { %3094 = vst.msk [vmem:[%s5823_s3 + $0x6e0] sm:$0xff] %vm2873_vm0, %v3771_v34  ;;  %v1389_v41 = vpop.permute.xlu2 %1388  ;;  %v2507_v33 = vmul.f32 1.442695, %v2178_v46 }
 0x5ee   :  { %3772 = vpow2.f32 %v2793_v37  ;;  %v1815_v4 = vsub.f32 %v1389_v41, %v5518_v27  ;;  %v971_v34 = vpop.permute.xlu0 %970 }
 0x5ef   :  { %3774 = vpow2.f32 %v2497_v40 }
 0x5f0   :  { %v2071_v47 = vmul.f32 %v1815_v4, %v1815_v4  ;;  %v1746_v4 = vsub.f32 %v971_v34, %v5518_v27 }
 0x5f2   :  { %v2327_v45 = vsub.f32 0.0, %v2071_v47 }
 0x5f3   :  { %1473 = vperm.xlu1 %3339, %v5354_v60   ;;  %1479 = vperm.xlu2 %3340, %v5354_v60  }
 0x5f4   :  { %v3773_v48 = vpop.eup %3772  ;;  %v2805_v49 = vmul.f32 1.442695, %v2327_v45  ;;  %3351 = vset.pattern.permute.xlu0 %v4076_v26 }
 0x5f5   :  { %v3775_v50 = vpop.eup %3774  ;;  %3090 = vst.msk [vmem:[%s5823_s3 + $0x6c0] sm:$0xff] %vm2873_vm0, %v3773_v48  ;;  %v1371_v51 = vpop.permute.xlu1 %1370  ;;  %v2002_v48 = vmul.f32 %v1746_v4, %v1746_v4 }
 0x5f6   :  { %v1812_v16 = vsub.f32 %v1371_v51, %v5518_v27  ;;  %2942 = vst.msk [vmem:[%s5823_s3 + $0x220] sm:$0xff] %vm2873_vm0, %v3775_v50  ;;  %3776 = vpow2.f32 %v2805_v49  ;;  %v1456_v47 = vpop.permute.xlu0 %1455 }
 0x5f7   :  { %3778 = vpow2.f32 %v2657_v55  ;;  %v2258_v51 = vsub.f32 0.0, %v2002_v48 }
 0x5f8   :  { %v2068_v39 = vmul.f32 %v1812_v16, %v1812_v16 }
 0x5f9   :  { %v2667_v16 = vmul.f32 1.442695, %v2258_v51 }
 0x5fa   :  { %v2324_v56 = vsub.f32 0.0, %v2068_v39 }
 0x5fb   :  { %3342 = vset.pattern.permute.xlu1 %v4001_v18  ;;  %3343 = vset.pattern.permute.xlu2 %v3928_v1 }
 0x5fc   :  { %v3777_v59 = vpop.eup %3776  ;;  %v2799_v61 = vmul.f32 1.442695, %v2324_v56  ;;  %121 = vperm.xlu0 %3351, %v3949_v7   ;;  %v1826_v7 = vsub.f32 %v1456_v47, %v5518_v27 }
 0x5fd   :  { %3096 = vst.msk [vmem:[%s5823_s3 + $0x6f0] sm:$0xff] %vm2873_vm0, %v3777_v59  ;;  %v1408_v63 = vpop.permute.xlu2 %1407  ;;  %v3779_v5 = vpop.eup %3778 }
 0x5fe   :  { %3780 = vpow2.f32 %v2799_v61  ;;  %v1818_v32 = vsub.f32 %v1408_v63, %v5518_v27  ;;  %3022 = vst.msk [vmem:[%s5823_s3 + $0x4a0] sm:$0xff] %vm2873_vm0, %v3779_v5  ;;  %v2082_v50 = vmul.f32 %v1826_v7, %v1826_v7 }
 0x5ff   :  { %3782 = vpow2.f32 %v2817_v62 }
 0x600   :  { %v2074_v38 = vmul.f32 %v1818_v32, %v1818_v32  ;;  %v2338_v35 = vsub.f32 0.0, %v2082_v50 }
 0x602   :  { %v2330_v0 = vsub.f32 0.0, %v2074_v38  ;;  %v2827_v39 = vmul.f32 1.442695, %v2338_v35 }
 0x603   :  { %1491 = vperm.xlu1 %3342, %v5354_v60   ;;  %1498 = vperm.xlu2 %3343, %v5494_v58  }
 0x604   :  { %v3781_v1 = vpop.eup %3780  ;;  %v2811_v21 = vmul.f32 1.442695, %v2330_v0  ;;  %606 = vperm.xlu0 %3351, %v4375_v28  }
 0x605   :  { %v3783_v36 = vpop.eup %3782  ;;  %3093 = vst.msk [vmem:[%s5823_s3 + $0x6d8] sm:$0xff] %vm2873_vm0, %v3781_v1  ;;  %v1383_v22 = vpop.permute.xlu1 %1382 }
 0x606   :  { %v1814_v60 = vsub.f32 %v1383_v22, %v5518_v27  ;;  %3102 = vst.msk [vmem:[%s5823_s3 + $0x720] sm:$0xff] %vm2873_vm0, %v3783_v36  ;;  %3784 = vpow2.f32 %v2811_v21  ;;  %v516_v61 = vpop.permute.xlu0 %515 }
 0x607   :  { %v1671_v63 = vsub.f32 %v516_v61, %v5518_v27 }
 0x608   :  { %v2070_v24 = vmul.f32 %v1814_v60, %v1814_v60 }
 0x60a   :  { %v2326_v29 = vsub.f32 0.0, %v2070_v24 }
 0x60b   :  { %3344 = vset.pattern.permute.xlu1 %v4008_v19  ;;  %3345 = vset.pattern.permute.xlu2 %v3931_v2 }
 0x60c   :  { %v3785_v30 = vpop.eup %3784  ;;  %v2803_v31 = vmul.f32 1.442695, %v2326_v29  ;;  %1091 = vperm.xlu0 %3351, %v4855_v43   ;;  %v1927_v43 = vmul.f32 %v1671_v63, %v1671_v63 }
 0x60d   :  { %3099 = vst.msk [vmem:[%s5823_s3 + $0x708] sm:$0xff] %vm2873_vm0, %v3785_v30  ;;  %v1420_v8 = vpop.permute.xlu2 %1419 }
 0x60e   :  { %3786 = vpow2.f32 %v2803_v31  ;;  %v1820_v37 = vsub.f32 %v1420_v8, %v5518_v27  ;;  %v2183_v0 = vsub.f32 0.0, %v1927_v43  ;;  %v1001_v22 = vpop.permute.xlu0 %1000 }
 0x60f   :  { %3788 = vpow2.f32 %v2507_v33  ;;  %v1751_v29 = vsub.f32 %v1001_v22, %v5518_v27 }
 0x610   :  { %v2076_v40 = vmul.f32 %v1820_v37, %v1820_v37  ;;  %v2517_v21 = vmul.f32 1.442695, %v2183_v0 }
 0x611   :  { %v2007_v33 = vmul.f32 %v1751_v29, %v1751_v29 }
 0x612   :  { %v2332_v19 = vsub.f32 0.0, %v2076_v40 }
 0x613   :  { %1504 = vperm.xlu1 %3344, %v5494_v58   ;;  %1510 = vperm.xlu2 %3345, %v5494_v58   ;;  %v2263_v37 = vsub.f32 0.0, %v2007_v33 }
 0x614   :  { %v3787_v2 = vpop.eup %3786  ;;  %v2815_v41 = vmul.f32 1.442695, %v2332_v19  ;;  %1576 = vperm.xlu0 %3351, %v5494_v58  }
 0x615   :  { %v3789_v26 = vpop.eup %3788  ;;  %3095 = vst.msk [vmem:[%s5823_s3 + $0x6e8] sm:$0xff] %vm2873_vm0, %v3787_v2  ;;  %v1402_v44 = vpop.permute.xlu1 %1401  ;;  %v2677_v2 = vmul.f32 1.442695, %v2263_v37 }
 0x616   :  { %v1817_v45 = vsub.f32 %v1402_v44, %v5518_v27  ;;  %2947 = vst.msk [vmem:[%s5823_s3 + $0x248] sm:$0xff] %vm2873_vm0, %v3789_v26  ;;  %3790 = vpow2.f32 %v2815_v41  ;;  %v1486_v46 = vpop.permute.xlu0 %1485 }
 0x617   :  { %3792 = vpow2.f32 %v2667_v16  ;;  %v1831_v31 = vsub.f32 %v1486_v46, %v5518_v27 }
 0x618   :  { %v2073_v49 = vmul.f32 %v1817_v45, %v1817_v45 }
 0x619   :  { %v2087_v34 = vmul.f32 %v1831_v31, %v1831_v31 }
 0x61a   :  { %v2329_v52 = vsub.f32 0.0, %v2073_v49 }
 0x61b   :  { %3347 = vset.pattern.permute.xlu1 %v3934_v3  ;;  %3348 = vset.pattern.permute.xlu2 %v3957_v9  ;;  %v2343_v19 = vsub.f32 0.0, %v2087_v34 }
 0x61c   :  { %v3791_v53 = vpop.eup %3790  ;;  %v2809_v42 = vmul.f32 1.442695, %v2329_v52  ;;  %3358 = vset.pattern.permute.xlu0 %v4001_v18 }
 0x61d   :  { %3101 = vst.msk [vmem:[%s5823_s3 + $0x718] sm:$0xff] %vm2873_vm0, %v3791_v53  ;;  %v1438_v6 = vpop.permute.xlu2 %1437  ;;  %v3793_v57 = vpop.eup %3792  ;;  %v2837_v44 = vmul.f32 1.442695, %v2343_v19 }
 0x61e   :  { %3794 = vpow2.f32 %v2809_v42  ;;  %v1823_v54 = vsub.f32 %v1438_v6, %v5518_v27  ;;  %3027 = vst.msk [vmem:[%s5823_s3 + $0x4c8] sm:$0xff] %vm2873_vm0, %v3793_v57 }
 0x61f   :  { %3796 = vpow2.f32 %v2827_v39 }
 0x620   :  { %v2079_v3 = vmul.f32 %v1823_v54, %v1823_v54 }
 0x622   :  { %v2335_v56 = vsub.f32 0.0, %v2079_v3 }
 0x623   :  { %1522 = vperm.xlu1 %3347, %v5494_v58   ;;  %1528 = vperm.xlu2 %3348, %v5494_v58  }
 0x624   :  { %v3795_v9 = vpop.eup %3794  ;;  %v2821_v28 = vmul.f32 1.442695, %v2335_v56 }
 0x625   :  { %v3797_v55 = vpop.eup %3796  ;;  %3098 = vst.msk [vmem:[%s5823_s3 + $0x700] sm:$0xff] %vm2873_vm0, %v3795_v9  ;;  %v1414_v59 = vpop.permute.xlu1 %1413 }
 0x626   :  { %v1819_v62 = vsub.f32 %v1414_v59, %v5518_v27  ;;  %3107 = vst.msk [vmem:[%s5823_s3 + $0x748] sm:$0xff] %vm2873_vm0, %v3797_v55  ;;  %3798 = vpow2.f32 %v2821_v28  ;;  %v547_v51 = vpop.permute.xlu0 %546 }
 0x627   :  { %v1676_v35 = vsub.f32 %v547_v51, %v5518_v27 }
 0x628   :  { %v2075_v32 = vmul.f32 %v1819_v62, %v1819_v62 }
 0x629   :  { %v1932_v53 = vmul.f32 %v1676_v35, %v1676_v35 }
 0x62a   :  { %v2331_v38 = vsub.f32 0.0, %v2075_v32 }
 0x62b   :  { %3349 = vset.pattern.permute.xlu1 %v3964_v10  ;;  %3350 = vset.pattern.permute.xlu2 %v3967_v11  ;;  %v2188_v39 = vsub.f32 0.0, %v1932_v53 }
 0x62c   :  { %v3799_v5 = vpop.eup %3798  ;;  %v2813_v1 = vmul.f32 1.442695, %v2331_v38 }
 0x62d   :  { %3104 = vst.msk [vmem:[%s5823_s3 + $0x730] sm:$0xff] %vm2873_vm0, %v3799_v5  ;;  %v1450_v36 = vpop.permute.xlu2 %1449  ;;  %v2527_v3 = vmul.f32 1.442695, %v2188_v39 }
 0x62e   :  { %3800 = vpow2.f32 %v2813_v1  ;;  %v1825_v23 = vsub.f32 %v1450_v36, %v5518_v27  ;;  %v1032_v57 = vpop.permute.xlu0 %1031 }
 0x62f   :  { %3802 = vpow2.f32 %v2517_v21  ;;  %v1756_v62 = vsub.f32 %v1032_v57, %v5518_v27 }
 0x630   :  { %v2081_v60 = vmul.f32 %v1825_v23, %v1825_v23 }
 0x631   :  { %v2012_v38 = vmul.f32 %v1756_v62, %v1756_v62 }
 0x632   :  { %v2337_v10 = vsub.f32 0.0, %v2081_v60 }
 0x633   :  { %1534 = vperm.xlu1 %3349, %v5494_v58   ;;  %1540 = vperm.xlu2 %3350, %v5494_v58   ;;  %v2268_v1 = vsub.f32 0.0, %v2012_v38 }
 0x634   :  { %v3801_v11 = vpop.eup %3800  ;;  %v2825_v20 = vmul.f32 1.442695, %v2337_v10 }
 0x635   :  { %v3803_v24 = vpop.eup %3802  ;;  %3100 = vst.msk [vmem:[%s5823_s3 + $0x710] sm:$0xff] %vm2873_vm0, %v3801_v11  ;;  %v1432_v25 = vpop.permute.xlu1 %1431  ;;  %v2687_v22 = vmul.f32 1.442695, %v2268_v1 }
 0x636   :  { %v1822_v30 = vsub.f32 %v1432_v25, %v5518_v27  ;;  %2952 = vst.msk [vmem:[%s5823_s3 + $0x270] sm:$0xff] %vm2873_vm0, %v3803_v24  ;;  %3804 = vpow2.f32 %v2825_v20  ;;  %v1517_v63 = vpop.permute.xlu0 %1516 }
 0x637   :  { %3806 = vpow2.f32 %v2677_v2  ;;  %v1836_v43 = vsub.f32 %v1517_v63, %v5518_v27 }
 0x638   :  { %v2078_v8 = vmul.f32 %v1822_v30, %v1822_v30 }
 0x639   :  { %v2092_v5 = vmul.f32 %v1836_v43, %v1836_v43 }
 0x63a   :  { %v2334_v40 = vsub.f32 0.0, %v2078_v8 }
 0x63b   :  { %3352 = vset.pattern.permute.xlu1 %v3974_v12  ;;  %3353 = vset.pattern.permute.xlu2 %v3977_v13  ;;  %v2348_v36 = vsub.f32 0.0, %v2092_v5 }
 0x63c   :  { %v3805_v41 = vpop.eup %3804  ;;  %v2819_v26 = vmul.f32 1.442695, %v2334_v40 }
 0x63d   :  { %3106 = vst.msk [vmem:[%s5823_s3 + $0x740] sm:$0xff] %vm2873_vm0, %v3805_v41  ;;  %v1468_v4 = vpop.permute.xlu2 %1467  ;;  %v3807_v12 = vpop.eup %3806  ;;  %v2847_v10 = vmul.f32 1.442695, %v2348_v36 }
 0x63e   :  { %3808 = vpow2.f32 %v2819_v26  ;;  %v1828_v47 = vsub.f32 %v1468_v4, %v5518_v27  ;;  %3032 = vst.msk [vmem:[%s5823_s3 + $0x4f0] sm:$0xff] %vm2873_vm0, %v3807_v12 }
 0x63f   :  { %3810 = vpow2.f32 %v2837_v44 }
 0x640   :  { %v2084_v45 = vmul.f32 %v1828_v47, %v1828_v47 }
 0x642   :  { %v2340_v7 = vsub.f32 0.0, %v2084_v45 }
 0x643   :  { %1552 = vperm.xlu1 %3352, %v5494_v58   ;;  %1558 = vperm.xlu2 %3353, %v5494_v58  }
 0x644   :  { %v3809_v13 = vpop.eup %3808  ;;  %v2831_v48 = vmul.f32 1.442695, %v2340_v7 }
 0x645   :  { %v3811_v49 = vpop.eup %3810  ;;  %3103 = vst.msk [vmem:[%s5823_s3 + $0x728] sm:$0xff] %vm2873_vm0, %v3809_v13  ;;  %v1444_v50 = vpop.permute.xlu1 %1443 }
 0x646   :  { %v1824_v52 = vsub.f32 %v1444_v50, %v5518_v27  ;;  %3112 = vst.msk [vmem:[%s5823_s3 + $0x770] sm:$0xff] %vm2873_vm0, %v3811_v49  ;;  %3812 = vpow2.f32 %v2831_v48  ;;  %v92_v24 = vpop.permute.xlu0 %91 }
 0x647   :  { %v1601_v33 = vsub.f32 %v92_v24, %v5518_v27 }
 0x648   :  { %v2080_v16 = vmul.f32 %v1824_v52, %v1824_v52 }
 0x649   :  { %v1857_v34 = vmul.f32 %v1601_v33, %v1601_v33 }
 0x64a   :  { %v2336_v42 = vsub.f32 0.0, %v2080_v16 }
 0x64b   :  { %3354 = vset.pattern.permute.xlu1 %v3984_v14  ;;  %3355 = vset.pattern.permute.xlu2 %v3987_v15  ;;  %v2113_v19 = vsub.f32 0.0, %v1857_v34 }
 0x64c   :  { %v3813_v6 = vpop.eup %3812  ;;  %v2823_v54 = vmul.f32 1.442695, %v2336_v42 }
 0x64d   :  { %3109 = vst.msk [vmem:[%s5823_s3 + $0x758] sm:$0xff] %vm2873_vm0, %v3813_v6  ;;  %v1480_v56 = vpop.permute.xlu2 %1479  ;;  %v2377_v26 = vmul.f32 1.442695, %v2113_v19 }
 0x64e   :  { %3814 = vpow2.f32 %v2823_v54  ;;  %v1830_v9 = vsub.f32 %v1480_v56, %v5518_v27 }
 0x64f   :  { %3816 = vpow2.f32 %v2527_v3 }
 0x650   :  { %v2086_v28 = vmul.f32 %v1830_v9, %v1830_v9 }
 0x652   :  { %v2342_v55 = vsub.f32 0.0, %v2086_v28 }
 0x653   :  { %1564 = vperm.xlu1 %3354, %v5494_v58   ;;  %1570 = vperm.xlu2 %3355, %v5494_v58  }
 0x654   :  { %v3815_v14 = vpop.eup %3814  ;;  %v2835_v15 = vmul.f32 1.442695, %v2342_v55 }
 0x655   :  { %v3817_v59 = vpop.eup %3816  ;;  %3105 = vst.msk [vmem:[%s5823_s3 + $0x738] sm:$0xff] %vm2873_vm0, %v3815_v14  ;;  %v1462_v61 = vpop.permute.xlu1 %1461 }
 0x656   :  { %v1827_v32 = vsub.f32 %v1462_v61, %v5518_v27  ;;  %2957 = vst.msk [vmem:[%s5823_s3 + $0x298] sm:$0xff] %vm2873_vm0, %v3817_v59  ;;  %3818 = vpow2.f32 %v2835_v15 }
 0x657   :  { %3820 = vpow2.f32 %v2687_v22 }
 0x658   :  { %v2083_v0 = vmul.f32 %v1827_v32, %v1827_v32 }
 0x65a   :  { %v2339_v21 = vsub.f32 0.0, %v2083_v0 }
 0x65b   :  { %3356 = vset.pattern.permute.xlu1 %v3998_v17  ;;  %3357 = vset.pattern.permute.xlu2 %v4001_v18 }
 0x65c   :  { %v3819_v23 = vpop.eup %3818  ;;  %v2829_v60 = vmul.f32 1.442695, %v2339_v21 }
 0x65d   :  { %3111 = vst.msk [vmem:[%s5823_s3 + $0x768] sm:$0xff] %vm2873_vm0, %v3819_v23  ;;  %v1499_v11 = vpop.permute.xlu2 %1498  ;;  %v3821_v29 = vpop.eup %3820 }
 0x65e   :  { %3822 = vpow2.f32 %v2829_v60  ;;  %v1833_v20 = vsub.f32 %v1499_v11, %v5518_v27  ;;  %3037 = vst.msk [vmem:[%s5823_s3 + $0x518] sm:$0xff] %vm2873_vm0, %v3821_v29 }
 0x65f   :  { %3824 = vpow2.f32 %v2847_v10 }
 0x660   :  { %v2089_v25 = vmul.f32 %v1833_v20, %v1833_v20 }
 0x662   :  { %v2345_v17 = vsub.f32 0.0, %v2089_v25 }
 0x663   :  { %1582 = vperm.xlu1 %3356, %v5494_v58   ;;  %1588 = vperm.xlu2 %3357, %v5494_v58   ;;  %v577_v58 = vpop.permute.xlu0 %576 }
 0x664   :  { %v3823_v18 = vpop.eup %3822  ;;  %v2841_v46 = vmul.f32 1.442695, %v2345_v17  ;;  %v1681_v37 = vsub.f32 %v577_v58, %v5518_v27 }
 0x665   :  { %v3825_v30 = vpop.eup %3824  ;;  %3108 = vst.msk [vmem:[%s5823_s3 + $0x750] sm:$0xff] %vm2873_vm0, %v3823_v18  ;;  %v1474_v31 = vpop.permute.xlu1 %1473 }
 0x666   :  { %v1829_v8 = vsub.f32 %v1474_v31, %v5518_v27  ;;  %3117 = vst.msk [vmem:[%s5823_s3 + $0x798] sm:$0xff] %vm2873_vm0, %v3825_v30  ;;  %3826 = vpow2.f32 %v2841_v46  ;;  %v1937_v2 = vmul.f32 %v1681_v37, %v1681_v37 }
 0x667   :  { %3828 = vpow2.f32 %v2377_v26 }
 0x668   :  { %v2085_v40 = vmul.f32 %v1829_v8, %v1829_v8  ;;  %v2193_v44 = vsub.f32 0.0, %v1937_v2 }
 0x66a   :  { %v2341_v41 = vsub.f32 0.0, %v2085_v40  ;;  %v2537_v45 = vmul.f32 1.442695, %v2193_v44 }
 0x66b   :  { %v1062_v13 = vpop.permute.xlu0 %1061 }
 0x66c   :  { %v3827_v4 = vpop.eup %3826  ;;  %v2833_v47 = vmul.f32 1.442695, %v2341_v41  ;;  %v1761_v53 = vsub.f32 %v1062_v13, %v5518_v27 }
 0x66d   :  { %3114 = vst.msk [vmem:[%s5823_s3 + $0x780] sm:$0xff] %vm2873_vm0, %v3827_v4  ;;  %v1511_v7 = vpop.permute.xlu2 %1510  ;;  %v3829_v50 = vpop.eup %3828 }
 0x66e   :  { %3830 = vpow2.f32 %v2833_v47  ;;  %v1835_v12 = vsub.f32 %v1511_v7, %v5518_v27  ;;  %2882 = vst.msk [vmem:[%s5823_s3 + $0x40] sm:$0xff] %vm2873_vm0, %v3829_v50  ;;  %v2017_v6 = vmul.f32 %v1761_v53, %v1761_v53 }
 0x66f   :  { %3832 = vpow2.f32 %v2537_v45 }
 0x670   :  { %v2091_v48 = vmul.f32 %v1835_v12, %v1835_v12  ;;  %v2273_v56 = vsub.f32 0.0, %v2017_v6 }
 0x672   :  { %v2347_v49 = vsub.f32 0.0, %v2091_v48  ;;  %v2697_v28 = vmul.f32 1.442695, %v2273_v56 }
 0x673   :  { %v1547_v39 = vpop.permute.xlu0 %1546 }
 0x674   :  { %v3831_v51 = vpop.eup %3830  ;;  %v2845_v52 = vmul.f32 1.442695, %v2347_v49  ;;  %v1841_v54 = vsub.f32 %v1547_v39, %v5518_v27 }
 0x675   :  { %v3833_v35 = vpop.eup %3832  ;;  %3110 = vst.msk [vmem:[%s5823_s3 + $0x760] sm:$0xff] %vm2873_vm0, %v3831_v51  ;;  %v1492_v16 = vpop.permute.xlu1 %1491 }
 0x676   :  { %v1832_v42 = vsub.f32 %v1492_v16, %v5518_v27  ;;  %2962 = vst.msk [vmem:[%s5823_s3 + $0x2c0] sm:$0xff] %vm2873_vm0, %v3833_v35  ;;  %3834 = vpow2.f32 %v2845_v52  ;;  %v2097_v57 = vmul.f32 %v1841_v54, %v1841_v54 }
 0x677   :  { %3836 = vpow2.f32 %v2697_v28 }
 0x678   :  { %v2088_v3 = vmul.f32 %v1832_v42, %v1832_v42  ;;  %v2353_v55 = vsub.f32 0.0, %v2097_v57 }
 0x67a   :  { %v2344_v9 = vsub.f32 0.0, %v2088_v3  ;;  %v2857_v59 = vmul.f32 1.442695, %v2353_v55 }
 0x67b   :  { %v122_v36 = vpop.permute.xlu0 %121 }
 0x67c   :  { %v3835_v14 = vpop.eup %3834  ;;  %v2839_v15 = vmul.f32 1.442695, %v2344_v9  ;;  %v1606_v22 = vsub.f32 %v122_v36, %v5518_v27 }
 0x67d   :  { %3116 = vst.msk [vmem:[%s5823_s3 + $0x790] sm:$0xff] %vm2873_vm0, %v3835_v14  ;;  %v1529_v61 = vpop.permute.xlu2 %1528  ;;  %v3837_v43 = vpop.eup %3836 }
 0x67e   :  { %3838 = vpow2.f32 %v2839_v15  ;;  %v1838_v62 = vsub.f32 %v1529_v61, %v5518_v27  ;;  %3042 = vst.msk [vmem:[%s5823_s3 + $0x540] sm:$0xff] %vm2873_vm0, %v3837_v43  ;;  %v1862_v60 = vmul.f32 %v1606_v22, %v1606_v22 }
 0x67f   :  { %3840 = vpow2.f32 %v2857_v59 }
 0x680   :  { %v2094_v63 = vmul.f32 %v1838_v62, %v1838_v62  ;;  %v2118_v11 = vsub.f32 0.0, %v1862_v60 }
 0x682   :  { %v2350_v32 = vsub.f32 0.0, %v2094_v63  ;;  %v2387_v25 = vmul.f32 1.442695, %v2118_v11 }
 0x683   :  { %v607_v18 = vpop.permute.xlu0 %606 }
 0x684   :  { %v3839_v38 = vpop.eup %3838  ;;  %v2851_v0 = vmul.f32 1.442695, %v2350_v32  ;;  %v1686_v34 = vsub.f32 %v607_v18, %v5518_v27 }
 0x685   :  { %v3841_v5 = vpop.eup %3840  ;;  %3113 = vst.msk [vmem:[%s5823_s3 + $0x778] sm:$0xff] %vm2873_vm0, %v3839_v38  ;;  %v1505_v1 = vpop.permute.xlu1 %1504 }
 0x686   :  { %v1834_v21 = vsub.f32 %v1505_v1, %v5518_v27  ;;  %3122 = vst.msk [vmem:[%s5823_s3 + $0x7c0] sm:$0xff] %vm2873_vm0, %v3841_v5  ;;  %3842 = vpow2.f32 %v2851_v0  ;;  %v1942_v19 = vmul.f32 %v1686_v34, %v1686_v34 }
 0x688   :  { %v2090_v23 = vmul.f32 %v1834_v21, %v1834_v21  ;;  %v2198_v26 = vsub.f32 0.0, %v1942_v19 }
 0x68a   :  { %v2346_v10 = vsub.f32 0.0, %v2090_v23  ;;  %v2547_v47 = vmul.f32 1.442695, %v2198_v26 }
 0x68b   :  { %v1092_v40 = vpop.permute.xlu0 %1091 }
 0x68c   :  { %v3843_v20 = vpop.eup %3842  ;;  %v2843_v24 = vmul.f32 1.442695, %v2346_v10  ;;  %v1766_v2 = vsub.f32 %v1092_v40, %v5518_v27 }
 0x68d   :  { %3119 = vst.msk [vmem:[%s5823_s3 + $0x7a8] sm:$0xff] %vm2873_vm0, %v3843_v20  ;;  %v1541_v17 = vpop.permute.xlu2 %1540 }
 0x68e   :  { %3844 = vpow2.f32 %v2843_v24  ;;  %v1840_v29 = vsub.f32 %v1541_v17, %v5518_v27  ;;  %v2022_v44 = vmul.f32 %v1766_v2, %v1766_v2 }
 0x68f   :  { %3846 = vpow2.f32 %v2387_v25 }
 0x690   :  { %v2096_v46 = vmul.f32 %v1840_v29, %v1840_v29  ;;  %v2278_v45 = vsub.f32 0.0, %v2022_v44 }
 0x692   :  { %v2352_v30 = vsub.f32 0.0, %v2096_v46  ;;  %v2707_v13 = vmul.f32 1.442695, %v2278_v45 }
 0x693   :  { %v1577_v50 = vpop.permute.xlu0 %1576 }
 0x694   :  { %v3845_v31 = vpop.eup %3844  ;;  %v2855_v33 = vmul.f32 1.442695, %v2352_v30  ;;  %v1846_v51 = vsub.f32 %v1577_v50, %v5518_v27 }
 0x695   :  { %v3847_v8 = vpop.eup %3846  ;;  %3115 = vst.msk [vmem:[%s5823_s3 + $0x788] sm:$0xff] %vm2873_vm0, %v3845_v31  ;;  %v1523_v58 = vpop.permute.xlu1 %1522 }
 0x696   :  { %v1837_v37 = vsub.f32 %v1523_v58, %v5518_v27  ;;  %2887 = vst.msk [vmem:[%s5823_s3 + $0x68] sm:$0xff] %vm2873_vm0, %v3847_v8  ;;  %3848 = vpow2.f32 %v2855_v33  ;;  %v2102_v35 = vmul.f32 %v1846_v51, %v1846_v51 }
 0x697   :  { %3850 = vpow2.f32 %v2547_v47 }
 0x698   :  { %v2093_v41 = vmul.f32 %v1837_v37, %v1837_v37  ;;  %v2358_v42 = vsub.f32 0.0, %v2102_v35 }
 0x69a   :  { %v2349_v4 = vsub.f32 0.0, %v2093_v41  ;;  %v2867_v56 = vmul.f32 1.442695, %v2358_v42 }
 0x69c   :  { %v3849_v7 = vpop.eup %3848  ;;  %v2849_v12 = vmul.f32 1.442695, %v2349_v4 }
 0x69d   :  { %3121 = vst.msk [vmem:[%s5823_s3 + $0x7b8] sm:$0xff] %vm2873_vm0, %v3849_v7  ;;  %v1559_v48 = vpop.permute.xlu2 %1558  ;;  %v3851_v53 = vpop.eup %3850 }
 0x69e   :  { %3852 = vpow2.f32 %v2849_v12  ;;  %v1843_v49 = vsub.f32 %v1559_v48, %v5518_v27  ;;  %2967 = vst.msk [vmem:[%s5823_s3 + $0x2e8] sm:$0xff] %vm2873_vm0, %v3851_v53 }
 0x69f   :  { %3854 = vpow2.f32 %v2707_v13 }
 0x6a0   :  { %v2099_v52 = vmul.f32 %v1843_v49, %v1843_v49 }
 0x6a2   :  { %v2355_v16 = vsub.f32 0.0, %v2099_v52 }
 0x6a4   :  { %v3853_v39 = vpop.eup %3852  ;;  %v2861_v6 = vmul.f32 1.442695, %v2355_v16 }
 0x6a5   :  { %v3855_v54 = vpop.eup %3854  ;;  %3118 = vst.msk [vmem:[%s5823_s3 + $0x7a0] sm:$0xff] %vm2873_vm0, %v3853_v39  ;;  %v1535_v3 = vpop.permute.xlu1 %1534 }
 0x6a6   :  { %v1839_v57 = vsub.f32 %v1535_v3, %v5518_v27  ;;  %3047 = vst.msk [vmem:[%s5823_s3 + $0x568] sm:$0xff] %vm2873_vm0, %v3855_v54  ;;  %3856 = vpow2.f32 %v2861_v6 }
 0x6a7   :  { %3858 = vpow2.f32 %v2867_v56 }
 0x6a8   :  { %v2095_v9 = vmul.f32 %v1839_v57, %v1839_v57 }
 0x6aa   :  { %v2351_v28 = vsub.f32 0.0, %v2095_v9 }
 0x6ac   :  { %v3857_v55 = vpop.eup %3856  ;;  %v2853_v14 = vmul.f32 1.442695, %v2351_v28 }
 0x6ad   :  { %v3859_v15 = vpop.eup %3858  ;;  %3124 = vst.msk [vmem:[%s5823_s3 + $0x7d0] sm:$0xff] %vm2873_vm0, %v3857_v55  ;;  %v1571_v59 = vpop.permute.xlu2 %1570 }
 0x6ae   :  { %3860 = vpow2.f32 %v2853_v14  ;;  %3127 = vst.msk [vmem:[%s5823_s3 + $0x7e8] sm:$0xff] %vm2873_vm0, %v3859_v15  ;;  %v1845_v61 = vsub.f32 %v1571_v59, %v5518_v27 }
 0x6b0   :  { %v2101_v62 = vmul.f32 %v1845_v61, %v1845_v61 }
 0x6b2   :  { %v2357_v63 = vsub.f32 0.0, %v2101_v62 }
 0x6b4   :  { %v3861_v32 = vpop.eup %3860  ;;  %v2865_v43 = vmul.f32 1.442695, %v2357_v63 }
 0x6b5   :  { %3120 = vst.msk [vmem:[%s5823_s3 + $0x7b0] sm:$0xff] %vm2873_vm0, %v3861_v32  ;;  %v1553_v38 = vpop.permute.xlu1 %1552 }
 0x6b6   :  { %v1842_v0 = vsub.f32 %v1553_v38, %v5518_v27  ;;  %3862 = vpow2.f32 %v2865_v43 }
 0x6b8   :  { %v2098_v5 = vmul.f32 %v1842_v0, %v1842_v0 }
 0x6ba   :  { %v2354_v1 = vsub.f32 0.0, %v2098_v5 }
 0x6bc   :  { %v3863_v21 = vpop.eup %3862  ;;  %v2859_v36 = vmul.f32 1.442695, %v2354_v1 }
 0x6bd   :  { %3126 = vst.msk [vmem:[%s5823_s3 + $0x7e0] sm:$0xff] %vm2873_vm0, %v3863_v21  ;;  %v1589_v22 = vpop.permute.xlu2 %1588 }
 0x6be   :  { %3864 = vpow2.f32 %v2859_v36  ;;  %v1848_v23 = vsub.f32 %v1589_v22, %v5518_v27 }
 0x6c0   :  { %v2104_v60 = vmul.f32 %v1848_v23, %v1848_v23 }
 0x6c2   :  { %v2360_v10 = vsub.f32 0.0, %v2104_v60 }
 0x6c4   :  { %v3865_v11 = vpop.eup %3864  ;;  %v2871_v20 = vmul.f32 1.442695, %v2360_v10 }
 0x6c5   :  { %3123 = vst.msk [vmem:[%s5823_s3 + $0x7c8] sm:$0xff] %vm2873_vm0, %v3865_v11  ;;  %v1565_v24 = vpop.permute.xlu1 %1564 }
 0x6c6   :  { %v1844_v25 = vsub.f32 %v1565_v24, %v5518_v27  ;;  %3866 = vpow2.f32 %v2871_v20 }
 0x6c8   :  { %v2100_v17 = vmul.f32 %v1844_v25, %v1844_v25 }
 0x6ca   :  { %v2356_v29 = vsub.f32 0.0, %v2100_v17 }
 0x6cc   :  { %v3867_v18 = vpop.eup %3866  ;;  %v2863_v46 = vmul.f32 1.442695, %v2356_v29 }
 0x6cd   :  { %3129 = vst.msk [vmem:[%s5823_s3 + $0x7f8] sm:$0xff] %vm2873_vm0, %v3867_v18 }
 0x6ce   :  { %3868 = vpow2.f32 %v2863_v46 }
 0x6d4   :  { %v3869_v30 = vpop.eup %3868 }
 0x6d5   :  { %3125 = vst.msk [vmem:[%s5823_s3 + $0x7d8] sm:$0xff] %vm2873_vm0, %v3869_v30  ;;  %v1583_v31 = vpop.permute.xlu1 %1582 }
 0x6d6   :  { %v1847_v33 = vsub.f32 %v1583_v31, %v5518_v27 }
 0x6d8   :  { %v2103_v8 = vmul.f32 %v1847_v33, %v1847_v33 }
 0x6da   :  { %v2359_v58 = vsub.f32 0.0, %v2103_v8 }
 0x6dc   :  { %v2869_v34 = vmul.f32 1.442695, %v2359_v58 }
 0x6de   :  { %3870 = vpow2.f32 %v2869_v34 }
 0x6e4   :  { %v3871_v37 = vpop.eup %3870 }
 0x6e5   :  { %3128 = vst.msk [vmem:[%s5823_s3 + $0x7f0] sm:$0xff] %vm2873_vm0, %v3871_v37 }
 0x6e6   :  { %3134 = vsyncpa [#allocation4], 1 }

</bundles_post_ra>
